<compile_context>
chip_gen: v7x
topology: tpu7x:2x2x1
jax: 0.10.0
libtpu: 0.0.40
codegen_flags: <defaults>
</compile_context>

<pallas_src>
import jax
import jax.numpy as jnp
from jax import lax
from jax.experimental import pallas as pl
from jax.experimental.pallas import tpu as pltpu


def _round_up(x, m):
    return ((x + m - 1) // m) * m


def _bigru_max_kernel(maxlen_ref, xf_ref, xb_ref, len_ref,
                      wih_f_ref, wih_b_ref, whh_f_ref, whh_b_ref,
                      out_ref,
                      gxf_ref, gxb_ref, hf_ref, hb_ref, mf_ref, mb_ref):
    """One (batch tile, time chunk) step of the packed BiGRU + max-over-time.

    maxlen_ref : (1,)            int32 SMEM  global max(lengths) (scalar prefetch)
    xf_ref     : (Lc, TB, E)     bf16        forward-direction time chunk c
    xb_ref     : (Lc, TB, E)     bf16        backward-direction time chunk nc-1-c
    len_ref    : (TB, 1)         int32       per-sequence lengths
    wih_f/b    : (E, 3*Hp)       bf16        input projections, gates lane-aligned
    whh_f/b    : (Hp, 3*Hp)      bf16        recurrent projections
    out_ref    : (TB, 2*Hp)      f32         [max_t h_fwd | max_t h_bwd]
    gxf/gxb    : (Lc, TB, 3*Hp)  bf16 scratch   per-chunk hoisted projections
    hf/hb      : (TB, Hp)        f32 scratch    hidden state carried across chunks
    mf/mb      : (TB, Hp)        f32 scratch    running max carried across chunks
    """
    c = pl.program_id(1)
    nc = pl.num_programs(1)
    Lc, TB, E = xf_ref.shape
    Hp = whh_f_ref.shape[0]
    G = 3 * Hp
    unroll = True if Lc <= 16 else 4

    lens = len_ref[...]                      # (TB, 1) int32
    maxlen = maxlen_ref[0]                   # pad_packed pads only up to max(len)

    @pl.when(c == 0)
    def _init():                             # fresh state for each new batch tile
        hf_ref[...] = jnp.zeros_like(hf_ref)
        hb_ref[...] = jnp.zeros_like(hb_ref)
        mf_ref[...] = jnp.full_like(mf_ref, -jnp.inf)
        mb_ref[...] = jnp.full_like(mb_ref, -jnp.inf)

    whh_f = whh_f_ref[...]
    whh_b = whh_b_ref[...]

    def cell(gx_lo, h, whh):
        # PyTorch GRU cell, bias=False, gate order [r | z | n]; each gate block
        # sits at a lane-aligned offset k*Hp. bf16 matmul operands, f32
        # accumulation / gates / state (accuracy on the serial h-chain).
        gh = jnp.dot(h.astype(jnp.bfloat16), whh,
                     preferred_element_type=jnp.float32)                # (TB, 3Hp)
        gx = gx_lo.astype(jnp.float32)
        r = jax.nn.sigmoid(gx[:, 0 * Hp:1 * Hp] + gh[:, 0 * Hp:1 * Hp])
        z = jax.nn.sigmoid(gx[:, 1 * Hp:2 * Hp] + gh[:, 1 * Hp:2 * Hp])
        n = jnp.tanh(gx[:, 2 * Hp:3 * Hp] + r * gh[:, 2 * Hp:3 * Hp])
        return (1.0 - z) * n + z * h

    def run_chunk(t0, gx_ref, h_ref, m_ref, whh, reverse):
        def body(j, carry):
            h, m = carry
            jj = (Lc - 1 - j) if reverse else j
            t = t0 + jj
            h_new = cell(gx_ref[jj], h, whh)
            valid = t < lens                         # (TB, 1) per-sequence mask
            h = jnp.where(valid, h_new, h)           # packing: frozen past len_b
            # pad_packed: zeros for len_b <= t < maxlen, nonexistent for t >= maxlen
            pad = jnp.where(t < maxlen, 0.0, -jnp.inf)
            m = jnp.maximum(m, jnp.where(valid, h_new, pad))
            return h, m

        h, m = lax.fori_loop(0, Lc, body, (h_ref[...], m_ref[...]), unroll=unroll)
        h_ref[...] = h
        m_ref[...] = m

    t0_f = c * Lc                     # first timestep of the forward chunk
    t0_b = (nc - 1 - c) * Lc          # first timestep of the backward chunk

    # Forward direction over chunk c (skip chunks entirely past max(len)).
    @pl.when(t0_f < maxlen)
    def _fwd():
        xf = xf_ref[...].reshape(Lc * TB, E)
        gxf_ref[...] = (
            jnp.dot(xf, wih_f_ref[...], preferred_element_type=jnp.float32)
            .reshape(Lc, TB, G).astype(jnp.bfloat16))
        run_chunk(t0_f, gxf_ref, hf_ref, mf_ref, whh_f, reverse=False)

    # Backward direction over chunk nc-1-c (time traversed high -> low).
    @pl.when(t0_b < maxlen)
    def _bwd():
        xb = xb_ref[...].reshape(Lc * TB, E)
        gxb_ref[...] = (
            jnp.dot(xb, wih_b_ref[...], preferred_element_type=jnp.float32)
            .reshape(Lc, TB, G).astype(jnp.bfloat16))
        run_chunk(t0_b, gxb_ref, hb_ref, mb_ref, whh_b, reverse=True)

    @pl.when(c == nc - 1)
    def _finish():
        # Lane-aligned, unmasked stores (Hp is a multiple of 128); no concat copy.
        out_ref[:, 0 * Hp:1 * Hp] = mf_ref[...]
        out_ref[:, 1 * Hp:2 * Hp] = mb_ref[...]


def make_params(key, vocab_size, embed_size, hidden_dim):
    """PyTorch-equivalent GRU parameters (pre-transposed for x @ W)."""
    k_emb, k1, k2, k3, k4 = jax.random.split(key, 5)
    embed = jax.random.normal(k_emb, (vocab_size, embed_size), jnp.float32)
    embed = embed.at[0].set(0.0)             # padding_idx=0 -> zero row
    bound = 1.0 / float(hidden_dim) ** 0.5   # PyTorch GRU default init

    def u(k, shape):
        return jax.random.uniform(k, shape, jnp.float32, -bound, bound)

    # PyTorch stores (3H, E)/(3H, H); transpose for x @ W in the kernel.
    wih_f = u(k1, (3 * hidden_dim, embed_size)).T
    whh_f = u(k2, (3 * hidden_dim, hidden_dim)).T
    wih_b = u(k3, (3 * hidden_dim, embed_size)).T
    whh_b = u(k4, (3 * hidden_dim, hidden_dim)).T
    return dict(embed=embed, wih_f=wih_f, whh_f=whh_f,
                wih_b=wih_b, whh_b=whh_b)


def _pad_gate_cols(w, H, Hp):
    """(in_dim, 3H) -> (in_dim, 3Hp): gate k's block placed at column k*Hp."""
    out = jnp.zeros((w.shape[0], 3 * Hp), w.dtype)
    for k in range(3):
        out = out.at[:, k * Hp:k * Hp + H].set(w[:, k * H:(k + 1) * H])
    return out


def _prepare_kernel_weights(params, Hp):
    """Lane-aligned, bf16 kernel-layout weights (per-direction operands)."""
    H = params['whh_f'].shape[0]
    wih_f = _pad_gate_cols(params['wih_f'], H, Hp).astype(jnp.bfloat16)   # (E, 3Hp)
    wih_b = _pad_gate_cols(params['wih_b'], H, Hp).astype(jnp.bfloat16)

    def pad_hh(w):
        w = jnp.zeros((Hp, 3 * H), w.dtype).at[:H, :].set(w)
        return _pad_gate_cols(w, H, Hp).astype(jnp.bfloat16)              # (Hp, 3Hp)

    return wih_f, wih_b, pad_hh(params['whh_f']), pad_hh(params['whh_b'])


def gru_forward(text_ids, lengths, params, *, batch_tile=128, time_chunk=16):
    """text_ids: (B, L) int32 token ids, lengths: (B,) int32 -> (B, 2H) f32.

    batch_tile: 128 is a good default on v5e/v7x; 256 fills the v6e MXU rows.
    time_chunk: timesteps materialized per projected chunk; caps VMEM at
                O(time_chunk * TB * 3Hp) instead of O(L * TB * 6Hp).
    Note: every real sequence must have length >= 1 (PyTorch's
    pack_padded_sequence would error otherwise); zero-length *padding* rows
    added here are sliced away before returning.
    """
    B, L = text_ids.shape
    E = params['embed'].shape[1]
    H = params['whh_f'].shape[0]
    Hp = _round_up(H, 128)                   # lane-aligned hidden width

    # Embedding gather directly into the time-major (L, B, E) layout the kernel
    # wants (no extra HBM transpose round trip), bf16 for the MXU.
    x = jnp.take(params['embed'], text_ids.T, axis=0).astype(jnp.bfloat16)

    maxlen_arr = jnp.max(lengths).astype(jnp.int32).reshape(1)

    # Batch tiling: prefer >= 2 tiles so the "parallel" grid axis can shard
    # across both TensorCores on v7x. Padded rows get length 0 and are sliced
    # away afterwards.
    TB = min(batch_tile, _round_up(B, 8))
    if B > 8 and _round_up(B, TB) // TB < 2:
        TB = _round_up((B + 1) // 2, 8)
    Bp = _round_up(B, TB)

    # Time chunking: gx scratch / x blocks scale with Lc, not L.
    Lc = max(1, min(time_chunk, L))
    Lp = _round_up(L, Lc)
    nc = Lp // Lc

    if Lp != L:
        x = jnp.pad(x, ((0, Lp - L), (0, 0), (0, 0)))
    if Bp != B:
        x = jnp.pad(x, ((0, 0), (0, Bp - B), (0, 0)))
        lengths = jnp.pad(lengths, (0, Bp - B))
    lens2d = lengths.astype(jnp.int32).reshape(Bp, 1)

    wih_f, wih_b, whh_f, whh_b = _prepare_kernel_weights(params, Hp)

    grid_spec = pltpu.PrefetchScalarGridSpec(
        num_scalar_prefetch=1,
        grid=(Bp // TB, nc),                 # batch tiles (parallel) x time chunks
        in_specs=[
            pl.BlockSpec((Lc, TB, E), lambda i, c, m: (c, i, 0)),            # fwd chunk
            pl.BlockSpec((Lc, TB, E), lambda i, c, m: (nc - 1 - c, i, 0)),   # bwd chunk
            pl.BlockSpec((TB, 1), lambda i, c, m: (i, 0)),
            # Constant-index weight specs; pipeline_mode=pl.Buffered(1) would
            # drop their second buffer at production E/H if VMEM gets tight.
            pl.BlockSpec((E, 3 * Hp), lambda i, c, m: (0, 0)),
            pl.BlockSpec((E, 3 * Hp), lambda i, c, m: (0, 0)),
            pl.BlockSpec((Hp, 3 * Hp), lambda i, c, m: (0, 0)),
            pl.BlockSpec((Hp, 3 * Hp), lambda i, c, m: (0, 0)),
        ],
        out_specs=pl.BlockSpec((TB, 2 * Hp), lambda i, c, m: (i, 0)),
        scratch_shapes=[
            pltpu.VMEM((Lc, TB, 3 * Hp), jnp.bfloat16),   # hoisted fwd projections
            pltpu.VMEM((Lc, TB, 3 * Hp), jnp.bfloat16),   # hoisted bwd projections
            pltpu.VMEM((TB, Hp), jnp.float32),            # h_fwd (carried over chunks)
            pltpu.VMEM((TB, Hp), jnp.float32),            # h_bwd
            pltpu.VMEM((TB, Hp), jnp.float32),            # running max fwd
            pltpu.VMEM((TB, Hp), jnp.float32),            # running max bwd
        ],
    )

    # Explicit scoped-VMEM budget: x chunks (2 specs, double-buffered) + weights
    # (double-buffered) + gx scratch + state + output, with headroom.
    vmem_needed = (
        2 * 2 * Lc * TB * E * 2
        + 2 * (2 * E * 3 * Hp * 2 + 2 * Hp * 3 * Hp * 2)
        + 2 * Lc * TB * 3 * Hp * 2
        + 4 * TB * Hp * 4
        + 2 * TB * 2 * Hp * 4
        + 2 * TB * 4
    )
    vmem_limit = int(min(max(32 << 20, 2 * vmem_needed + (4 << 20)), 100 << 20))

    cost = pl.CostEstimate(
        flops=int(2 * 2 * L * B * E * 3 * H + 2 * 2 * L * B * H * 3 * H),
        transcendentals=int(2 * 3 * L * B * H),
        bytes_accessed=int(2 * Lp * Bp * E * 2 + 2 * (E + Hp) * 3 * Hp * 2
                           + Bp * 2 * Hp * 4 + Bp * 4),
    )

    out = pl.pallas_call(
        _bigru_max_kernel,
        out_shape=jax.ShapeDtypeStruct((Bp, 2 * Hp), jnp.float32),
        grid_spec=grid_spec,
        compiler_params=pltpu.CompilerParams(
            dimension_semantics=("parallel", "arbitrary"),  # batch tiles -> both TCs
            vmem_limit_bytes=vmem_limit,
        ),
        cost_estimate=cost,
    )(maxlen_arr, x, x, lens2d, wih_f, wih_b, whh_f, whh_b)

    # Drop batch padding and the lane padding inside each direction's block.
    return jnp.concatenate([out[:B, :H], out[:B, Hp:Hp + H]], axis=1)


def gru_reference(text_ids, lengths, params):
    """Pure-JAX f32 reference of packed BiGRU + max over time (validation only)."""
    emb = jnp.take(params['embed'], text_ids, axis=0).astype(jnp.float32)
    B, L = text_ids.shape
    H = params['whh_f'].shape[0]
    lens = lengths[:, None]

    def cell(x_t, h, wih, whh):
        gx = x_t @ wih
        gh = h @ whh
        r = jax.nn.sigmoid(gx[:, :H] + gh[:, :H])
        z = jax.nn.sigmoid(gx[:, H:2 * H] + gh[:, H:2 * H])
        n = jnp.tanh(gx[:, 2 * H:] + r * gh[:, 2 * H:])
        return (1.0 - z) * n + z * h

    outs = jnp.zeros((B, L, 2 * H), jnp.float32)
    h = jnp.zeros((B, H), jnp.float32)
    for t in range(L):
        h_new = cell(emb[:, t], h, params['wih_f'], params['whh_f'])
        valid = t < lens
        h = jnp.where(valid, h_new, h)
        outs = outs.at[:, t, :H].set(jnp.where(valid, h_new, 0.0))
    h = jnp.zeros((B, H), jnp.float32)
    for t in range(L - 1, -1, -1):
        h_new = cell(emb[:, t], h, params['wih_b'], params['whh_b'])
        valid = t < lens
        h = jnp.where(valid, h_new, h)
        outs = outs.at[:, t, H:].set(jnp.where(valid, h_new, 0.0))
    maxlen = int(jnp.max(lengths))
    return jnp.max(outs[:, :maxlen, :], axis=1)


if __name__ == "__main__":
    B, L = 16, 12
    vocab_size, embed_size, hidden_dim = 20, 32, 32

    key = jax.random.PRNGKey(0)
    k_param, k_ids = jax.random.split(key)
    params = make_params(k_param, vocab_size, embed_size, hidden_dim)

    # Token ids in [1, vocab); positions past each sequence's length are 0-padded.
    text_ids = jax.random.randint(k_ids, (B, L), 1, vocab_size, dtype=jnp.int32)
    lengths = jnp.array([10, 5, 3, 8, 2, 6, 7, 4, 1, 9, 10, 2, 5, 7, 3, 8],
                        dtype=jnp.int32)                      # max(len)=10 < L=12
    pad_mask = jnp.arange(L)[None, :] < lengths[:, None]
    text_ids = jnp.where(pad_mask, text_ids, 0)

    ref = gru_reference(text_ids, lengths, params)

    # 1) Single time-chunk path (Lc = L), 2 batch tiles.
    out1 = jax.block_until_ready(gru_forward(text_ids, lengths, params))
    # 2) Multi time-chunk path (Lc = 4 -> 3 chunks), exercising chunk carry/skip.
    out2 = jax.block_until_ready(
        gru_forward(text_ids, lengths, params, time_chunk=4))

    for out in (out1, out2):
        assert out.shape == (B, 2 * hidden_dim), out.shape
        assert bool(jnp.all(jnp.isfinite(out))), "non-finite output"
        err = float(jnp.max(jnp.abs(out - ref)))
        assert err < 5e-2, f"kernel/reference mismatch: max abs err {err}"
    print("KERNEL_OK")
</pallas_src>

<mosaic_0001>
module attributes {stable_mosaic.version = 11 : i64} {
  func.func @_bigru_max_kernel(%arg0: i32, %arg1: i32, %arg2: memref<1xi32, #tpu.memory_space<smem>>, %arg3: memref<12x8x32xbf16, #tpu.memory_space<vmem>>, %arg4: memref<12x8x32xbf16, #tpu.memory_space<vmem>>, %arg5: memref<8x1xi32, #tpu.memory_space<vmem>>, %arg6: memref<32x384xbf16, #tpu.memory_space<vmem>>, %arg7: memref<32x384xbf16, #tpu.memory_space<vmem>>, %arg8: memref<128x384xbf16, #tpu.memory_space<vmem>>, %arg9: memref<128x384xbf16, #tpu.memory_space<vmem>>, %arg10: memref<8x256xf32, #tpu.memory_space<vmem>>, %arg11: memref<12x8x384xbf16, #tpu.memory_space<vmem>>, %arg12: memref<12x8x384xbf16, #tpu.memory_space<vmem>>, %arg13: memref<8x128xf32, #tpu.memory_space<vmem>>, %arg14: memref<8x128xf32, #tpu.memory_space<vmem>>, %arg15: memref<8x128xf32, #tpu.memory_space<vmem>>, %arg16: memref<8x128xf32, #tpu.memory_space<vmem>>) attributes {dimension_semantics = [#tpu.dimension_semantics<parallel>, #tpu.dimension_semantics<arbitrary>], iteration_bounds = array<i64: 2, 1>, scalar_prefetch = 1 : i64, scratch_operands = 6 : i64, tpu.core_type = #tpu.core_type<tc>, window_params = [{transform_indices = @transform_0, window_bounds = array<i64: 12, 8, 32>}, {transform_indices = @transform_1, window_bounds = array<i64: 12, 8, 32>}, {transform_indices = @transform_2, window_bounds = array<i64: 8, 1>}, {pipeline_mode = #tpu.pipeline_mode<synchronous>, transform_indices = @transform_3, window_bounds = array<i64: 32, 384>}, {pipeline_mode = #tpu.pipeline_mode<synchronous>, transform_indices = @transform_4, window_bounds = array<i64: 32, 384>}, {pipeline_mode = #tpu.pipeline_mode<synchronous>, transform_indices = @transform_5, window_bounds = array<i64: 128, 384>}, {pipeline_mode = #tpu.pipeline_mode<synchronous>, transform_indices = @transform_6, window_bounds = array<i64: 128, 384>}, {transform_indices = @transform_7, window_bounds = array<i64: 8, 256>}]} {
    %c0 = arith.constant 0 : index
    %c0_0 = arith.constant 0 : index
    %0 = vector.load %arg5[%c0, %c0_0] : memref<8x1xi32, #tpu.memory_space<vmem>>, vector<8x1xi32>
    %c0_1 = arith.constant 0 : index
    %1 = memref.load %arg2[%c0_1] : memref<1xi32, #tpu.memory_space<smem>>
    %c0_i32 = arith.constant 0 : i32
    %2 = arith.cmpi eq, %arg1, %c0_i32 : i32
    %3 = arith.extui %2 : i1 to i32
    %c0_i32_2 = arith.constant 0 : i32
    %4 = arith.cmpi ne, %3, %c0_i32_2 : i32
    scf.if %4 {
      %cst = arith.constant 0.000000e+00 : f32
      %19 = vector.broadcast %cst : f32 to vector<8x128xf32>
      %c0_13 = arith.constant 0 : index
      %c0_14 = arith.constant 0 : index
      %20 = vector.load %arg13[%c0_13, %c0_14] : memref<8x128xf32, #tpu.memory_space<vmem>>, vector<8x128xf32>
      tpu.vector_store %arg13[%c0_13, %c0_14], %19 {strides = array<i32>} : memref<8x128xf32, #tpu.memory_space<vmem>>, vector<8x128xf32>,
      %cst_15 = arith.constant 0.000000e+00 : f32
      %21 = vector.broadcast %cst_15 : f32 to vector<8x128xf32>
      %c0_16 = arith.constant 0 : index
      %c0_17 = arith.constant 0 : index
      %22 = vector.load %arg14[%c0_16, %c0_17] : memref<8x128xf32, #tpu.memory_space<vmem>>, vector<8x128xf32>
      tpu.vector_store %arg14[%c0_16, %c0_17], %21 {strides = array<i32>} : memref<8x128xf32, #tpu.memory_space<vmem>>, vector<8x128xf32>,
      %cst_18 = arith.constant 0xFF800000 : f32
      %23 = vector.broadcast %cst_18 : f32 to vector<8x128xf32>
      %c0_19 = arith.constant 0 : index
      %c0_20 = arith.constant 0 : index
      %24 = vector.load %arg15[%c0_19, %c0_20] : memref<8x128xf32, #tpu.memory_space<vmem>>, vector<8x128xf32>
      tpu.vector_store %arg15[%c0_19, %c0_20], %23 {strides = array<i32>} : memref<8x128xf32, #tpu.memory_space<vmem>>, vector<8x128xf32>,
      %cst_21 = arith.constant 0xFF800000 : f32
      %25 = vector.broadcast %cst_21 : f32 to vector<8x128xf32>
      %c0_22 = arith.constant 0 : index
      %c0_23 = arith.constant 0 : index
      %26 = vector.load %arg16[%c0_22, %c0_23] : memref<8x128xf32, #tpu.memory_space<vmem>>, vector<8x128xf32>
      tpu.vector_store %arg16[%c0_22, %c0_23], %25 {strides = array<i32>} : memref<8x128xf32, #tpu.memory_space<vmem>>, vector<8x128xf32>,
    } else {
    }
    %c0_3 = arith.constant 0 : index
    %c0_4 = arith.constant 0 : index
    %5 = vector.load %arg8[%c0_3, %c0_4] : memref<128x384xbf16, #tpu.memory_space<vmem>>, vector<128x384xbf16>
    %c0_5 = arith.constant 0 : index
    %c0_6 = arith.constant 0 : index
    %6 = vector.load %arg9[%c0_5, %c0_6] : memref<128x384xbf16, #tpu.memory_space<vmem>>, vector<128x384xbf16>
    %c12_i32 = arith.constant 12 : i32
    %7 = arith.muli %arg1, %c12_i32 : i32
    %c0_i32_7 = arith.constant 0 : i32
    %8 = arith.subi %c0_i32_7, %arg1 : i32
    %c12_i32_8 = arith.constant 12 : i32
    %9 = arith.muli %8, %c12_i32_8 : i32
    %10 = arith.cmpi slt, %7, %1 : i32
    %11 = arith.extui %10 : i1 to i32
    %c0_i32_9 = arith.constant 0 : i32
    %12 = arith.cmpi ne, %11, %c0_i32_9 : i32
    scf.if %12 {
      %c0_13 = arith.constant 0 : index
      %c0_14 = arith.constant 0 : index
      %c0_15 = arith.constant 0 : index
      %19 = vector.load %arg3[%c0_13, %c0_14, %c0_15] : memref<12x8x32xbf16, #tpu.memory_space<vmem>>, vector<12x8x32xbf16>
      %20 = vector.shape_cast %19 : vector<12x8x32xbf16> to vector<96x32xbf16>
      %c0_16 = arith.constant 0 : index
      %c0_17 = arith.constant 0 : index
      %21 = vector.load %arg6[%c0_16, %c0_17] : memref<32x384xbf16, #tpu.memory_space<vmem>>, vector<32x384xbf16>
      %cst = arith.constant dense<0.000000e+00> : vector<96x384xf32>
      %22 = tpu.matmul %20, %21, %cst {dimension_numbers = #tpu.dot_dimension_numbers<[1], [0], [0], [1], [0, 0, 1, 1], [], []>} : vector<96x32xbf16>, vector<32x384xbf16>, vector<96x384xf32> -> vector<96x384xf32>
      %23 = vector.shape_cast %22 : vector<96x384xf32> to vector<12x8x384xf32>
      %24 = arith.truncf %23 : vector<12x8x384xf32> to vector<12x8x384xbf16>
      %c0_18 = arith.constant 0 : index
      %c0_19 = arith.constant 0 : index
      %c0_20 = arith.constant 0 : index
      %25 = vector.load %arg11[%c0_18, %c0_19, %c0_20] : memref<12x8x384xbf16, #tpu.memory_space<vmem>>, vector<12x8x384xbf16>
      tpu.vector_store %arg11[%c0_18, %c0_19, %c0_20], %24 {strides = array<i32>} : memref<12x8x384xbf16, #tpu.memory_space<vmem>>, vector<12x8x384xbf16>,
      %c0_21 = arith.constant 0 : index
      %c0_22 = arith.constant 0 : index
      %26 = vector.load %arg13[%c0_21, %c0_22] : memref<8x128xf32, #tpu.memory_space<vmem>>, vector<8x128xf32>
      %c0_23 = arith.constant 0 : index
      %c0_24 = arith.constant 0 : index
      %27 = vector.load %arg15[%c0_23, %c0_24] : memref<8x128xf32, #tpu.memory_space<vmem>>, vector<8x128xf32>
      %c0_i32_25 = arith.constant 0 : i32
      %28 = arith.addi %7, %c0_i32_25 : i32
      %29 = arith.index_cast %c0_i32_25 : i32 to index
      %c0_26 = arith.constant 0 : index
      %c0_27 = arith.constant 0 : index
      %30 = vector.load %arg11[%29, %c0_26, %c0_27] : memref<12x8x384xbf16, #tpu.memory_space<vmem>>, vector<1x8x384xbf16>
      %31 = vector.shape_cast %30 : vector<1x8x384xbf16> to vector<8x384xbf16>
      %32 = arith.truncf %26 : vector<8x128xf32> to vector<8x128xbf16>
      %cst_28 = arith.constant dense<0.000000e+00> : vector<8x384xf32>
      %33 = tpu.matmul %32, %5, %cst_28 {dimension_numbers = #tpu.dot_dimension_numbers<[1], [0], [0], [1], [0, 0, 1, 1], [], []>} : vector<8x128xbf16>, vector<128x384xbf16>, vector<8x384xf32> -> vector<8x384xf32>
      %34 = arith.extf %31 : vector<8x384xbf16> to vector<8x384xf32>
      %35 = vector.extract_strided_slice %34 {offsets = [0, 0], sizes = [8, 128], strides = [1, 1]} : vector<8x384xf32> to vector<8x128xf32>
      %36 = vector.extract_strided_slice %33 {offsets = [0, 0], sizes = [8, 128], strides = [1, 1]} : vector<8x384xf32> to vector<8x128xf32>
      %37 = arith.addf %35, %36 : vector<8x128xf32>
      %38 = arith.negf %37 : vector<8x128xf32>
      %39 = math.exp %38 : vector<8x128xf32>
      %cst_29 = arith.constant 1.000000e+00 : f32
      %40 = vector.broadcast %cst_29 : f32 to vector<8x128xf32>
      %41 = arith.addf %40, %39 : vector<8x128xf32>
      %42 = arith.divf %40, %41 : vector<8x128xf32>
      %43 = vector.extract_strided_slice %34 {offsets = [0, 128], sizes = [8, 128], strides = [1, 1]} : vector<8x384xf32> to vector<8x128xf32>
      %44 = vector.extract_strided_slice %33 {offsets = [0, 128], sizes = [8, 128], strides = [1, 1]} : vector<8x384xf32> to vector<8x128xf32>
      %45 = arith.addf %43, %44 : vector<8x128xf32>
      %46 = arith.negf %45 : vector<8x128xf32>
      %47 = math.exp %46 : vector<8x128xf32>
      %cst_30 = arith.constant 1.000000e+00 : f32
      %48 = vector.broadcast %cst_30 : f32 to vector<8x128xf32>
      %49 = arith.addf %48, %47 : vector<8x128xf32>
      %50 = arith.divf %48, %49 : vector<8x128xf32>
      %51 = vector.extract_strided_slice %34 {offsets = [0, 256], sizes = [8, 128], strides = [1, 1]} : vector<8x384xf32> to vector<8x128xf32>
      %52 = vector.extract_strided_slice %33 {offsets = [0, 256], sizes = [8, 128], strides = [1, 1]} : vector<8x384xf32> to vector<8x128xf32>
      %53 = arith.mulf %42, %52 : vector<8x128xf32>
      %54 = arith.addf %51, %53 : vector<8x128xf32>
      %55 = math.tanh %54 : vector<8x128xf32>
      %cst_31 = arith.constant 1.000000e+00 : f32
      %56 = vector.broadcast %cst_31 : f32 to vector<8x128xf32>
      %57 = arith.subf %56, %50 : vector<8x128xf32>
      %58 = arith.mulf %57, %55 : vector<8x128xf32>
      %59 = arith.mulf %50, %26 : vector<8x128xf32>
      %60 = arith.addf %58, %59 : vector<8x128xf32>
      %61 = vector.broadcast %28 : i32 to vector<8x1xi32>
      %62 = arith.cmpi slt, %61, %0 : vector<8x1xi32>
      %63 = vector.shape_cast %62 : vector<8x1xi1> to vector<8x1xi1>
      %64 = vector.broadcast %63 : vector<8x1xi1> to vector<8x128xi1>
      %65 = arith.select %64, %60, %26 : vector<8x128xi1>, vector<8x128xf32>
      %66 = arith.cmpi slt, %28, %1 : i32
      %cst_32 = arith.constant 0.000000e+00 : f32
      %cst_33 = arith.constant 0xFF800000 : f32
      %67 = arith.select %66, %cst_32, %cst_33 : f32
      %68 = vector.shape_cast %62 : vector<8x1xi1> to vector<8x1xi1>
      %69 = vector.broadcast %68 : vector<8x1xi1> to vector<8x128xi1>
      %70 = vector.broadcast %67 : f32 to vector<8x128xf32>
      %71 = arith.select %69, %60, %70 : vector<8x128xi1>, vector<8x128xf32>
      %72 = arith.maximumf %27, %71 : vector<8x128xf32>
      %c1_i32 = arith.constant 1 : i32
      %73 = arith.addi %7, %c1_i32 : i32
      %74 = arith.index_cast %c1_i32 : i32 to index
      %c0_34 = arith.constant 0 : index
      %c0_35 = arith.constant 0 : index
      %75 = vector.load %arg11[%74, %c0_34, %c0_35] : memref<12x8x384xbf16, #tpu.memory_space<vmem>>, vector<1x8x384xbf16>
      %76 = vector.shape_cast %75 : vector<1x8x384xbf16> to vector<8x384xbf16>
      %77 = arith.truncf %65 : vector<8x128xf32> to vector<8x128xbf16>
      %cst_36 = arith.constant dense<0.000000e+00> : vector<8x384xf32>
      %78 = tpu.matmul %77, %5, %cst_36 {dimension_numbers = #tpu.dot_dimension_numbers<[1], [0], [0], [1], [0, 0, 1, 1], [], []>} : vector<8x128xbf16>, vector<128x384xbf16>, vector<8x384xf32> -> vector<8x384xf32>
      %79 = arith.extf %76 : vector<8x384xbf16> to vector<8x384xf32>
      %80 = vector.extract_strided_slice %79 {offsets = [0, 0], sizes = [8, 128], strides = [1, 1]} : vector<8x384xf32> to vector<8x128xf32>
      %81 = vector.extract_strided_slice %78 {offsets = [0, 0], sizes = [8, 128], strides = [1, 1]} : vector<8x384xf32> to vector<8x128xf32>
      %82 = arith.addf %80, %81 : vector<8x128xf32>
      %83 = arith.negf %82 : vector<8x128xf32>
      %84 = math.exp %83 : vector<8x128xf32>
      %cst_37 = arith.constant 1.000000e+00 : f32
      %85 = vector.broadcast %cst_37 : f32 to vector<8x128xf32>
      %86 = arith.addf %85, %84 : vector<8x128xf32>
      %87 = arith.divf %85, %86 : vector<8x128xf32>
      %88 = vector.extract_strided_slice %79 {offsets = [0, 128], sizes = [8, 128], strides = [1, 1]} : vector<8x384xf32> to vector<8x128xf32>
      %89 = vector.extract_strided_slice %78 {offsets = [0, 128], sizes = [8, 128], strides = [1, 1]} : vector<8x384xf32> to vector<8x128xf32>
      %90 = arith.addf %88, %89 : vector<8x128xf32>
      %91 = arith.negf %90 : vector<8x128xf32>
      %92 = math.exp %91 : vector<8x128xf32>
      %cst_38 = arith.constant 1.000000e+00 : f32
      %93 = vector.broadcast %cst_38 : f32 to vector<8x128xf32>
      %94 = arith.addf %93, %92 : vector<8x128xf32>
      %95 = arith.divf %93, %94 : vector<8x128xf32>
      %96 = vector.extract_strided_slice %79 {offsets = [0, 256], sizes = [8, 128], strides = [1, 1]} : vector<8x384xf32> to vector<8x128xf32>
      %97 = vector.extract_strided_slice %78 {offsets = [0, 256], sizes = [8, 128], strides = [1, 1]} : vector<8x384xf32> to vector<8x128xf32>
      %98 = arith.mulf %87, %97 : vector<8x128xf32>
      %99 = arith.addf %96, %98 : vector<8x128xf32>
      %100 = math.tanh %99 : vector<8x128xf32>
      %cst_39 = arith.constant 1.000000e+00 : f32
      %101 = vector.broadcast %cst_39 : f32 to vector<8x128xf32>
      %102 = arith.subf %101, %95 : vector<8x128xf32>
      %103 = arith.mulf %102, %100 : vector<8x128xf32>
      %104 = arith.mulf %95, %65 : vector<8x128xf32>
      %105 = arith.addf %103, %104 : vector<8x128xf32>
      %106 = vector.broadcast %73 : i32 to vector<8x1xi32>
      %107 = arith.cmpi slt, %106, %0 : vector<8x1xi32>
      %108 = vector.shape_cast %107 : vector<8x1xi1> to vector<8x1xi1>
      %109 = vector.broadcast %108 : vector<8x1xi1> to vector<8x128xi1>
      %110 = arith.select %109, %105, %65 : vector<8x128xi1>, vector<8x128xf32>
      %111 = arith.cmpi slt, %73, %1 : i32
      %cst_40 = arith.constant 0.000000e+00 : f32
      %cst_41 = arith.constant 0xFF800000 : f32
      %112 = arith.select %111, %cst_40, %cst_41 : f32
      %113 = vector.shape_cast %107 : vector<8x1xi1> to vector<8x1xi1>
      %114 = vector.broadcast %113 : vector<8x1xi1> to vector<8x128xi1>
      %115 = vector.broadcast %112 : f32 to vector<8x128xf32>
      %116 = arith.select %114, %105, %115 : vector<8x128xi1>, vector<8x128xf32>
      %117 = arith.maximumf %72, %116 : vector<8x128xf32>
      %c2_i32 = arith.constant 2 : i32
      %118 = arith.addi %7, %c2_i32 : i32
      %119 = arith.index_cast %c2_i32 : i32 to index
      %c0_42 = arith.constant 0 : index
      %c0_43 = arith.constant 0 : index
      %120 = vector.load %arg11[%119, %c0_42, %c0_43] : memref<12x8x384xbf16, #tpu.memory_space<vmem>>, vector<1x8x384xbf16>
      %121 = vector.shape_cast %120 : vector<1x8x384xbf16> to vector<8x384xbf16>
      %122 = arith.truncf %110 : vector<8x128xf32> to vector<8x128xbf16>
      %cst_44 = arith.constant dense<0.000000e+00> : vector<8x384xf32>
      %123 = tpu.matmul %122, %5, %cst_44 {dimension_numbers = #tpu.dot_dimension_numbers<[1], [0], [0], [1], [0, 0, 1, 1], [], []>} : vector<8x128xbf16>, vector<128x384xbf16>, vector<8x384xf32> -> vector<8x384xf32>
      %124 = arith.extf %121 : vector<8x384xbf16> to vector<8x384xf32>
      %125 = vector.extract_strided_slice %124 {offsets = [0, 0], sizes = [8, 128], strides = [1, 1]} : vector<8x384xf32> to vector<8x128xf32>
      %126 = vector.extract_strided_slice %123 {offsets = [0, 0], sizes = [8, 128], strides = [1, 1]} : vector<8x384xf32> to vector<8x128xf32>
      %127 = arith.addf %125, %126 : vector<8x128xf32>
      %128 = arith.negf %127 : vector<8x128xf32>
      %129 = math.exp %128 : vector<8x128xf32>
      %cst_45 = arith.constant 1.000000e+00 : f32
      %130 = vector.broadcast %cst_45 : f32 to vector<8x128xf32>
      %131 = arith.addf %130, %129 : vector<8x128xf32>
      %132 = arith.divf %130, %131 : vector<8x128xf32>
      %133 = vector.extract_strided_slice %124 {offsets = [0, 128], sizes = [8, 128], strides = [1, 1]} : vector<8x384xf32> to vector<8x128xf32>
      %134 = vector.extract_strided_slice %123 {offsets = [0, 128], sizes = [8, 128], strides = [1, 1]} : vector<8x384xf32> to vector<8x128xf32>
      %135 = arith.addf %133, %134 : vector<8x128xf32>
      %136 = arith.negf %135 : vector<8x128xf32>
      %137 = math.exp %136 : vector<8x128xf32>
      %cst_46 = arith.constant 1.000000e+00 : f32
      %138 = vector.broadcast %cst_46 : f32 to vector<8x128xf32>
      %139 = arith.addf %138, %137 : vector<8x128xf32>
      %140 = arith.divf %138, %139 : vector<8x128xf32>
      %141 = vector.extract_strided_slice %124 {offsets = [0, 256], sizes = [8, 128], strides = [1, 1]} : vector<8x384xf32> to vector<8x128xf32>
      %142 = vector.extract_strided_slice %123 {offsets = [0, 256], sizes = [8, 128], strides = [1, 1]} : vector<8x384xf32> to vector<8x128xf32>
      %143 = arith.mulf %132, %142 : vector<8x128xf32>
      %144 = arith.addf %141, %143 : vector<8x128xf32>
      %145 = math.tanh %144 : vector<8x128xf32>
      %cst_47 = arith.constant 1.000000e+00 : f32
      %146 = vector.broadcast %cst_47 : f32 to vector<8x128xf32>
      %147 = arith.subf %146, %140 : vector<8x128xf32>
      %148 = arith.mulf %147, %145 : vector<8x128xf32>
      %149 = arith.mulf %140, %110 : vector<8x128xf32>
      %150 = arith.addf %148, %149 : vector<8x128xf32>
      %151 = vector.broadcast %118 : i32 to vector<8x1xi32>
      %152 = arith.cmpi slt, %151, %0 : vector<8x1xi32>
      %153 = vector.shape_cast %152 : vector<8x1xi1> to vector<8x1xi1>
      %154 = vector.broadcast %153 : vector<8x1xi1> to vector<8x128xi1>
      %155 = arith.select %154, %150, %110 : vector<8x128xi1>, vector<8x128xf32>
      %156 = arith.cmpi slt, %118, %1 : i32
      %cst_48 = arith.constant 0.000000e+00 : f32
      %cst_49 = arith.constant 0xFF800000 : f32
      %157 = arith.select %156, %cst_48, %cst_49 : f32
      %158 = vector.shape_cast %152 : vector<8x1xi1> to vector<8x1xi1>
      %159 = vector.broadcast %158 : vector<8x1xi1> to vector<8x128xi1>
      %160 = vector.broadcast %157 : f32 to vector<8x128xf32>
      %161 = arith.select %159, %150, %160 : vector<8x128xi1>, vector<8x128xf32>
      %162 = arith.maximumf %117, %161 : vector<8x128xf32>
      %c3_i32 = arith.constant 3 : i32
      %163 = arith.addi %7, %c3_i32 : i32
      %164 = arith.index_cast %c3_i32 : i32 to index
      %c0_50 = arith.constant 0 : index
      %c0_51 = arith.constant 0 : index
      %165 = vector.load %arg11[%164, %c0_50, %c0_51] : memref<12x8x384xbf16, #tpu.memory_space<vmem>>, vector<1x8x384xbf16>
      %166 = vector.shape_cast %165 : vector<1x8x384xbf16> to vector<8x384xbf16>
      %167 = arith.truncf %155 : vector<8x128xf32> to vector<8x128xbf16>
      %cst_52 = arith.constant dense<0.000000e+00> : vector<8x384xf32>
      %168 = tpu.matmul %167, %5, %cst_52 {dimension_numbers = #tpu.dot_dimension_numbers<[1], [0], [0], [1], [0, 0, 1, 1], [], []>} : vector<8x128xbf16>, vector<128x384xbf16>, vector<8x384xf32> -> vector<8x384xf32>
      %169 = arith.extf %166 : vector<8x384xbf16> to vector<8x384xf32>
      %170 = vector.extract_strided_slice %169 {offsets = [0, 0], sizes = [8, 128], strides = [1, 1]} : vector<8x384xf32> to vector<8x128xf32>
      %171 = vector.extract_strided_slice %168 {offsets = [0, 0], sizes = [8, 128], strides = [1, 1]} : vector<8x384xf32> to vector<8x128xf32>
      %172 = arith.addf %170, %171 : vector<8x128xf32>
      %173 = arith.negf %172 : vector<8x128xf32>
      %174 = math.exp %173 : vector<8x128xf32>
      %cst_53 = arith.constant 1.000000e+00 : f32
      %175 = vector.broadcast %cst_53 : f32 to vector<8x128xf32>
      %176 = arith.addf %175, %174 : vector<8x128xf32>
      %177 = arith.divf %175, %176 : vector<8x128xf32>
      %178 = vector.extract_strided_slice %169 {offsets = [0, 128], sizes = [8, 128], strides = [1, 1]} : vector<8x384xf32> to vector<8x128xf32>
      %179 = vector.extract_strided_slice %168 {offsets = [0, 128], sizes = [8, 128], strides = [1, 1]} : vector<8x384xf32> to vector<8x128xf32>
      %180 = arith.addf %178, %179 : vector<8x128xf32>
      %181 = arith.negf %180 : vector<8x128xf32>
      %182 = math.exp %181 : vector<8x128xf32>
      %cst_54 = arith.constant 1.000000e+00 : f32
      %183 = vector.broadcast %cst_54 : f32 to vector<8x128xf32>
      %184 = arith.addf %183, %182 : vector<8x128xf32>
      %185 = arith.divf %183, %184 : vector<8x128xf32>
      %186 = vector.extract_strided_slice %169 {offsets = [0, 256], sizes = [8, 128], strides = [1, 1]} : vector<8x384xf32> to vector<8x128xf32>
      %187 = vector.extract_strided_slice %168 {offsets = [0, 256], sizes = [8, 128], strides = [1, 1]} : vector<8x384xf32> to vector<8x128xf32>
      %188 = arith.mulf %177, %187 : vector<8x128xf32>
      %189 = arith.addf %186, %188 : vector<8x128xf32>
      %190 = math.tanh %189 : vector<8x128xf32>
      %cst_55 = arith.constant 1.000000e+00 : f32
      %191 = vector.broadcast %cst_55 : f32 to vector<8x128xf32>
      %192 = arith.subf %191, %185 : vector<8x128xf32>
      %193 = arith.mulf %192, %190 : vector<8x128xf32>
      %194 = arith.mulf %185, %155 : vector<8x128xf32>
      %195 = arith.addf %193, %194 : vector<8x128xf32>
      %196 = vector.broadcast %163 : i32 to vector<8x1xi32>
      %197 = arith.cmpi slt, %196, %0 : vector<8x1xi32>
      %198 = vector.shape_cast %197 : vector<8x1xi1> to vector<8x1xi1>
      %199 = vector.broadcast %198 : vector<8x1xi1> to vector<8x128xi1>
      %200 = arith.select %199, %195, %155 : vector<8x128xi1>, vector<8x128xf32>
      %201 = arith.cmpi slt, %163, %1 : i32
      %cst_56 = arith.constant 0.000000e+00 : f32
      %cst_57 = arith.constant 0xFF800000 : f32
      %202 = arith.select %201, %cst_56, %cst_57 : f32
      %203 = vector.shape_cast %197 : vector<8x1xi1> to vector<8x1xi1>
      %204 = vector.broadcast %203 : vector<8x1xi1> to vector<8x128xi1>
      %205 = vector.broadcast %202 : f32 to vector<8x128xf32>
      %206 = arith.select %204, %195, %205 : vector<8x128xi1>, vector<8x128xf32>
      %207 = arith.maximumf %162, %206 : vector<8x128xf32>
      %c4_i32 = arith.constant 4 : i32
      %208 = arith.addi %7, %c4_i32 : i32
      %209 = arith.index_cast %c4_i32 : i32 to index
      %c0_58 = arith.constant 0 : index
      %c0_59 = arith.constant 0 : index
      %210 = vector.load %arg11[%209, %c0_58, %c0_59] : memref<12x8x384xbf16, #tpu.memory_space<vmem>>, vector<1x8x384xbf16>
      %211 = vector.shape_cast %210 : vector<1x8x384xbf16> to vector<8x384xbf16>
      %212 = arith.truncf %200 : vector<8x128xf32> to vector<8x128xbf16>
      %cst_60 = arith.constant dense<0.000000e+00> : vector<8x384xf32>
      %213 = tpu.matmul %212, %5, %cst_60 {dimension_numbers = #tpu.dot_dimension_numbers<[1], [0], [0], [1], [0, 0, 1, 1], [], []>} : vector<8x128xbf16>, vector<128x384xbf16>, vector<8x384xf32> -> vector<8x384xf32>
      %214 = arith.extf %211 : vector<8x384xbf16> to vector<8x384xf32>
      %215 = vector.extract_strided_slice %214 {offsets = [0, 0], sizes = [8, 128], strides = [1, 1]} : vector<8x384xf32> to vector<8x128xf32>
      %216 = vector.extract_strided_slice %213 {offsets = [0, 0], sizes = [8, 128], strides = [1, 1]} : vector<8x384xf32> to vector<8x128xf32>
      %217 = arith.addf %215, %216 : vector<8x128xf32>
      %218 = arith.negf %217 : vector<8x128xf32>
      %219 = math.exp %218 : vector<8x128xf32>
      %cst_61 = arith.constant 1.000000e+00 : f32
      %220 = vector.broadcast %cst_61 : f32 to vector<8x128xf32>
      %221 = arith.addf %220, %219 : vector<8x128xf32>
      %222 = arith.divf %220, %221 : vector<8x128xf32>
      %223 = vector.extract_strided_slice %214 {offsets = [0, 128], sizes = [8, 128], strides = [1, 1]} : vector<8x384xf32> to vector<8x128xf32>
      %224 = vector.extract_strided_slice %213 {offsets = [0, 128], sizes = [8, 128], strides = [1, 1]} : vector<8x384xf32> to vector<8x128xf32>
      %225 = arith.addf %223, %224 : vector<8x128xf32>
      %226 = arith.negf %225 : vector<8x128xf32>
      %227 = math.exp %226 : vector<8x128xf32>
      %cst_62 = arith.constant 1.000000e+00 : f32
      %228 = vector.broadcast %cst_62 : f32 to vector<8x128xf32>
      %229 = arith.addf %228, %227 : vector<8x128xf32>
      %230 = arith.divf %228, %229 : vector<8x128xf32>
      %231 = vector.extract_strided_slice %214 {offsets = [0, 256], sizes = [8, 128], strides = [1, 1]} : vector<8x384xf32> to vector<8x128xf32>
      %232 = vector.extract_strided_slice %213 {offsets = [0, 256], sizes = [8, 128], strides = [1, 1]} : vector<8x384xf32> to vector<8x128xf32>
      %233 = arith.mulf %222, %232 : vector<8x128xf32>
      %234 = arith.addf %231, %233 : vector<8x128xf32>
      %235 = math.tanh %234 : vector<8x128xf32>
      %cst_63 = arith.constant 1.000000e+00 : f32
      %236 = vector.broadcast %cst_63 : f32 to vector<8x128xf32>
      %237 = arith.subf %236, %230 : vector<8x128xf32>
      %238 = arith.mulf %237, %235 : vector<8x128xf32>
      %239 = arith.mulf %230, %200 : vector<8x128xf32>
      %240 = arith.addf %238, %239 : vector<8x128xf32>
      %241 = vector.broadcast %208 : i32 to vector<8x1xi32>
      %242 = arith.cmpi slt, %241, %0 : vector<8x1xi32>
      %243 = vector.shape_cast %242 : vector<8x1xi1> to vector<8x1xi1>
      %244 = vector.broadcast %243 : vector<8x1xi1> to vector<8x128xi1>
      %245 = arith.select %244, %240, %200 : vector<8x128xi1>, vector<8x128xf32>
      %246 = arith.cmpi slt, %208, %1 : i32
      %cst_64 = arith.constant 0.000000e+00 : f32
      %cst_65 = arith.constant 0xFF800000 : f32
      %247 = arith.select %246, %cst_64, %cst_65 : f32
      %248 = vector.shape_cast %242 : vector<8x1xi1> to vector<8x1xi1>
      %249 = vector.broadcast %248 : vector<8x1xi1> to vector<8x128xi1>
      %250 = vector.broadcast %247 : f32 to vector<8x128xf32>
      %251 = arith.select %249, %240, %250 : vector<8x128xi1>, vector<8x128xf32>
      %252 = arith.maximumf %207, %251 : vector<8x128xf32>
      %c5_i32 = arith.constant 5 : i32
      %253 = arith.addi %7, %c5_i32 : i32
      %254 = arith.index_cast %c5_i32 : i32 to index
      %c0_66 = arith.constant 0 : index
      %c0_67 = arith.constant 0 : index
      %255 = vector.load %arg11[%254, %c0_66, %c0_67] : memref<12x8x384xbf16, #tpu.memory_space<vmem>>, vector<1x8x384xbf16>
      %256 = vector.shape_cast %255 : vector<1x8x384xbf16> to vector<8x384xbf16>
      %257 = arith.truncf %245 : vector<8x128xf32> to vector<8x128xbf16>
      %cst_68 = arith.constant dense<0.000000e+00> : vector<8x384xf32>
      %258 = tpu.matmul %257, %5, %cst_68 {dimension_numbers = #tpu.dot_dimension_numbers<[1], [0], [0], [1], [0, 0, 1, 1], [], []>} : vector<8x128xbf16>, vector<128x384xbf16>, vector<8x384xf32> -> vector<8x384xf32>
      %259 = arith.extf %256 : vector<8x384xbf16> to vector<8x384xf32>
      %260 = vector.extract_strided_slice %259 {offsets = [0, 0], sizes = [8, 128], strides = [1, 1]} : vector<8x384xf32> to vector<8x128xf32>
      %261 = vector.extract_strided_slice %258 {offsets = [0, 0], sizes = [8, 128], strides = [1, 1]} : vector<8x384xf32> to vector<8x128xf32>
      %262 = arith.addf %260, %261 : vector<8x128xf32>
      %263 = arith.negf %262 : vector<8x128xf32>
      %264 = math.exp %263 : vector<8x128xf32>
      %cst_69 = arith.constant 1.000000e+00 : f32
      %265 = vector.broadcast %cst_69 : f32 to vector<8x128xf32>
      %266 = arith.addf %265, %264 : vector<8x128xf32>
      %267 = arith.divf %265, %266 : vector<8x128xf32>
      %268 = vector.extract_strided_slice %259 {offsets = [0, 128], sizes = [8, 128], strides = [1, 1]} : vector<8x384xf32> to vector<8x128xf32>
      %269 = vector.extract_strided_slice %258 {offsets = [0, 128], sizes = [8, 128], strides = [1, 1]} : vector<8x384xf32> to vector<8x128xf32>
      %270 = arith.addf %268, %269 : vector<8x128xf32>
      %271 = arith.negf %270 : vector<8x128xf32>
      %272 = math.exp %271 : vector<8x128xf32>
      %cst_70 = arith.constant 1.000000e+00 : f32
      %273 = vector.broadcast %cst_70 : f32 to vector<8x128xf32>
      %274 = arith.addf %273, %272 : vector<8x128xf32>
      %275 = arith.divf %273, %274 : vector<8x128xf32>
      %276 = vector.extract_strided_slice %259 {offsets = [0, 256], sizes = [8, 128], strides = [1, 1]} : vector<8x384xf32> to vector<8x128xf32>
      %277 = vector.extract_strided_slice %258 {offsets = [0, 256], sizes = [8, 128], strides = [1, 1]} : vector<8x384xf32> to vector<8x128xf32>
      %278 = arith.mulf %267, %277 : vector<8x128xf32>
      %279 = arith.addf %276, %278 : vector<8x128xf32>
      %280 = math.tanh %279 : vector<8x128xf32>
      %cst_71 = arith.constant 1.000000e+00 : f32
      %281 = vector.broadcast %cst_71 : f32 to vector<8x128xf32>
      %282 = arith.subf %281, %275 : vector<8x128xf32>
      %283 = arith.mulf %282, %280 : vector<8x128xf32>
      %284 = arith.mulf %275, %245 : vector<8x128xf32>
      %285 = arith.addf %283, %284 : vector<8x128xf32>
      %286 = vector.broadcast %253 : i32 to vector<8x1xi32>
      %287 = arith.cmpi slt, %286, %0 : vector<8x1xi32>
      %288 = vector.shape_cast %287 : vector<8x1xi1> to vector<8x1xi1>
      %289 = vector.broadcast %288 : vector<8x1xi1> to vector<8x128xi1>
      %290 = arith.select %289, %285, %245 : vector<8x128xi1>, vector<8x128xf32>
      %291 = arith.cmpi slt, %253, %1 : i32
      %cst_72 = arith.constant 0.000000e+00 : f32
      %cst_73 = arith.constant 0xFF800000 : f32
      %292 = arith.select %291, %cst_72, %cst_73 : f32
      %293 = vector.shape_cast %287 : vector<8x1xi1> to vector<8x1xi1>
      %294 = vector.broadcast %293 : vector<8x1xi1> to vector<8x128xi1>
      %295 = vector.broadcast %292 : f32 to vector<8x128xf32>
      %296 = arith.select %294, %285, %295 : vector<8x128xi1>, vector<8x128xf32>
      %297 = arith.maximumf %252, %296 : vector<8x128xf32>
      %c6_i32 = arith.constant 6 : i32
      %298 = arith.addi %7, %c6_i32 : i32
      %299 = arith.index_cast %c6_i32 : i32 to index
      %c0_74 = arith.constant 0 : index
      %c0_75 = arith.constant 0 : index
      %300 = vector.load %arg11[%299, %c0_74, %c0_75] : memref<12x8x384xbf16, #tpu.memory_space<vmem>>, vector<1x8x384xbf16>
      %301 = vector.shape_cast %300 : vector<1x8x384xbf16> to vector<8x384xbf16>
      %302 = arith.truncf %290 : vector<8x128xf32> to vector<8x128xbf16>
      %cst_76 = arith.constant dense<0.000000e+00> : vector<8x384xf32>
      %303 = tpu.matmul %302, %5, %cst_76 {dimension_numbers = #tpu.dot_dimension_numbers<[1], [0], [0], [1], [0, 0, 1, 1], [], []>} : vector<8x128xbf16>, vector<128x384xbf16>, vector<8x384xf32> -> vector<8x384xf32>
      %304 = arith.extf %301 : vector<8x384xbf16> to vector<8x384xf32>
      %305 = vector.extract_strided_slice %304 {offsets = [0, 0], sizes = [8, 128], strides = [1, 1]} : vector<8x384xf32> to vector<8x128xf32>
      %306 = vector.extract_strided_slice %303 {offsets = [0, 0], sizes = [8, 128], strides = [1, 1]} : vector<8x384xf32> to vector<8x128xf32>
      %307 = arith.addf %305, %306 : vector<8x128xf32>
      %308 = arith.negf %307 : vector<8x128xf32>
      %309 = math.exp %308 : vector<8x128xf32>
      %cst_77 = arith.constant 1.000000e+00 : f32
      %310 = vector.broadcast %cst_77 : f32 to vector<8x128xf32>
      %311 = arith.addf %310, %309 : vector<8x128xf32>
      %312 = arith.divf %310, %311 : vector<8x128xf32>
      %313 = vector.extract_strided_slice %304 {offsets = [0, 128], sizes = [8, 128], strides = [1, 1]} : vector<8x384xf32> to vector<8x128xf32>
      %314 = vector.extract_strided_slice %303 {offsets = [0, 128], sizes = [8, 128], strides = [1, 1]} : vector<8x384xf32> to vector<8x128xf32>
      %315 = arith.addf %313, %314 : vector<8x128xf32>
      %316 = arith.negf %315 : vector<8x128xf32>
      %317 = math.exp %316 : vector<8x128xf32>
      %cst_78 = arith.constant 1.000000e+00 : f32
      %318 = vector.broadcast %cst_78 : f32 to vector<8x128xf32>
      %319 = arith.addf %318, %317 : vector<8x128xf32>
      %320 = arith.divf %318, %319 : vector<8x128xf32>
      %321 = vector.extract_strided_slice %304 {offsets = [0, 256], sizes = [8, 128], strides = [1, 1]} : vector<8x384xf32> to vector<8x128xf32>
      %322 = vector.extract_strided_slice %303 {offsets = [0, 256], sizes = [8, 128], strides = [1, 1]} : vector<8x384xf32> to vector<8x128xf32>
      %323 = arith.mulf %312, %322 : vector<8x128xf32>
      %324 = arith.addf %321, %323 : vector<8x128xf32>
      %325 = math.tanh %324 : vector<8x128xf32>
      %cst_79 = arith.constant 1.000000e+00 : f32
      %326 = vector.broadcast %cst_79 : f32 to vector<8x128xf32>
      %327 = arith.subf %326, %320 : vector<8x128xf32>
      %328 = arith.mulf %327, %325 : vector<8x128xf32>
      %329 = arith.mulf %320, %290 : vector<8x128xf32>
      %330 = arith.addf %328, %329 : vector<8x128xf32>
      %331 = vector.broadcast %298 : i32 to vector<8x1xi32>
      %332 = arith.cmpi slt, %331, %0 : vector<8x1xi32>
      %333 = vector.shape_cast %332 : vector<8x1xi1> to vector<8x1xi1>
      %334 = vector.broadcast %333 : vector<8x1xi1> to vector<8x128xi1>
      %335 = arith.select %334, %330, %290 : vector<8x128xi1>, vector<8x128xf32>
      %336 = arith.cmpi slt, %298, %1 : i32
      %cst_80 = arith.constant 0.000000e+00 : f32
      %cst_81 = arith.constant 0xFF800000 : f32
      %337 = arith.select %336, %cst_80, %cst_81 : f32
      %338 = vector.shape_cast %332 : vector<8x1xi1> to vector<8x1xi1>
      %339 = vector.broadcast %338 : vector<8x1xi1> to vector<8x128xi1>
      %340 = vector.broadcast %337 : f32 to vector<8x128xf32>
      %341 = arith.select %339, %330, %340 : vector<8x128xi1>, vector<8x128xf32>
      %342 = arith.maximumf %297, %341 : vector<8x128xf32>
      %c7_i32 = arith.constant 7 : i32
      %343 = arith.addi %7, %c7_i32 : i32
      %344 = arith.index_cast %c7_i32 : i32 to index
      %c0_82 = arith.constant 0 : index
      %c0_83 = arith.constant 0 : index
      %345 = vector.load %arg11[%344, %c0_82, %c0_83] : memref<12x8x384xbf16, #tpu.memory_space<vmem>>, vector<1x8x384xbf16>
      %346 = vector.shape_cast %345 : vector<1x8x384xbf16> to vector<8x384xbf16>
      %347 = arith.truncf %335 : vector<8x128xf32> to vector<8x128xbf16>
      %cst_84 = arith.constant dense<0.000000e+00> : vector<8x384xf32>
      %348 = tpu.matmul %347, %5, %cst_84 {dimension_numbers = #tpu.dot_dimension_numbers<[1], [0], [0], [1], [0, 0, 1, 1], [], []>} : vector<8x128xbf16>, vector<128x384xbf16>, vector<8x384xf32> -> vector<8x384xf32>
      %349 = arith.extf %346 : vector<8x384xbf16> to vector<8x384xf32>
      %350 = vector.extract_strided_slice %349 {offsets = [0, 0], sizes = [8, 128], strides = [1, 1]} : vector<8x384xf32> to vector<8x128xf32>
      %351 = vector.extract_strided_slice %348 {offsets = [0, 0], sizes = [8, 128], strides = [1, 1]} : vector<8x384xf32> to vector<8x128xf32>
      %352 = arith.addf %350, %351 : vector<8x128xf32>
      %353 = arith.negf %352 : vector<8x128xf32>
      %354 = math.exp %353 : vector<8x128xf32>
      %cst_85 = arith.constant 1.000000e+00 : f32
      %355 = vector.broadcast %cst_85 : f32 to vector<8x128xf32>
      %356 = arith.addf %355, %354 : vector<8x128xf32>
      %357 = arith.divf %355, %356 : vector<8x128xf32>
      %358 = vector.extract_strided_slice %349 {offsets = [0, 128], sizes = [8, 128], strides = [1, 1]} : vector<8x384xf32> to vector<8x128xf32>
      %359 = vector.extract_strided_slice %348 {offsets = [0, 128], sizes = [8, 128], strides = [1, 1]} : vector<8x384xf32> to vector<8x128xf32>
      %360 = arith.addf %358, %359 : vector<8x128xf32>
      %361 = arith.negf %360 : vector<8x128xf32>
      %362 = math.exp %361 : vector<8x128xf32>
      %cst_86 = arith.constant 1.000000e+00 : f32
      %363 = vector.broadcast %cst_86 : f32 to vector<8x128xf32>
      %364 = arith.addf %363, %362 : vector<8x128xf32>
      %365 = arith.divf %363, %364 : vector<8x128xf32>
      %366 = vector.extract_strided_slice %349 {offsets = [0, 256], sizes = [8, 128], strides = [1, 1]} : vector<8x384xf32> to vector<8x128xf32>
      %367 = vector.extract_strided_slice %348 {offsets = [0, 256], sizes = [8, 128], strides = [1, 1]} : vector<8x384xf32> to vector<8x128xf32>
      %368 = arith.mulf %357, %367 : vector<8x128xf32>
      %369 = arith.addf %366, %368 : vector<8x128xf32>
      %370 = math.tanh %369 : vector<8x128xf32>
      %cst_87 = arith.constant 1.000000e+00 : f32
      %371 = vector.broadcast %cst_87 : f32 to vector<8x128xf32>
      %372 = arith.subf %371, %365 : vector<8x128xf32>
      %373 = arith.mulf %372, %370 : vector<8x128xf32>
      %374 = arith.mulf %365, %335 : vector<8x128xf32>
      %375 = arith.addf %373, %374 : vector<8x128xf32>
      %376 = vector.broadcast %343 : i32 to vector<8x1xi32>
      %377 = arith.cmpi slt, %376, %0 : vector<8x1xi32>
      %378 = vector.shape_cast %377 : vector<8x1xi1> to vector<8x1xi1>
      %379 = vector.broadcast %378 : vector<8x1xi1> to vector<8x128xi1>
      %380 = arith.select %379, %375, %335 : vector<8x128xi1>, vector<8x128xf32>
      %381 = arith.cmpi slt, %343, %1 : i32
      %cst_88 = arith.constant 0.000000e+00 : f32
      %cst_89 = arith.constant 0xFF800000 : f32
      %382 = arith.select %381, %cst_88, %cst_89 : f32
      %383 = vector.shape_cast %377 : vector<8x1xi1> to vector<8x1xi1>
      %384 = vector.broadcast %383 : vector<8x1xi1> to vector<8x128xi1>
      %385 = vector.broadcast %382 : f32 to vector<8x128xf32>
      %386 = arith.select %384, %375, %385 : vector<8x128xi1>, vector<8x128xf32>
      %387 = arith.maximumf %342, %386 : vector<8x128xf32>
      %c8_i32 = arith.constant 8 : i32
      %388 = arith.addi %7, %c8_i32 : i32
      %389 = arith.index_cast %c8_i32 : i32 to index
      %c0_90 = arith.constant 0 : index
      %c0_91 = arith.constant 0 : index
      %390 = vector.load %arg11[%389, %c0_90, %c0_91] : memref<12x8x384xbf16, #tpu.memory_space<vmem>>, vector<1x8x384xbf16>
      %391 = vector.shape_cast %390 : vector<1x8x384xbf16> to vector<8x384xbf16>
      %392 = arith.truncf %380 : vector<8x128xf32> to vector<8x128xbf16>
      %cst_92 = arith.constant dense<0.000000e+00> : vector<8x384xf32>
      %393 = tpu.matmul %392, %5, %cst_92 {dimension_numbers = #tpu.dot_dimension_numbers<[1], [0], [0], [1], [0, 0, 1, 1], [], []>} : vector<8x128xbf16>, vector<128x384xbf16>, vector<8x384xf32> -> vector<8x384xf32>
      %394 = arith.extf %391 : vector<8x384xbf16> to vector<8x384xf32>
      %395 = vector.extract_strided_slice %394 {offsets = [0, 0], sizes = [8, 128], strides = [1, 1]} : vector<8x384xf32> to vector<8x128xf32>
      %396 = vector.extract_strided_slice %393 {offsets = [0, 0], sizes = [8, 128], strides = [1, 1]} : vector<8x384xf32> to vector<8x128xf32>
      %397 = arith.addf %395, %396 : vector<8x128xf32>
      %398 = arith.negf %397 : vector<8x128xf32>
      %399 = math.exp %398 : vector<8x128xf32>
      %cst_93 = arith.constant 1.000000e+00 : f32
      %400 = vector.broadcast %cst_93 : f32 to vector<8x128xf32>
      %401 = arith.addf %400, %399 : vector<8x128xf32>
      %402 = arith.divf %400, %401 : vector<8x128xf32>
      %403 = vector.extract_strided_slice %394 {offsets = [0, 128], sizes = [8, 128], strides = [1, 1]} : vector<8x384xf32> to vector<8x128xf32>
      %404 = vector.extract_strided_slice %393 {offsets = [0, 128], sizes = [8, 128], strides = [1, 1]} : vector<8x384xf32> to vector<8x128xf32>
      %405 = arith.addf %403, %404 : vector<8x128xf32>
      %406 = arith.negf %405 : vector<8x128xf32>
      %407 = math.exp %406 : vector<8x128xf32>
      %cst_94 = arith.constant 1.000000e+00 : f32
      %408 = vector.broadcast %cst_94 : f32 to vector<8x128xf32>
      %409 = arith.addf %408, %407 : vector<8x128xf32>
      %410 = arith.divf %408, %409 : vector<8x128xf32>
      %411 = vector.extract_strided_slice %394 {offsets = [0, 256], sizes = [8, 128], strides = [1, 1]} : vector<8x384xf32> to vector<8x128xf32>
      %412 = vector.extract_strided_slice %393 {offsets = [0, 256], sizes = [8, 128], strides = [1, 1]} : vector<8x384xf32> to vector<8x128xf32>
      %413 = arith.mulf %402, %412 : vector<8x128xf32>
      %414 = arith.addf %411, %413 : vector<8x128xf32>
      %415 = math.tanh %414 : vector<8x128xf32>
      %cst_95 = arith.constant 1.000000e+00 : f32
      %416 = vector.broadcast %cst_95 : f32 to vector<8x128xf32>
      %417 = arith.subf %416, %410 : vector<8x128xf32>
      %418 = arith.mulf %417, %415 : vector<8x128xf32>
      %419 = arith.mulf %410, %380 : vector<8x128xf32>
      %420 = arith.addf %418, %419 : vector<8x128xf32>
      %421 = vector.broadcast %388 : i32 to vector<8x1xi32>
      %422 = arith.cmpi slt, %421, %0 : vector<8x1xi32>
      %423 = vector.shape_cast %422 : vector<8x1xi1> to vector<8x1xi1>
      %424 = vector.broadcast %423 : vector<8x1xi1> to vector<8x128xi1>
      %425 = arith.select %424, %420, %380 : vector<8x128xi1>, vector<8x128xf32>
      %426 = arith.cmpi slt, %388, %1 : i32
      %cst_96 = arith.constant 0.000000e+00 : f32
      %cst_97 = arith.constant 0xFF800000 : f32
      %427 = arith.select %426, %cst_96, %cst_97 : f32
      %428 = vector.shape_cast %422 : vector<8x1xi1> to vector<8x1xi1>
      %429 = vector.broadcast %428 : vector<8x1xi1> to vector<8x128xi1>
      %430 = vector.broadcast %427 : f32 to vector<8x128xf32>
      %431 = arith.select %429, %420, %430 : vector<8x128xi1>, vector<8x128xf32>
      %432 = arith.maximumf %387, %431 : vector<8x128xf32>
      %c9_i32 = arith.constant 9 : i32
      %433 = arith.addi %7, %c9_i32 : i32
      %434 = arith.index_cast %c9_i32 : i32 to index
      %c0_98 = arith.constant 0 : index
      %c0_99 = arith.constant 0 : index
      %435 = vector.load %arg11[%434, %c0_98, %c0_99] : memref<12x8x384xbf16, #tpu.memory_space<vmem>>, vector<1x8x384xbf16>
      %436 = vector.shape_cast %435 : vector<1x8x384xbf16> to vector<8x384xbf16>
      %437 = arith.truncf %425 : vector<8x128xf32> to vector<8x128xbf16>
      %cst_100 = arith.constant dense<0.000000e+00> : vector<8x384xf32>
      %438 = tpu.matmul %437, %5, %cst_100 {dimension_numbers = #tpu.dot_dimension_numbers<[1], [0], [0], [1], [0, 0, 1, 1], [], []>} : vector<8x128xbf16>, vector<128x384xbf16>, vector<8x384xf32> -> vector<8x384xf32>
      %439 = arith.extf %436 : vector<8x384xbf16> to vector<8x384xf32>
      %440 = vector.extract_strided_slice %439 {offsets = [0, 0], sizes = [8, 128], strides = [1, 1]} : vector<8x384xf32> to vector<8x128xf32>
      %441 = vector.extract_strided_slice %438 {offsets = [0, 0], sizes = [8, 128], strides = [1, 1]} : vector<8x384xf32> to vector<8x128xf32>
      %442 = arith.addf %440, %441 : vector<8x128xf32>
      %443 = arith.negf %442 : vector<8x128xf32>
      %444 = math.exp %443 : vector<8x128xf32>
      %cst_101 = arith.constant 1.000000e+00 : f32
      %445 = vector.broadcast %cst_101 : f32 to vector<8x128xf32>
      %446 = arith.addf %445, %444 : vector<8x128xf32>
      %447 = arith.divf %445, %446 : vector<8x128xf32>
      %448 = vector.extract_strided_slice %439 {offsets = [0, 128], sizes = [8, 128], strides = [1, 1]} : vector<8x384xf32> to vector<8x128xf32>
      %449 = vector.extract_strided_slice %438 {offsets = [0, 128], sizes = [8, 128], strides = [1, 1]} : vector<8x384xf32> to vector<8x128xf32>
      %450 = arith.addf %448, %449 : vector<8x128xf32>
      %451 = arith.negf %450 : vector<8x128xf32>
      %452 = math.exp %451 : vector<8x128xf32>
      %cst_102 = arith.constant 1.000000e+00 : f32
      %453 = vector.broadcast %cst_102 : f32 to vector<8x128xf32>
      %454 = arith.addf %453, %452 : vector<8x128xf32>
      %455 = arith.divf %453, %454 : vector<8x128xf32>
      %456 = vector.extract_strided_slice %439 {offsets = [0, 256], sizes = [8, 128], strides = [1, 1]} : vector<8x384xf32> to vector<8x128xf32>
      %457 = vector.extract_strided_slice %438 {offsets = [0, 256], sizes = [8, 128], strides = [1, 1]} : vector<8x384xf32> to vector<8x128xf32>
      %458 = arith.mulf %447, %457 : vector<8x128xf32>
      %459 = arith.addf %456, %458 : vector<8x128xf32>
      %460 = math.tanh %459 : vector<8x128xf32>
      %cst_103 = arith.constant 1.000000e+00 : f32
      %461 = vector.broadcast %cst_103 : f32 to vector<8x128xf32>
      %462 = arith.subf %461, %455 : vector<8x128xf32>
      %463 = arith.mulf %462, %460 : vector<8x128xf32>
      %464 = arith.mulf %455, %425 : vector<8x128xf32>
      %465 = arith.addf %463, %464 : vector<8x128xf32>
      %466 = vector.broadcast %433 : i32 to vector<8x1xi32>
      %467 = arith.cmpi slt, %466, %0 : vector<8x1xi32>
      %468 = vector.shape_cast %467 : vector<8x1xi1> to vector<8x1xi1>
      %469 = vector.broadcast %468 : vector<8x1xi1> to vector<8x128xi1>
      %470 = arith.select %469, %465, %425 : vector<8x128xi1>, vector<8x128xf32>
      %471 = arith.cmpi slt, %433, %1 : i32
      %cst_104 = arith.constant 0.000000e+00 : f32
      %cst_105 = arith.constant 0xFF800000 : f32
      %472 = arith.select %471, %cst_104, %cst_105 : f32
      %473 = vector.shape_cast %467 : vector<8x1xi1> to vector<8x1xi1>
      %474 = vector.broadcast %473 : vector<8x1xi1> to vector<8x128xi1>
      %475 = vector.broadcast %472 : f32 to vector<8x128xf32>
      %476 = arith.select %474, %465, %475 : vector<8x128xi1>, vector<8x128xf32>
      %477 = arith.maximumf %432, %476 : vector<8x128xf32>
      %c10_i32 = arith.constant 10 : i32
      %478 = arith.addi %7, %c10_i32 : i32
      %479 = arith.index_cast %c10_i32 : i32 to index
      %c0_106 = arith.constant 0 : index
      %c0_107 = arith.constant 0 : index
      %480 = vector.load %arg11[%479, %c0_106, %c0_107] : memref<12x8x384xbf16, #tpu.memory_space<vmem>>, vector<1x8x384xbf16>
      %481 = vector.shape_cast %480 : vector<1x8x384xbf16> to vector<8x384xbf16>
      %482 = arith.truncf %470 : vector<8x128xf32> to vector<8x128xbf16>
      %cst_108 = arith.constant dense<0.000000e+00> : vector<8x384xf32>
      %483 = tpu.matmul %482, %5, %cst_108 {dimension_numbers = #tpu.dot_dimension_numbers<[1], [0], [0], [1], [0, 0, 1, 1], [], []>} : vector<8x128xbf16>, vector<128x384xbf16>, vector<8x384xf32> -> vector<8x384xf32>
      %484 = arith.extf %481 : vector<8x384xbf16> to vector<8x384xf32>
      %485 = vector.extract_strided_slice %484 {offsets = [0, 0], sizes = [8, 128], strides = [1, 1]} : vector<8x384xf32> to vector<8x128xf32>
      %486 = vector.extract_strided_slice %483 {offsets = [0, 0], sizes = [8, 128], strides = [1, 1]} : vector<8x384xf32> to vector<8x128xf32>
      %487 = arith.addf %485, %486 : vector<8x128xf32>
      %488 = arith.negf %487 : vector<8x128xf32>
      %489 = math.exp %488 : vector<8x128xf32>
      %cst_109 = arith.constant 1.000000e+00 : f32
      %490 = vector.broadcast %cst_109 : f32 to vector<8x128xf32>
      %491 = arith.addf %490, %489 : vector<8x128xf32>
      %492 = arith.divf %490, %491 : vector<8x128xf32>
      %493 = vector.extract_strided_slice %484 {offsets = [0, 128], sizes = [8, 128], strides = [1, 1]} : vector<8x384xf32> to vector<8x128xf32>
      %494 = vector.extract_strided_slice %483 {offsets = [0, 128], sizes = [8, 128], strides = [1, 1]} : vector<8x384xf32> to vector<8x128xf32>
      %495 = arith.addf %493, %494 : vector<8x128xf32>
      %496 = arith.negf %495 : vector<8x128xf32>
      %497 = math.exp %496 : vector<8x128xf32>
      %cst_110 = arith.constant 1.000000e+00 : f32
      %498 = vector.broadcast %cst_110 : f32 to vector<8x128xf32>
      %499 = arith.addf %498, %497 : vector<8x128xf32>
      %500 = arith.divf %498, %499 : vector<8x128xf32>
      %501 = vector.extract_strided_slice %484 {offsets = [0, 256], sizes = [8, 128], strides = [1, 1]} : vector<8x384xf32> to vector<8x128xf32>
      %502 = vector.extract_strided_slice %483 {offsets = [0, 256], sizes = [8, 128], strides = [1, 1]} : vector<8x384xf32> to vector<8x128xf32>
      %503 = arith.mulf %492, %502 : vector<8x128xf32>
      %504 = arith.addf %501, %503 : vector<8x128xf32>
      %505 = math.tanh %504 : vector<8x128xf32>
      %cst_111 = arith.constant 1.000000e+00 : f32
      %506 = vector.broadcast %cst_111 : f32 to vector<8x128xf32>
      %507 = arith.subf %506, %500 : vector<8x128xf32>
      %508 = arith.mulf %507, %505 : vector<8x128xf32>
      %509 = arith.mulf %500, %470 : vector<8x128xf32>
      %510 = arith.addf %508, %509 : vector<8x128xf32>
      %511 = vector.broadcast %478 : i32 to vector<8x1xi32>
      %512 = arith.cmpi slt, %511, %0 : vector<8x1xi32>
      %513 = vector.shape_cast %512 : vector<8x1xi1> to vector<8x1xi1>
      %514 = vector.broadcast %513 : vector<8x1xi1> to vector<8x128xi1>
      %515 = arith.select %514, %510, %470 : vector<8x128xi1>, vector<8x128xf32>
      %516 = arith.cmpi slt, %478, %1 : i32
      %cst_112 = arith.constant 0.000000e+00 : f32
      %cst_113 = arith.constant 0xFF800000 : f32
      %517 = arith.select %516, %cst_112, %cst_113 : f32
      %518 = vector.shape_cast %512 : vector<8x1xi1> to vector<8x1xi1>
      %519 = vector.broadcast %518 : vector<8x1xi1> to vector<8x128xi1>
      %520 = vector.broadcast %517 : f32 to vector<8x128xf32>
      %521 = arith.select %519, %510, %520 : vector<8x128xi1>, vector<8x128xf32>
      %522 = arith.maximumf %477, %521 : vector<8x128xf32>
      %c11_i32 = arith.constant 11 : i32
      %523 = arith.addi %7, %c11_i32 : i32
      %524 = arith.index_cast %c11_i32 : i32 to index
      %c0_114 = arith.constant 0 : index
      %c0_115 = arith.constant 0 : index
      %525 = vector.load %arg11[%524, %c0_114, %c0_115] : memref<12x8x384xbf16, #tpu.memory_space<vmem>>, vector<1x8x384xbf16>
      %526 = vector.shape_cast %525 : vector<1x8x384xbf16> to vector<8x384xbf16>
      %527 = arith.truncf %515 : vector<8x128xf32> to vector<8x128xbf16>
      %cst_116 = arith.constant dense<0.000000e+00> : vector<8x384xf32>
      %528 = tpu.matmul %527, %5, %cst_116 {dimension_numbers = #tpu.dot_dimension_numbers<[1], [0], [0], [1], [0, 0, 1, 1], [], []>} : vector<8x128xbf16>, vector<128x384xbf16>, vector<8x384xf32> -> vector<8x384xf32>
      %529 = arith.extf %526 : vector<8x384xbf16> to vector<8x384xf32>
      %530 = vector.extract_strided_slice %529 {offsets = [0, 0], sizes = [8, 128], strides = [1, 1]} : vector<8x384xf32> to vector<8x128xf32>
      %531 = vector.extract_strided_slice %528 {offsets = [0, 0], sizes = [8, 128], strides = [1, 1]} : vector<8x384xf32> to vector<8x128xf32>
      %532 = arith.addf %530, %531 : vector<8x128xf32>
      %533 = arith.negf %532 : vector<8x128xf32>
      %534 = math.exp %533 : vector<8x128xf32>
      %cst_117 = arith.constant 1.000000e+00 : f32
      %535 = vector.broadcast %cst_117 : f32 to vector<8x128xf32>
      %536 = arith.addf %535, %534 : vector<8x128xf32>
      %537 = arith.divf %535, %536 : vector<8x128xf32>
      %538 = vector.extract_strided_slice %529 {offsets = [0, 128], sizes = [8, 128], strides = [1, 1]} : vector<8x384xf32> to vector<8x128xf32>
      %539 = vector.extract_strided_slice %528 {offsets = [0, 128], sizes = [8, 128], strides = [1, 1]} : vector<8x384xf32> to vector<8x128xf32>
      %540 = arith.addf %538, %539 : vector<8x128xf32>
      %541 = arith.negf %540 : vector<8x128xf32>
      %542 = math.exp %541 : vector<8x128xf32>
      %cst_118 = arith.constant 1.000000e+00 : f32
      %543 = vector.broadcast %cst_118 : f32 to vector<8x128xf32>
      %544 = arith.addf %543, %542 : vector<8x128xf32>
      %545 = arith.divf %543, %544 : vector<8x128xf32>
      %546 = vector.extract_strided_slice %529 {offsets = [0, 256], sizes = [8, 128], strides = [1, 1]} : vector<8x384xf32> to vector<8x128xf32>
      %547 = vector.extract_strided_slice %528 {offsets = [0, 256], sizes = [8, 128], strides = [1, 1]} : vector<8x384xf32> to vector<8x128xf32>
      %548 = arith.mulf %537, %547 : vector<8x128xf32>
      %549 = arith.addf %546, %548 : vector<8x128xf32>
      %550 = math.tanh %549 : vector<8x128xf32>
      %cst_119 = arith.constant 1.000000e+00 : f32
      %551 = vector.broadcast %cst_119 : f32 to vector<8x128xf32>
      %552 = arith.subf %551, %545 : vector<8x128xf32>
      %553 = arith.mulf %552, %550 : vector<8x128xf32>
      %554 = arith.mulf %545, %515 : vector<8x128xf32>
      %555 = arith.addf %553, %554 : vector<8x128xf32>
      %556 = vector.broadcast %523 : i32 to vector<8x1xi32>
      %557 = arith.cmpi slt, %556, %0 : vector<8x1xi32>
      %558 = vector.shape_cast %557 : vector<8x1xi1> to vector<8x1xi1>
      %559 = vector.broadcast %558 : vector<8x1xi1> to vector<8x128xi1>
      %560 = arith.select %559, %555, %515 : vector<8x128xi1>, vector<8x128xf32>
      %561 = arith.cmpi slt, %523, %1 : i32
      %cst_120 = arith.constant 0.000000e+00 : f32
      %cst_121 = arith.constant 0xFF800000 : f32
      %562 = arith.select %561, %cst_120, %cst_121 : f32
      %563 = vector.shape_cast %557 : vector<8x1xi1> to vector<8x1xi1>
      %564 = vector.broadcast %563 : vector<8x1xi1> to vector<8x128xi1>
      %565 = vector.broadcast %562 : f32 to vector<8x128xf32>
      %566 = arith.select %564, %555, %565 : vector<8x128xi1>, vector<8x128xf32>
      %567 = arith.maximumf %522, %566 : vector<8x128xf32>
      %c12_i32_122 = arith.constant 12 : i32
      %c0_123 = arith.constant 0 : index
      %c0_124 = arith.constant 0 : index
      %568 = vector.load %arg13[%c0_123, %c0_124] : memref<8x128xf32, #tpu.memory_space<vmem>>, vector<8x128xf32>
      tpu.vector_store %arg13[%c0_123, %c0_124], %560 {strides = array<i32>} : memref<8x128xf32, #tpu.memory_space<vmem>>, vector<8x128xf32>,
      %c0_125 = arith.constant 0 : index
      %c0_126 = arith.constant 0 : index
      %569 = vector.load %arg15[%c0_125, %c0_126] : memref<8x128xf32, #tpu.memory_space<vmem>>, vector<8x128xf32>
      tpu.vector_store %arg15[%c0_125, %c0_126], %567 {strides = array<i32>} : memref<8x128xf32, #tpu.memory_space<vmem>>, vector<8x128xf32>,
    } else {
    }
    %13 = arith.cmpi slt, %9, %1 : i32
    %14 = arith.extui %13 : i1 to i32
    %c0_i32_10 = arith.constant 0 : i32
    %15 = arith.cmpi ne, %14, %c0_i32_10 : i32
    scf.if %15 {
      %c0_13 = arith.constant 0 : index
      %c0_14 = arith.constant 0 : index
      %c0_15 = arith.constant 0 : index
      %19 = vector.load %arg4[%c0_13, %c0_14, %c0_15] : memref<12x8x32xbf16, #tpu.memory_space<vmem>>, vector<12x8x32xbf16>
      %20 = vector.shape_cast %19 : vector<12x8x32xbf16> to vector<96x32xbf16>
      %c0_16 = arith.constant 0 : index
      %c0_17 = arith.constant 0 : index
      %21 = vector.load %arg7[%c0_16, %c0_17] : memref<32x384xbf16, #tpu.memory_space<vmem>>, vector<32x384xbf16>
      %cst = arith.constant dense<0.000000e+00> : vector<96x384xf32>
      %22 = tpu.matmul %20, %21, %cst {dimension_numbers = #tpu.dot_dimension_numbers<[1], [0], [0], [1], [0, 0, 1, 1], [], []>} : vector<96x32xbf16>, vector<32x384xbf16>, vector<96x384xf32> -> vector<96x384xf32>
      %23 = vector.shape_cast %22 : vector<96x384xf32> to vector<12x8x384xf32>
      %24 = arith.truncf %23 : vector<12x8x384xf32> to vector<12x8x384xbf16>
      %c0_18 = arith.constant 0 : index
      %c0_19 = arith.constant 0 : index
      %c0_20 = arith.constant 0 : index
      %25 = vector.load %arg12[%c0_18, %c0_19, %c0_20] : memref<12x8x384xbf16, #tpu.memory_space<vmem>>, vector<12x8x384xbf16>
      tpu.vector_store %arg12[%c0_18, %c0_19, %c0_20], %24 {strides = array<i32>} : memref<12x8x384xbf16, #tpu.memory_space<vmem>>, vector<12x8x384xbf16>,
      %c0_21 = arith.constant 0 : index
      %c0_22 = arith.constant 0 : index
      %26 = vector.load %arg14[%c0_21, %c0_22] : memref<8x128xf32, #tpu.memory_space<vmem>>, vector<8x128xf32>
      %c0_23 = arith.constant 0 : index
      %c0_24 = arith.constant 0 : index
      %27 = vector.load %arg16[%c0_23, %c0_24] : memref<8x128xf32, #tpu.memory_space<vmem>>, vector<8x128xf32>
      %c0_i32_25 = arith.constant 0 : i32
      %c11_i32 = arith.constant 11 : i32
      %28 = arith.subi %c11_i32, %c0_i32_25 : i32
      %29 = arith.addi %9, %28 : i32
      %30 = arith.index_cast %28 : i32 to index
      %c0_26 = arith.constant 0 : index
      %c0_27 = arith.constant 0 : index
      %31 = vector.load %arg12[%30, %c0_26, %c0_27] : memref<12x8x384xbf16, #tpu.memory_space<vmem>>, vector<1x8x384xbf16>
      %32 = vector.shape_cast %31 : vector<1x8x384xbf16> to vector<8x384xbf16>
      %33 = arith.truncf %26 : vector<8x128xf32> to vector<8x128xbf16>
      %cst_28 = arith.constant dense<0.000000e+00> : vector<8x384xf32>
      %34 = tpu.matmul %33, %6, %cst_28 {dimension_numbers = #tpu.dot_dimension_numbers<[1], [0], [0], [1], [0, 0, 1, 1], [], []>} : vector<8x128xbf16>, vector<128x384xbf16>, vector<8x384xf32> -> vector<8x384xf32>
      %35 = arith.extf %32 : vector<8x384xbf16> to vector<8x384xf32>
      %36 = vector.extract_strided_slice %35 {offsets = [0, 0], sizes = [8, 128], strides = [1, 1]} : vector<8x384xf32> to vector<8x128xf32>
      %37 = vector.extract_strided_slice %34 {offsets = [0, 0], sizes = [8, 128], strides = [1, 1]} : vector<8x384xf32> to vector<8x128xf32>
      %38 = arith.addf %36, %37 : vector<8x128xf32>
      %39 = arith.negf %38 : vector<8x128xf32>
      %40 = math.exp %39 : vector<8x128xf32>
      %cst_29 = arith.constant 1.000000e+00 : f32
      %41 = vector.broadcast %cst_29 : f32 to vector<8x128xf32>
      %42 = arith.addf %41, %40 : vector<8x128xf32>
      %43 = arith.divf %41, %42 : vector<8x128xf32>
      %44 = vector.extract_strided_slice %35 {offsets = [0, 128], sizes = [8, 128], strides = [1, 1]} : vector<8x384xf32> to vector<8x128xf32>
      %45 = vector.extract_strided_slice %34 {offsets = [0, 128], sizes = [8, 128], strides = [1, 1]} : vector<8x384xf32> to vector<8x128xf32>
      %46 = arith.addf %44, %45 : vector<8x128xf32>
      %47 = arith.negf %46 : vector<8x128xf32>
      %48 = math.exp %47 : vector<8x128xf32>
      %cst_30 = arith.constant 1.000000e+00 : f32
      %49 = vector.broadcast %cst_30 : f32 to vector<8x128xf32>
      %50 = arith.addf %49, %48 : vector<8x128xf32>
      %51 = arith.divf %49, %50 : vector<8x128xf32>
      %52 = vector.extract_strided_slice %35 {offsets = [0, 256], sizes = [8, 128], strides = [1, 1]} : vector<8x384xf32> to vector<8x128xf32>
      %53 = vector.extract_strided_slice %34 {offsets = [0, 256], sizes = [8, 128], strides = [1, 1]} : vector<8x384xf32> to vector<8x128xf32>
      %54 = arith.mulf %43, %53 : vector<8x128xf32>
      %55 = arith.addf %52, %54 : vector<8x128xf32>
      %56 = math.tanh %55 : vector<8x128xf32>
      %cst_31 = arith.constant 1.000000e+00 : f32
      %57 = vector.broadcast %cst_31 : f32 to vector<8x128xf32>
      %58 = arith.subf %57, %51 : vector<8x128xf32>
      %59 = arith.mulf %58, %56 : vector<8x128xf32>
      %60 = arith.mulf %51, %26 : vector<8x128xf32>
      %61 = arith.addf %59, %60 : vector<8x128xf32>
      %62 = vector.broadcast %29 : i32 to vector<8x1xi32>
      %63 = arith.cmpi slt, %62, %0 : vector<8x1xi32>
      %64 = vector.shape_cast %63 : vector<8x1xi1> to vector<8x1xi1>
      %65 = vector.broadcast %64 : vector<8x1xi1> to vector<8x128xi1>
      %66 = arith.select %65, %61, %26 : vector<8x128xi1>, vector<8x128xf32>
      %67 = arith.cmpi slt, %29, %1 : i32
      %cst_32 = arith.constant 0.000000e+00 : f32
      %cst_33 = arith.constant 0xFF800000 : f32
      %68 = arith.select %67, %cst_32, %cst_33 : f32
      %69 = vector.shape_cast %63 : vector<8x1xi1> to vector<8x1xi1>
      %70 = vector.broadcast %69 : vector<8x1xi1> to vector<8x128xi1>
      %71 = vector.broadcast %68 : f32 to vector<8x128xf32>
      %72 = arith.select %70, %61, %71 : vector<8x128xi1>, vector<8x128xf32>
      %73 = arith.maximumf %27, %72 : vector<8x128xf32>
      %c1_i32 = arith.constant 1 : i32
      %c11_i32_34 = arith.constant 11 : i32
      %74 = arith.subi %c11_i32_34, %c1_i32 : i32
      %75 = arith.addi %9, %74 : i32
      %76 = arith.index_cast %74 : i32 to index
      %c0_35 = arith.constant 0 : index
      %c0_36 = arith.constant 0 : index
      %77 = vector.load %arg12[%76, %c0_35, %c0_36] : memref<12x8x384xbf16, #tpu.memory_space<vmem>>, vector<1x8x384xbf16>
      %78 = vector.shape_cast %77 : vector<1x8x384xbf16> to vector<8x384xbf16>
      %79 = arith.truncf %66 : vector<8x128xf32> to vector<8x128xbf16>
      %cst_37 = arith.constant dense<0.000000e+00> : vector<8x384xf32>
      %80 = tpu.matmul %79, %6, %cst_37 {dimension_numbers = #tpu.dot_dimension_numbers<[1], [0], [0], [1], [0, 0, 1, 1], [], []>} : vector<8x128xbf16>, vector<128x384xbf16>, vector<8x384xf32> -> vector<8x384xf32>
      %81 = arith.extf %78 : vector<8x384xbf16> to vector<8x384xf32>
      %82 = vector.extract_strided_slice %81 {offsets = [0, 0], sizes = [8, 128], strides = [1, 1]} : vector<8x384xf32> to vector<8x128xf32>
      %83 = vector.extract_strided_slice %80 {offsets = [0, 0], sizes = [8, 128], strides = [1, 1]} : vector<8x384xf32> to vector<8x128xf32>
      %84 = arith.addf %82, %83 : vector<8x128xf32>
      %85 = arith.negf %84 : vector<8x128xf32>
      %86 = math.exp %85 : vector<8x128xf32>
      %cst_38 = arith.constant 1.000000e+00 : f32
      %87 = vector.broadcast %cst_38 : f32 to vector<8x128xf32>
      %88 = arith.addf %87, %86 : vector<8x128xf32>
      %89 = arith.divf %87, %88 : vector<8x128xf32>
      %90 = vector.extract_strided_slice %81 {offsets = [0, 128], sizes = [8, 128], strides = [1, 1]} : vector<8x384xf32> to vector<8x128xf32>
      %91 = vector.extract_strided_slice %80 {offsets = [0, 128], sizes = [8, 128], strides = [1, 1]} : vector<8x384xf32> to vector<8x128xf32>
      %92 = arith.addf %90, %91 : vector<8x128xf32>
      %93 = arith.negf %92 : vector<8x128xf32>
      %94 = math.exp %93 : vector<8x128xf32>
      %cst_39 = arith.constant 1.000000e+00 : f32
      %95 = vector.broadcast %cst_39 : f32 to vector<8x128xf32>
      %96 = arith.addf %95, %94 : vector<8x128xf32>
      %97 = arith.divf %95, %96 : vector<8x128xf32>
      %98 = vector.extract_strided_slice %81 {offsets = [0, 256], sizes = [8, 128], strides = [1, 1]} : vector<8x384xf32> to vector<8x128xf32>
      %99 = vector.extract_strided_slice %80 {offsets = [0, 256], sizes = [8, 128], strides = [1, 1]} : vector<8x384xf32> to vector<8x128xf32>
      %100 = arith.mulf %89, %99 : vector<8x128xf32>
      %101 = arith.addf %98, %100 : vector<8x128xf32>
      %102 = math.tanh %101 : vector<8x128xf32>
      %cst_40 = arith.constant 1.000000e+00 : f32
      %103 = vector.broadcast %cst_40 : f32 to vector<8x128xf32>
      %104 = arith.subf %103, %97 : vector<8x128xf32>
      %105 = arith.mulf %104, %102 : vector<8x128xf32>
      %106 = arith.mulf %97, %66 : vector<8x128xf32>
      %107 = arith.addf %105, %106 : vector<8x128xf32>
      %108 = vector.broadcast %75 : i32 to vector<8x1xi32>
      %109 = arith.cmpi slt, %108, %0 : vector<8x1xi32>
      %110 = vector.shape_cast %109 : vector<8x1xi1> to vector<8x1xi1>
      %111 = vector.broadcast %110 : vector<8x1xi1> to vector<8x128xi1>
      %112 = arith.select %111, %107, %66 : vector<8x128xi1>, vector<8x128xf32>
      %113 = arith.cmpi slt, %75, %1 : i32
      %cst_41 = arith.constant 0.000000e+00 : f32
      %cst_42 = arith.constant 0xFF800000 : f32
      %114 = arith.select %113, %cst_41, %cst_42 : f32
      %115 = vector.shape_cast %109 : vector<8x1xi1> to vector<8x1xi1>
      %116 = vector.broadcast %115 : vector<8x1xi1> to vector<8x128xi1>
      %117 = vector.broadcast %114 : f32 to vector<8x128xf32>
      %118 = arith.select %116, %107, %117 : vector<8x128xi1>, vector<8x128xf32>
      %119 = arith.maximumf %73, %118 : vector<8x128xf32>
      %c2_i32 = arith.constant 2 : i32
      %c11_i32_43 = arith.constant 11 : i32
      %120 = arith.subi %c11_i32_43, %c2_i32 : i32
      %121 = arith.addi %9, %120 : i32
      %122 = arith.index_cast %120 : i32 to index
      %c0_44 = arith.constant 0 : index
      %c0_45 = arith.constant 0 : index
      %123 = vector.load %arg12[%122, %c0_44, %c0_45] : memref<12x8x384xbf16, #tpu.memory_space<vmem>>, vector<1x8x384xbf16>
      %124 = vector.shape_cast %123 : vector<1x8x384xbf16> to vector<8x384xbf16>
      %125 = arith.truncf %112 : vector<8x128xf32> to vector<8x128xbf16>
      %cst_46 = arith.constant dense<0.000000e+00> : vector<8x384xf32>
      %126 = tpu.matmul %125, %6, %cst_46 {dimension_numbers = #tpu.dot_dimension_numbers<[1], [0], [0], [1], [0, 0, 1, 1], [], []>} : vector<8x128xbf16>, vector<128x384xbf16>, vector<8x384xf32> -> vector<8x384xf32>
      %127 = arith.extf %124 : vector<8x384xbf16> to vector<8x384xf32>
      %128 = vector.extract_strided_slice %127 {offsets = [0, 0], sizes = [8, 128], strides = [1, 1]} : vector<8x384xf32> to vector<8x128xf32>
      %129 = vector.extract_strided_slice %126 {offsets = [0, 0], sizes = [8, 128], strides = [1, 1]} : vector<8x384xf32> to vector<8x128xf32>
      %130 = arith.addf %128, %129 : vector<8x128xf32>
      %131 = arith.negf %130 : vector<8x128xf32>
      %132 = math.exp %131 : vector<8x128xf32>
      %cst_47 = arith.constant 1.000000e+00 : f32
      %133 = vector.broadcast %cst_47 : f32 to vector<8x128xf32>
      %134 = arith.addf %133, %132 : vector<8x128xf32>
      %135 = arith.divf %133, %134 : vector<8x128xf32>
      %136 = vector.extract_strided_slice %127 {offsets = [0, 128], sizes = [8, 128], strides = [1, 1]} : vector<8x384xf32> to vector<8x128xf32>
      %137 = vector.extract_strided_slice %126 {offsets = [0, 128], sizes = [8, 128], strides = [1, 1]} : vector<8x384xf32> to vector<8x128xf32>
      %138 = arith.addf %136, %137 : vector<8x128xf32>
      %139 = arith.negf %138 : vector<8x128xf32>
      %140 = math.exp %139 : vector<8x128xf32>
      %cst_48 = arith.constant 1.000000e+00 : f32
      %141 = vector.broadcast %cst_48 : f32 to vector<8x128xf32>
      %142 = arith.addf %141, %140 : vector<8x128xf32>
      %143 = arith.divf %141, %142 : vector<8x128xf32>
      %144 = vector.extract_strided_slice %127 {offsets = [0, 256], sizes = [8, 128], strides = [1, 1]} : vector<8x384xf32> to vector<8x128xf32>
      %145 = vector.extract_strided_slice %126 {offsets = [0, 256], sizes = [8, 128], strides = [1, 1]} : vector<8x384xf32> to vector<8x128xf32>
      %146 = arith.mulf %135, %145 : vector<8x128xf32>
      %147 = arith.addf %144, %146 : vector<8x128xf32>
      %148 = math.tanh %147 : vector<8x128xf32>
      %cst_49 = arith.constant 1.000000e+00 : f32
      %149 = vector.broadcast %cst_49 : f32 to vector<8x128xf32>
      %150 = arith.subf %149, %143 : vector<8x128xf32>
      %151 = arith.mulf %150, %148 : vector<8x128xf32>
      %152 = arith.mulf %143, %112 : vector<8x128xf32>
      %153 = arith.addf %151, %152 : vector<8x128xf32>
      %154 = vector.broadcast %121 : i32 to vector<8x1xi32>
      %155 = arith.cmpi slt, %154, %0 : vector<8x1xi32>
      %156 = vector.shape_cast %155 : vector<8x1xi1> to vector<8x1xi1>
      %157 = vector.broadcast %156 : vector<8x1xi1> to vector<8x128xi1>
      %158 = arith.select %157, %153, %112 : vector<8x128xi1>, vector<8x128xf32>
      %159 = arith.cmpi slt, %121, %1 : i32
      %cst_50 = arith.constant 0.000000e+00 : f32
      %cst_51 = arith.constant 0xFF800000 : f32
      %160 = arith.select %159, %cst_50, %cst_51 : f32
      %161 = vector.shape_cast %155 : vector<8x1xi1> to vector<8x1xi1>
      %162 = vector.broadcast %161 : vector<8x1xi1> to vector<8x128xi1>
      %163 = vector.broadcast %160 : f32 to vector<8x128xf32>
      %164 = arith.select %162, %153, %163 : vector<8x128xi1>, vector<8x128xf32>
      %165 = arith.maximumf %119, %164 : vector<8x128xf32>
      %c3_i32 = arith.constant 3 : i32
      %c11_i32_52 = arith.constant 11 : i32
      %166 = arith.subi %c11_i32_52, %c3_i32 : i32
      %167 = arith.addi %9, %166 : i32
      %168 = arith.index_cast %166 : i32 to index
      %c0_53 = arith.constant 0 : index
      %c0_54 = arith.constant 0 : index
      %169 = vector.load %arg12[%168, %c0_53, %c0_54] : memref<12x8x384xbf16, #tpu.memory_space<vmem>>, vector<1x8x384xbf16>
      %170 = vector.shape_cast %169 : vector<1x8x384xbf16> to vector<8x384xbf16>
      %171 = arith.truncf %158 : vector<8x128xf32> to vector<8x128xbf16>
      %cst_55 = arith.constant dense<0.000000e+00> : vector<8x384xf32>
      %172 = tpu.matmul %171, %6, %cst_55 {dimension_numbers = #tpu.dot_dimension_numbers<[1], [0], [0], [1], [0, 0, 1, 1], [], []>} : vector<8x128xbf16>, vector<128x384xbf16>, vector<8x384xf32> -> vector<8x384xf32>
      %173 = arith.extf %170 : vector<8x384xbf16> to vector<8x384xf32>
      %174 = vector.extract_strided_slice %173 {offsets = [0, 0], sizes = [8, 128], strides = [1, 1]} : vector<8x384xf32> to vector<8x128xf32>
      %175 = vector.extract_strided_slice %172 {offsets = [0, 0], sizes = [8, 128], strides = [1, 1]} : vector<8x384xf32> to vector<8x128xf32>
      %176 = arith.addf %174, %175 : vector<8x128xf32>
      %177 = arith.negf %176 : vector<8x128xf32>
      %178 = math.exp %177 : vector<8x128xf32>
      %cst_56 = arith.constant 1.000000e+00 : f32
      %179 = vector.broadcast %cst_56 : f32 to vector<8x128xf32>
      %180 = arith.addf %179, %178 : vector<8x128xf32>
      %181 = arith.divf %179, %180 : vector<8x128xf32>
      %182 = vector.extract_strided_slice %173 {offsets = [0, 128], sizes = [8, 128], strides = [1, 1]} : vector<8x384xf32> to vector<8x128xf32>
      %183 = vector.extract_strided_slice %172 {offsets = [0, 128], sizes = [8, 128], strides = [1, 1]} : vector<8x384xf32> to vector<8x128xf32>
      %184 = arith.addf %182, %183 : vector<8x128xf32>
      %185 = arith.negf %184 : vector<8x128xf32>
      %186 = math.exp %185 : vector<8x128xf32>
      %cst_57 = arith.constant 1.000000e+00 : f32
      %187 = vector.broadcast %cst_57 : f32 to vector<8x128xf32>
      %188 = arith.addf %187, %186 : vector<8x128xf32>
      %189 = arith.divf %187, %188 : vector<8x128xf32>
      %190 = vector.extract_strided_slice %173 {offsets = [0, 256], sizes = [8, 128], strides = [1, 1]} : vector<8x384xf32> to vector<8x128xf32>
      %191 = vector.extract_strided_slice %172 {offsets = [0, 256], sizes = [8, 128], strides = [1, 1]} : vector<8x384xf32> to vector<8x128xf32>
      %192 = arith.mulf %181, %191 : vector<8x128xf32>
      %193 = arith.addf %190, %192 : vector<8x128xf32>
      %194 = math.tanh %193 : vector<8x128xf32>
      %cst_58 = arith.constant 1.000000e+00 : f32
      %195 = vector.broadcast %cst_58 : f32 to vector<8x128xf32>
      %196 = arith.subf %195, %189 : vector<8x128xf32>
      %197 = arith.mulf %196, %194 : vector<8x128xf32>
      %198 = arith.mulf %189, %158 : vector<8x128xf32>
      %199 = arith.addf %197, %198 : vector<8x128xf32>
      %200 = vector.broadcast %167 : i32 to vector<8x1xi32>
      %201 = arith.cmpi slt, %200, %0 : vector<8x1xi32>
      %202 = vector.shape_cast %201 : vector<8x1xi1> to vector<8x1xi1>
      %203 = vector.broadcast %202 : vector<8x1xi1> to vector<8x128xi1>
      %204 = arith.select %203, %199, %158 : vector<8x128xi1>, vector<8x128xf32>
      %205 = arith.cmpi slt, %167, %1 : i32
      %cst_59 = arith.constant 0.000000e+00 : f32
      %cst_60 = arith.constant 0xFF800000 : f32
      %206 = arith.select %205, %cst_59, %cst_60 : f32
      %207 = vector.shape_cast %201 : vector<8x1xi1> to vector<8x1xi1>
      %208 = vector.broadcast %207 : vector<8x1xi1> to vector<8x128xi1>
      %209 = vector.broadcast %206 : f32 to vector<8x128xf32>
      %210 = arith.select %208, %199, %209 : vector<8x128xi1>, vector<8x128xf32>
      %211 = arith.maximumf %165, %210 : vector<8x128xf32>
      %c4_i32 = arith.constant 4 : i32
      %c11_i32_61 = arith.constant 11 : i32
      %212 = arith.subi %c11_i32_61, %c4_i32 : i32
      %213 = arith.addi %9, %212 : i32
      %214 = arith.index_cast %212 : i32 to index
      %c0_62 = arith.constant 0 : index
      %c0_63 = arith.constant 0 : index
      %215 = vector.load %arg12[%214, %c0_62, %c0_63] : memref<12x8x384xbf16, #tpu.memory_space<vmem>>, vector<1x8x384xbf16>
      %216 = vector.shape_cast %215 : vector<1x8x384xbf16> to vector<8x384xbf16>
      %217 = arith.truncf %204 : vector<8x128xf32> to vector<8x128xbf16>
      %cst_64 = arith.constant dense<0.000000e+00> : vector<8x384xf32>
      %218 = tpu.matmul %217, %6, %cst_64 {dimension_numbers = #tpu.dot_dimension_numbers<[1], [0], [0], [1], [0, 0, 1, 1], [], []>} : vector<8x128xbf16>, vector<128x384xbf16>, vector<8x384xf32> -> vector<8x384xf32>
      %219 = arith.extf %216 : vector<8x384xbf16> to vector<8x384xf32>
      %220 = vector.extract_strided_slice %219 {offsets = [0, 0], sizes = [8, 128], strides = [1, 1]} : vector<8x384xf32> to vector<8x128xf32>
      %221 = vector.extract_strided_slice %218 {offsets = [0, 0], sizes = [8, 128], strides = [1, 1]} : vector<8x384xf32> to vector<8x128xf32>
      %222 = arith.addf %220, %221 : vector<8x128xf32>
      %223 = arith.negf %222 : vector<8x128xf32>
      %224 = math.exp %223 : vector<8x128xf32>
      %cst_65 = arith.constant 1.000000e+00 : f32
      %225 = vector.broadcast %cst_65 : f32 to vector<8x128xf32>
      %226 = arith.addf %225, %224 : vector<8x128xf32>
      %227 = arith.divf %225, %226 : vector<8x128xf32>
      %228 = vector.extract_strided_slice %219 {offsets = [0, 128], sizes = [8, 128], strides = [1, 1]} : vector<8x384xf32> to vector<8x128xf32>
      %229 = vector.extract_strided_slice %218 {offsets = [0, 128], sizes = [8, 128], strides = [1, 1]} : vector<8x384xf32> to vector<8x128xf32>
      %230 = arith.addf %228, %229 : vector<8x128xf32>
      %231 = arith.negf %230 : vector<8x128xf32>
      %232 = math.exp %231 : vector<8x128xf32>
      %cst_66 = arith.constant 1.000000e+00 : f32
      %233 = vector.broadcast %cst_66 : f32 to vector<8x128xf32>
      %234 = arith.addf %233, %232 : vector<8x128xf32>
      %235 = arith.divf %233, %234 : vector<8x128xf32>
      %236 = vector.extract_strided_slice %219 {offsets = [0, 256], sizes = [8, 128], strides = [1, 1]} : vector<8x384xf32> to vector<8x128xf32>
      %237 = vector.extract_strided_slice %218 {offsets = [0, 256], sizes = [8, 128], strides = [1, 1]} : vector<8x384xf32> to vector<8x128xf32>
      %238 = arith.mulf %227, %237 : vector<8x128xf32>
      %239 = arith.addf %236, %238 : vector<8x128xf32>
      %240 = math.tanh %239 : vector<8x128xf32>
      %cst_67 = arith.constant 1.000000e+00 : f32
      %241 = vector.broadcast %cst_67 : f32 to vector<8x128xf32>
      %242 = arith.subf %241, %235 : vector<8x128xf32>
      %243 = arith.mulf %242, %240 : vector<8x128xf32>
      %244 = arith.mulf %235, %204 : vector<8x128xf32>
      %245 = arith.addf %243, %244 : vector<8x128xf32>
      %246 = vector.broadcast %213 : i32 to vector<8x1xi32>
      %247 = arith.cmpi slt, %246, %0 : vector<8x1xi32>
      %248 = vector.shape_cast %247 : vector<8x1xi1> to vector<8x1xi1>
      %249 = vector.broadcast %248 : vector<8x1xi1> to vector<8x128xi1>
      %250 = arith.select %249, %245, %204 : vector<8x128xi1>, vector<8x128xf32>
      %251 = arith.cmpi slt, %213, %1 : i32
      %cst_68 = arith.constant 0.000000e+00 : f32
      %cst_69 = arith.constant 0xFF800000 : f32
      %252 = arith.select %251, %cst_68, %cst_69 : f32
      %253 = vector.shape_cast %247 : vector<8x1xi1> to vector<8x1xi1>
      %254 = vector.broadcast %253 : vector<8x1xi1> to vector<8x128xi1>
      %255 = vector.broadcast %252 : f32 to vector<8x128xf32>
      %256 = arith.select %254, %245, %255 : vector<8x128xi1>, vector<8x128xf32>
      %257 = arith.maximumf %211, %256 : vector<8x128xf32>
      %c5_i32 = arith.constant 5 : i32
      %c11_i32_70 = arith.constant 11 : i32
      %258 = arith.subi %c11_i32_70, %c5_i32 : i32
      %259 = arith.addi %9, %258 : i32
      %260 = arith.index_cast %258 : i32 to index
      %c0_71 = arith.constant 0 : index
      %c0_72 = arith.constant 0 : index
      %261 = vector.load %arg12[%260, %c0_71, %c0_72] : memref<12x8x384xbf16, #tpu.memory_space<vmem>>, vector<1x8x384xbf16>
      %262 = vector.shape_cast %261 : vector<1x8x384xbf16> to vector<8x384xbf16>
      %263 = arith.truncf %250 : vector<8x128xf32> to vector<8x128xbf16>
      %cst_73 = arith.constant dense<0.000000e+00> : vector<8x384xf32>
      %264 = tpu.matmul %263, %6, %cst_73 {dimension_numbers = #tpu.dot_dimension_numbers<[1], [0], [0], [1], [0, 0, 1, 1], [], []>} : vector<8x128xbf16>, vector<128x384xbf16>, vector<8x384xf32> -> vector<8x384xf32>
      %265 = arith.extf %262 : vector<8x384xbf16> to vector<8x384xf32>
      %266 = vector.extract_strided_slice %265 {offsets = [0, 0], sizes = [8, 128], strides = [1, 1]} : vector<8x384xf32> to vector<8x128xf32>
      %267 = vector.extract_strided_slice %264 {offsets = [0, 0], sizes = [8, 128], strides = [1, 1]} : vector<8x384xf32> to vector<8x128xf32>
      %268 = arith.addf %266, %267 : vector<8x128xf32>
      %269 = arith.negf %268 : vector<8x128xf32>
      %270 = math.exp %269 : vector<8x128xf32>
      %cst_74 = arith.constant 1.000000e+00 : f32
      %271 = vector.broadcast %cst_74 : f32 to vector<8x128xf32>
      %272 = arith.addf %271, %270 : vector<8x128xf32>
      %273 = arith.divf %271, %272 : vector<8x128xf32>
      %274 = vector.extract_strided_slice %265 {offsets = [0, 128], sizes = [8, 128], strides = [1, 1]} : vector<8x384xf32> to vector<8x128xf32>
      %275 = vector.extract_strided_slice %264 {offsets = [0, 128], sizes = [8, 128], strides = [1, 1]} : vector<8x384xf32> to vector<8x128xf32>
      %276 = arith.addf %274, %275 : vector<8x128xf32>
      %277 = arith.negf %276 : vector<8x128xf32>
      %278 = math.exp %277 : vector<8x128xf32>
      %cst_75 = arith.constant 1.000000e+00 : f32
      %279 = vector.broadcast %cst_75 : f32 to vector<8x128xf32>
      %280 = arith.addf %279, %278 : vector<8x128xf32>
      %281 = arith.divf %279, %280 : vector<8x128xf32>
      %282 = vector.extract_strided_slice %265 {offsets = [0, 256], sizes = [8, 128], strides = [1, 1]} : vector<8x384xf32> to vector<8x128xf32>
      %283 = vector.extract_strided_slice %264 {offsets = [0, 256], sizes = [8, 128], strides = [1, 1]} : vector<8x384xf32> to vector<8x128xf32>
      %284 = arith.mulf %273, %283 : vector<8x128xf32>
      %285 = arith.addf %282, %284 : vector<8x128xf32>
      %286 = math.tanh %285 : vector<8x128xf32>
      %cst_76 = arith.constant 1.000000e+00 : f32
      %287 = vector.broadcast %cst_76 : f32 to vector<8x128xf32>
      %288 = arith.subf %287, %281 : vector<8x128xf32>
      %289 = arith.mulf %288, %286 : vector<8x128xf32>
      %290 = arith.mulf %281, %250 : vector<8x128xf32>
      %291 = arith.addf %289, %290 : vector<8x128xf32>
      %292 = vector.broadcast %259 : i32 to vector<8x1xi32>
      %293 = arith.cmpi slt, %292, %0 : vector<8x1xi32>
      %294 = vector.shape_cast %293 : vector<8x1xi1> to vector<8x1xi1>
      %295 = vector.broadcast %294 : vector<8x1xi1> to vector<8x128xi1>
      %296 = arith.select %295, %291, %250 : vector<8x128xi1>, vector<8x128xf32>
      %297 = arith.cmpi slt, %259, %1 : i32
      %cst_77 = arith.constant 0.000000e+00 : f32
      %cst_78 = arith.constant 0xFF800000 : f32
      %298 = arith.select %297, %cst_77, %cst_78 : f32
      %299 = vector.shape_cast %293 : vector<8x1xi1> to vector<8x1xi1>
      %300 = vector.broadcast %299 : vector<8x1xi1> to vector<8x128xi1>
      %301 = vector.broadcast %298 : f32 to vector<8x128xf32>
      %302 = arith.select %300, %291, %301 : vector<8x128xi1>, vector<8x128xf32>
      %303 = arith.maximumf %257, %302 : vector<8x128xf32>
      %c6_i32 = arith.constant 6 : i32
      %c11_i32_79 = arith.constant 11 : i32
      %304 = arith.subi %c11_i32_79, %c6_i32 : i32
      %305 = arith.addi %9, %304 : i32
      %306 = arith.index_cast %304 : i32 to index
      %c0_80 = arith.constant 0 : index
      %c0_81 = arith.constant 0 : index
      %307 = vector.load %arg12[%306, %c0_80, %c0_81] : memref<12x8x384xbf16, #tpu.memory_space<vmem>>, vector<1x8x384xbf16>
      %308 = vector.shape_cast %307 : vector<1x8x384xbf16> to vector<8x384xbf16>
      %309 = arith.truncf %296 : vector<8x128xf32> to vector<8x128xbf16>
      %cst_82 = arith.constant dense<0.000000e+00> : vector<8x384xf32>
      %310 = tpu.matmul %309, %6, %cst_82 {dimension_numbers = #tpu.dot_dimension_numbers<[1], [0], [0], [1], [0, 0, 1, 1], [], []>} : vector<8x128xbf16>, vector<128x384xbf16>, vector<8x384xf32> -> vector<8x384xf32>
      %311 = arith.extf %308 : vector<8x384xbf16> to vector<8x384xf32>
      %312 = vector.extract_strided_slice %311 {offsets = [0, 0], sizes = [8, 128], strides = [1, 1]} : vector<8x384xf32> to vector<8x128xf32>
      %313 = vector.extract_strided_slice %310 {offsets = [0, 0], sizes = [8, 128], strides = [1, 1]} : vector<8x384xf32> to vector<8x128xf32>
      %314 = arith.addf %312, %313 : vector<8x128xf32>
      %315 = arith.negf %314 : vector<8x128xf32>
      %316 = math.exp %315 : vector<8x128xf32>
      %cst_83 = arith.constant 1.000000e+00 : f32
      %317 = vector.broadcast %cst_83 : f32 to vector<8x128xf32>
      %318 = arith.addf %317, %316 : vector<8x128xf32>
      %319 = arith.divf %317, %318 : vector<8x128xf32>
      %320 = vector.extract_strided_slice %311 {offsets = [0, 128], sizes = [8, 128], strides = [1, 1]} : vector<8x384xf32> to vector<8x128xf32>
      %321 = vector.extract_strided_slice %310 {offsets = [0, 128], sizes = [8, 128], strides = [1, 1]} : vector<8x384xf32> to vector<8x128xf32>
      %322 = arith.addf %320, %321 : vector<8x128xf32>
      %323 = arith.negf %322 : vector<8x128xf32>
      %324 = math.exp %323 : vector<8x128xf32>
      %cst_84 = arith.constant 1.000000e+00 : f32
      %325 = vector.broadcast %cst_84 : f32 to vector<8x128xf32>
      %326 = arith.addf %325, %324 : vector<8x128xf32>
      %327 = arith.divf %325, %326 : vector<8x128xf32>
      %328 = vector.extract_strided_slice %311 {offsets = [0, 256], sizes = [8, 128], strides = [1, 1]} : vector<8x384xf32> to vector<8x128xf32>
      %329 = vector.extract_strided_slice %310 {offsets = [0, 256], sizes = [8, 128], strides = [1, 1]} : vector<8x384xf32> to vector<8x128xf32>
      %330 = arith.mulf %319, %329 : vector<8x128xf32>
      %331 = arith.addf %328, %330 : vector<8x128xf32>
      %332 = math.tanh %331 : vector<8x128xf32>
      %cst_85 = arith.constant 1.000000e+00 : f32
      %333 = vector.broadcast %cst_85 : f32 to vector<8x128xf32>
      %334 = arith.subf %333, %327 : vector<8x128xf32>
      %335 = arith.mulf %334, %332 : vector<8x128xf32>
      %336 = arith.mulf %327, %296 : vector<8x128xf32>
      %337 = arith.addf %335, %336 : vector<8x128xf32>
      %338 = vector.broadcast %305 : i32 to vector<8x1xi32>
      %339 = arith.cmpi slt, %338, %0 : vector<8x1xi32>
      %340 = vector.shape_cast %339 : vector<8x1xi1> to vector<8x1xi1>
      %341 = vector.broadcast %340 : vector<8x1xi1> to vector<8x128xi1>
      %342 = arith.select %341, %337, %296 : vector<8x128xi1>, vector<8x128xf32>
      %343 = arith.cmpi slt, %305, %1 : i32
      %cst_86 = arith.constant 0.000000e+00 : f32
      %cst_87 = arith.constant 0xFF800000 : f32
      %344 = arith.select %343, %cst_86, %cst_87 : f32
      %345 = vector.shape_cast %339 : vector<8x1xi1> to vector<8x1xi1>
      %346 = vector.broadcast %345 : vector<8x1xi1> to vector<8x128xi1>
      %347 = vector.broadcast %344 : f32 to vector<8x128xf32>
      %348 = arith.select %346, %337, %347 : vector<8x128xi1>, vector<8x128xf32>
      %349 = arith.maximumf %303, %348 : vector<8x128xf32>
      %c7_i32 = arith.constant 7 : i32
      %c11_i32_88 = arith.constant 11 : i32
      %350 = arith.subi %c11_i32_88, %c7_i32 : i32
      %351 = arith.addi %9, %350 : i32
      %352 = arith.index_cast %350 : i32 to index
      %c0_89 = arith.constant 0 : index
      %c0_90 = arith.constant 0 : index
      %353 = vector.load %arg12[%352, %c0_89, %c0_90] : memref<12x8x384xbf16, #tpu.memory_space<vmem>>, vector<1x8x384xbf16>
      %354 = vector.shape_cast %353 : vector<1x8x384xbf16> to vector<8x384xbf16>
      %355 = arith.truncf %342 : vector<8x128xf32> to vector<8x128xbf16>
      %cst_91 = arith.constant dense<0.000000e+00> : vector<8x384xf32>
      %356 = tpu.matmul %355, %6, %cst_91 {dimension_numbers = #tpu.dot_dimension_numbers<[1], [0], [0], [1], [0, 0, 1, 1], [], []>} : vector<8x128xbf16>, vector<128x384xbf16>, vector<8x384xf32> -> vector<8x384xf32>
      %357 = arith.extf %354 : vector<8x384xbf16> to vector<8x384xf32>
      %358 = vector.extract_strided_slice %357 {offsets = [0, 0], sizes = [8, 128], strides = [1, 1]} : vector<8x384xf32> to vector<8x128xf32>
      %359 = vector.extract_strided_slice %356 {offsets = [0, 0], sizes = [8, 128], strides = [1, 1]} : vector<8x384xf32> to vector<8x128xf32>
      %360 = arith.addf %358, %359 : vector<8x128xf32>
      %361 = arith.negf %360 : vector<8x128xf32>
      %362 = math.exp %361 : vector<8x128xf32>
      %cst_92 = arith.constant 1.000000e+00 : f32
      %363 = vector.broadcast %cst_92 : f32 to vector<8x128xf32>
      %364 = arith.addf %363, %362 : vector<8x128xf32>
      %365 = arith.divf %363, %364 : vector<8x128xf32>
      %366 = vector.extract_strided_slice %357 {offsets = [0, 128], sizes = [8, 128], strides = [1, 1]} : vector<8x384xf32> to vector<8x128xf32>
      %367 = vector.extract_strided_slice %356 {offsets = [0, 128], sizes = [8, 128], strides = [1, 1]} : vector<8x384xf32> to vector<8x128xf32>
      %368 = arith.addf %366, %367 : vector<8x128xf32>
      %369 = arith.negf %368 : vector<8x128xf32>
      %370 = math.exp %369 : vector<8x128xf32>
      %cst_93 = arith.constant 1.000000e+00 : f32
      %371 = vector.broadcast %cst_93 : f32 to vector<8x128xf32>
      %372 = arith.addf %371, %370 : vector<8x128xf32>
      %373 = arith.divf %371, %372 : vector<8x128xf32>
      %374 = vector.extract_strided_slice %357 {offsets = [0, 256], sizes = [8, 128], strides = [1, 1]} : vector<8x384xf32> to vector<8x128xf32>
      %375 = vector.extract_strided_slice %356 {offsets = [0, 256], sizes = [8, 128], strides = [1, 1]} : vector<8x384xf32> to vector<8x128xf32>
      %376 = arith.mulf %365, %375 : vector<8x128xf32>
      %377 = arith.addf %374, %376 : vector<8x128xf32>
      %378 = math.tanh %377 : vector<8x128xf32>
      %cst_94 = arith.constant 1.000000e+00 : f32
      %379 = vector.broadcast %cst_94 : f32 to vector<8x128xf32>
      %380 = arith.subf %379, %373 : vector<8x128xf32>
      %381 = arith.mulf %380, %378 : vector<8x128xf32>
      %382 = arith.mulf %373, %342 : vector<8x128xf32>
      %383 = arith.addf %381, %382 : vector<8x128xf32>
      %384 = vector.broadcast %351 : i32 to vector<8x1xi32>
      %385 = arith.cmpi slt, %384, %0 : vector<8x1xi32>
      %386 = vector.shape_cast %385 : vector<8x1xi1> to vector<8x1xi1>
      %387 = vector.broadcast %386 : vector<8x1xi1> to vector<8x128xi1>
      %388 = arith.select %387, %383, %342 : vector<8x128xi1>, vector<8x128xf32>
      %389 = arith.cmpi slt, %351, %1 : i32
      %cst_95 = arith.constant 0.000000e+00 : f32
      %cst_96 = arith.constant 0xFF800000 : f32
      %390 = arith.select %389, %cst_95, %cst_96 : f32
      %391 = vector.shape_cast %385 : vector<8x1xi1> to vector<8x1xi1>
      %392 = vector.broadcast %391 : vector<8x1xi1> to vector<8x128xi1>
      %393 = vector.broadcast %390 : f32 to vector<8x128xf32>
      %394 = arith.select %392, %383, %393 : vector<8x128xi1>, vector<8x128xf32>
      %395 = arith.maximumf %349, %394 : vector<8x128xf32>
      %c8_i32 = arith.constant 8 : i32
      %c11_i32_97 = arith.constant 11 : i32
      %396 = arith.subi %c11_i32_97, %c8_i32 : i32
      %397 = arith.addi %9, %396 : i32
      %398 = arith.index_cast %396 : i32 to index
      %c0_98 = arith.constant 0 : index
      %c0_99 = arith.constant 0 : index
      %399 = vector.load %arg12[%398, %c0_98, %c0_99] : memref<12x8x384xbf16, #tpu.memory_space<vmem>>, vector<1x8x384xbf16>
      %400 = vector.shape_cast %399 : vector<1x8x384xbf16> to vector<8x384xbf16>
      %401 = arith.truncf %388 : vector<8x128xf32> to vector<8x128xbf16>
      %cst_100 = arith.constant dense<0.000000e+00> : vector<8x384xf32>
      %402 = tpu.matmul %401, %6, %cst_100 {dimension_numbers = #tpu.dot_dimension_numbers<[1], [0], [0], [1], [0, 0, 1, 1], [], []>} : vector<8x128xbf16>, vector<128x384xbf16>, vector<8x384xf32> -> vector<8x384xf32>
      %403 = arith.extf %400 : vector<8x384xbf16> to vector<8x384xf32>
      %404 = vector.extract_strided_slice %403 {offsets = [0, 0], sizes = [8, 128], strides = [1, 1]} : vector<8x384xf32> to vector<8x128xf32>
      %405 = vector.extract_strided_slice %402 {offsets = [0, 0], sizes = [8, 128], strides = [1, 1]} : vector<8x384xf32> to vector<8x128xf32>
      %406 = arith.addf %404, %405 : vector<8x128xf32>
      %407 = arith.negf %406 : vector<8x128xf32>
      %408 = math.exp %407 : vector<8x128xf32>
      %cst_101 = arith.constant 1.000000e+00 : f32
      %409 = vector.broadcast %cst_101 : f32 to vector<8x128xf32>
      %410 = arith.addf %409, %408 : vector<8x128xf32>
      %411 = arith.divf %409, %410 : vector<8x128xf32>
      %412 = vector.extract_strided_slice %403 {offsets = [0, 128], sizes = [8, 128], strides = [1, 1]} : vector<8x384xf32> to vector<8x128xf32>
      %413 = vector.extract_strided_slice %402 {offsets = [0, 128], sizes = [8, 128], strides = [1, 1]} : vector<8x384xf32> to vector<8x128xf32>
      %414 = arith.addf %412, %413 : vector<8x128xf32>
      %415 = arith.negf %414 : vector<8x128xf32>
      %416 = math.exp %415 : vector<8x128xf32>
      %cst_102 = arith.constant 1.000000e+00 : f32
      %417 = vector.broadcast %cst_102 : f32 to vector<8x128xf32>
      %418 = arith.addf %417, %416 : vector<8x128xf32>
      %419 = arith.divf %417, %418 : vector<8x128xf32>
      %420 = vector.extract_strided_slice %403 {offsets = [0, 256], sizes = [8, 128], strides = [1, 1]} : vector<8x384xf32> to vector<8x128xf32>
      %421 = vector.extract_strided_slice %402 {offsets = [0, 256], sizes = [8, 128], strides = [1, 1]} : vector<8x384xf32> to vector<8x128xf32>
      %422 = arith.mulf %411, %421 : vector<8x128xf32>
      %423 = arith.addf %420, %422 : vector<8x128xf32>
      %424 = math.tanh %423 : vector<8x128xf32>
      %cst_103 = arith.constant 1.000000e+00 : f32
      %425 = vector.broadcast %cst_103 : f32 to vector<8x128xf32>
      %426 = arith.subf %425, %419 : vector<8x128xf32>
      %427 = arith.mulf %426, %424 : vector<8x128xf32>
      %428 = arith.mulf %419, %388 : vector<8x128xf32>
      %429 = arith.addf %427, %428 : vector<8x128xf32>
      %430 = vector.broadcast %397 : i32 to vector<8x1xi32>
      %431 = arith.cmpi slt, %430, %0 : vector<8x1xi32>
      %432 = vector.shape_cast %431 : vector<8x1xi1> to vector<8x1xi1>
      %433 = vector.broadcast %432 : vector<8x1xi1> to vector<8x128xi1>
      %434 = arith.select %433, %429, %388 : vector<8x128xi1>, vector<8x128xf32>
      %435 = arith.cmpi slt, %397, %1 : i32
      %cst_104 = arith.constant 0.000000e+00 : f32
      %cst_105 = arith.constant 0xFF800000 : f32
      %436 = arith.select %435, %cst_104, %cst_105 : f32
      %437 = vector.shape_cast %431 : vector<8x1xi1> to vector<8x1xi1>
      %438 = vector.broadcast %437 : vector<8x1xi1> to vector<8x128xi1>
      %439 = vector.broadcast %436 : f32 to vector<8x128xf32>
      %440 = arith.select %438, %429, %439 : vector<8x128xi1>, vector<8x128xf32>
      %441 = arith.maximumf %395, %440 : vector<8x128xf32>
      %c9_i32 = arith.constant 9 : i32
      %c11_i32_106 = arith.constant 11 : i32
      %442 = arith.subi %c11_i32_106, %c9_i32 : i32
      %443 = arith.addi %9, %442 : i32
      %444 = arith.index_cast %442 : i32 to index
      %c0_107 = arith.constant 0 : index
      %c0_108 = arith.constant 0 : index
      %445 = vector.load %arg12[%444, %c0_107, %c0_108] : memref<12x8x384xbf16, #tpu.memory_space<vmem>>, vector<1x8x384xbf16>
      %446 = vector.shape_cast %445 : vector<1x8x384xbf16> to vector<8x384xbf16>
      %447 = arith.truncf %434 : vector<8x128xf32> to vector<8x128xbf16>
      %cst_109 = arith.constant dense<0.000000e+00> : vector<8x384xf32>
      %448 = tpu.matmul %447, %6, %cst_109 {dimension_numbers = #tpu.dot_dimension_numbers<[1], [0], [0], [1], [0, 0, 1, 1], [], []>} : vector<8x128xbf16>, vector<128x384xbf16>, vector<8x384xf32> -> vector<8x384xf32>
      %449 = arith.extf %446 : vector<8x384xbf16> to vector<8x384xf32>
      %450 = vector.extract_strided_slice %449 {offsets = [0, 0], sizes = [8, 128], strides = [1, 1]} : vector<8x384xf32> to vector<8x128xf32>
      %451 = vector.extract_strided_slice %448 {offsets = [0, 0], sizes = [8, 128], strides = [1, 1]} : vector<8x384xf32> to vector<8x128xf32>
      %452 = arith.addf %450, %451 : vector<8x128xf32>
      %453 = arith.negf %452 : vector<8x128xf32>
      %454 = math.exp %453 : vector<8x128xf32>
      %cst_110 = arith.constant 1.000000e+00 : f32
      %455 = vector.broadcast %cst_110 : f32 to vector<8x128xf32>
      %456 = arith.addf %455, %454 : vector<8x128xf32>
      %457 = arith.divf %455, %456 : vector<8x128xf32>
      %458 = vector.extract_strided_slice %449 {offsets = [0, 128], sizes = [8, 128], strides = [1, 1]} : vector<8x384xf32> to vector<8x128xf32>
      %459 = vector.extract_strided_slice %448 {offsets = [0, 128], sizes = [8, 128], strides = [1, 1]} : vector<8x384xf32> to vector<8x128xf32>
      %460 = arith.addf %458, %459 : vector<8x128xf32>
      %461 = arith.negf %460 : vector<8x128xf32>
      %462 = math.exp %461 : vector<8x128xf32>
      %cst_111 = arith.constant 1.000000e+00 : f32
      %463 = vector.broadcast %cst_111 : f32 to vector<8x128xf32>
      %464 = arith.addf %463, %462 : vector<8x128xf32>
      %465 = arith.divf %463, %464 : vector<8x128xf32>
      %466 = vector.extract_strided_slice %449 {offsets = [0, 256], sizes = [8, 128], strides = [1, 1]} : vector<8x384xf32> to vector<8x128xf32>
      %467 = vector.extract_strided_slice %448 {offsets = [0, 256], sizes = [8, 128], strides = [1, 1]} : vector<8x384xf32> to vector<8x128xf32>
      %468 = arith.mulf %457, %467 : vector<8x128xf32>
      %469 = arith.addf %466, %468 : vector<8x128xf32>
      %470 = math.tanh %469 : vector<8x128xf32>
      %cst_112 = arith.constant 1.000000e+00 : f32
      %471 = vector.broadcast %cst_112 : f32 to vector<8x128xf32>
      %472 = arith.subf %471, %465 : vector<8x128xf32>
      %473 = arith.mulf %472, %470 : vector<8x128xf32>
      %474 = arith.mulf %465, %434 : vector<8x128xf32>
      %475 = arith.addf %473, %474 : vector<8x128xf32>
      %476 = vector.broadcast %443 : i32 to vector<8x1xi32>
      %477 = arith.cmpi slt, %476, %0 : vector<8x1xi32>
      %478 = vector.shape_cast %477 : vector<8x1xi1> to vector<8x1xi1>
      %479 = vector.broadcast %478 : vector<8x1xi1> to vector<8x128xi1>
      %480 = arith.select %479, %475, %434 : vector<8x128xi1>, vector<8x128xf32>
      %481 = arith.cmpi slt, %443, %1 : i32
      %cst_113 = arith.constant 0.000000e+00 : f32
      %cst_114 = arith.constant 0xFF800000 : f32
      %482 = arith.select %481, %cst_113, %cst_114 : f32
      %483 = vector.shape_cast %477 : vector<8x1xi1> to vector<8x1xi1>
      %484 = vector.broadcast %483 : vector<8x1xi1> to vector<8x128xi1>
      %485 = vector.broadcast %482 : f32 to vector<8x128xf32>
      %486 = arith.select %484, %475, %485 : vector<8x128xi1>, vector<8x128xf32>
      %487 = arith.maximumf %441, %486 : vector<8x128xf32>
      %c10_i32 = arith.constant 10 : i32
      %c11_i32_115 = arith.constant 11 : i32
      %488 = arith.subi %c11_i32_115, %c10_i32 : i32
      %489 = arith.addi %9, %488 : i32
      %490 = arith.index_cast %488 : i32 to index
      %c0_116 = arith.constant 0 : index
      %c0_117 = arith.constant 0 : index
      %491 = vector.load %arg12[%490, %c0_116, %c0_117] : memref<12x8x384xbf16, #tpu.memory_space<vmem>>, vector<1x8x384xbf16>
      %492 = vector.shape_cast %491 : vector<1x8x384xbf16> to vector<8x384xbf16>
      %493 = arith.truncf %480 : vector<8x128xf32> to vector<8x128xbf16>
      %cst_118 = arith.constant dense<0.000000e+00> : vector<8x384xf32>
      %494 = tpu.matmul %493, %6, %cst_118 {dimension_numbers = #tpu.dot_dimension_numbers<[1], [0], [0], [1], [0, 0, 1, 1], [], []>} : vector<8x128xbf16>, vector<128x384xbf16>, vector<8x384xf32> -> vector<8x384xf32>
      %495 = arith.extf %492 : vector<8x384xbf16> to vector<8x384xf32>
      %496 = vector.extract_strided_slice %495 {offsets = [0, 0], sizes = [8, 128], strides = [1, 1]} : vector<8x384xf32> to vector<8x128xf32>
      %497 = vector.extract_strided_slice %494 {offsets = [0, 0], sizes = [8, 128], strides = [1, 1]} : vector<8x384xf32> to vector<8x128xf32>
      %498 = arith.addf %496, %497 : vector<8x128xf32>
      %499 = arith.negf %498 : vector<8x128xf32>
      %500 = math.exp %499 : vector<8x128xf32>
      %cst_119 = arith.constant 1.000000e+00 : f32
      %501 = vector.broadcast %cst_119 : f32 to vector<8x128xf32>
      %502 = arith.addf %501, %500 : vector<8x128xf32>
      %503 = arith.divf %501, %502 : vector<8x128xf32>
      %504 = vector.extract_strided_slice %495 {offsets = [0, 128], sizes = [8, 128], strides = [1, 1]} : vector<8x384xf32> to vector<8x128xf32>
      %505 = vector.extract_strided_slice %494 {offsets = [0, 128], sizes = [8, 128], strides = [1, 1]} : vector<8x384xf32> to vector<8x128xf32>
      %506 = arith.addf %504, %505 : vector<8x128xf32>
      %507 = arith.negf %506 : vector<8x128xf32>
      %508 = math.exp %507 : vector<8x128xf32>
      %cst_120 = arith.constant 1.000000e+00 : f32
      %509 = vector.broadcast %cst_120 : f32 to vector<8x128xf32>
      %510 = arith.addf %509, %508 : vector<8x128xf32>
      %511 = arith.divf %509, %510 : vector<8x128xf32>
      %512 = vector.extract_strided_slice %495 {offsets = [0, 256], sizes = [8, 128], strides = [1, 1]} : vector<8x384xf32> to vector<8x128xf32>
      %513 = vector.extract_strided_slice %494 {offsets = [0, 256], sizes = [8, 128], strides = [1, 1]} : vector<8x384xf32> to vector<8x128xf32>
      %514 = arith.mulf %503, %513 : vector<8x128xf32>
      %515 = arith.addf %512, %514 : vector<8x128xf32>
      %516 = math.tanh %515 : vector<8x128xf32>
      %cst_121 = arith.constant 1.000000e+00 : f32
      %517 = vector.broadcast %cst_121 : f32 to vector<8x128xf32>
      %518 = arith.subf %517, %511 : vector<8x128xf32>
      %519 = arith.mulf %518, %516 : vector<8x128xf32>
      %520 = arith.mulf %511, %480 : vector<8x128xf32>
      %521 = arith.addf %519, %520 : vector<8x128xf32>
      %522 = vector.broadcast %489 : i32 to vector<8x1xi32>
      %523 = arith.cmpi slt, %522, %0 : vector<8x1xi32>
      %524 = vector.shape_cast %523 : vector<8x1xi1> to vector<8x1xi1>
      %525 = vector.broadcast %524 : vector<8x1xi1> to vector<8x128xi1>
      %526 = arith.select %525, %521, %480 : vector<8x128xi1>, vector<8x128xf32>
      %527 = arith.cmpi slt, %489, %1 : i32
      %cst_122 = arith.constant 0.000000e+00 : f32
      %cst_123 = arith.constant 0xFF800000 : f32
      %528 = arith.select %527, %cst_122, %cst_123 : f32
      %529 = vector.shape_cast %523 : vector<8x1xi1> to vector<8x1xi1>
      %530 = vector.broadcast %529 : vector<8x1xi1> to vector<8x128xi1>
      %531 = vector.broadcast %528 : f32 to vector<8x128xf32>
      %532 = arith.select %530, %521, %531 : vector<8x128xi1>, vector<8x128xf32>
      %533 = arith.maximumf %487, %532 : vector<8x128xf32>
      %c11_i32_124 = arith.constant 11 : i32
      %c11_i32_125 = arith.constant 11 : i32
      %534 = arith.subi %c11_i32_125, %c11_i32_124 : i32
      %535 = arith.addi %9, %534 : i32
      %536 = arith.index_cast %534 : i32 to index
      %c0_126 = arith.constant 0 : index
      %c0_127 = arith.constant 0 : index
      %537 = vector.load %arg12[%536, %c0_126, %c0_127] : memref<12x8x384xbf16, #tpu.memory_space<vmem>>, vector<1x8x384xbf16>
      %538 = vector.shape_cast %537 : vector<1x8x384xbf16> to vector<8x384xbf16>
      %539 = arith.truncf %526 : vector<8x128xf32> to vector<8x128xbf16>
      %cst_128 = arith.constant dense<0.000000e+00> : vector<8x384xf32>
      %540 = tpu.matmul %539, %6, %cst_128 {dimension_numbers = #tpu.dot_dimension_numbers<[1], [0], [0], [1], [0, 0, 1, 1], [], []>} : vector<8x128xbf16>, vector<128x384xbf16>, vector<8x384xf32> -> vector<8x384xf32>
      %541 = arith.extf %538 : vector<8x384xbf16> to vector<8x384xf32>
      %542 = vector.extract_strided_slice %541 {offsets = [0, 0], sizes = [8, 128], strides = [1, 1]} : vector<8x384xf32> to vector<8x128xf32>
      %543 = vector.extract_strided_slice %540 {offsets = [0, 0], sizes = [8, 128], strides = [1, 1]} : vector<8x384xf32> to vector<8x128xf32>
      %544 = arith.addf %542, %543 : vector<8x128xf32>
      %545 = arith.negf %544 : vector<8x128xf32>
      %546 = math.exp %545 : vector<8x128xf32>
      %cst_129 = arith.constant 1.000000e+00 : f32
      %547 = vector.broadcast %cst_129 : f32 to vector<8x128xf32>
      %548 = arith.addf %547, %546 : vector<8x128xf32>
      %549 = arith.divf %547, %548 : vector<8x128xf32>
      %550 = vector.extract_strided_slice %541 {offsets = [0, 128], sizes = [8, 128], strides = [1, 1]} : vector<8x384xf32> to vector<8x128xf32>
      %551 = vector.extract_strided_slice %540 {offsets = [0, 128], sizes = [8, 128], strides = [1, 1]} : vector<8x384xf32> to vector<8x128xf32>
      %552 = arith.addf %550, %551 : vector<8x128xf32>
      %553 = arith.negf %552 : vector<8x128xf32>
      %554 = math.exp %553 : vector<8x128xf32>
      %cst_130 = arith.constant 1.000000e+00 : f32
      %555 = vector.broadcast %cst_130 : f32 to vector<8x128xf32>
      %556 = arith.addf %555, %554 : vector<8x128xf32>
      %557 = arith.divf %555, %556 : vector<8x128xf32>
      %558 = vector.extract_strided_slice %541 {offsets = [0, 256], sizes = [8, 128], strides = [1, 1]} : vector<8x384xf32> to vector<8x128xf32>
      %559 = vector.extract_strided_slice %540 {offsets = [0, 256], sizes = [8, 128], strides = [1, 1]} : vector<8x384xf32> to vector<8x128xf32>
      %560 = arith.mulf %549, %559 : vector<8x128xf32>
      %561 = arith.addf %558, %560 : vector<8x128xf32>
      %562 = math.tanh %561 : vector<8x128xf32>
      %cst_131 = arith.constant 1.000000e+00 : f32
      %563 = vector.broadcast %cst_131 : f32 to vector<8x128xf32>
      %564 = arith.subf %563, %557 : vector<8x128xf32>
      %565 = arith.mulf %564, %562 : vector<8x128xf32>
      %566 = arith.mulf %557, %526 : vector<8x128xf32>
      %567 = arith.addf %565, %566 : vector<8x128xf32>
      %568 = vector.broadcast %535 : i32 to vector<8x1xi32>
      %569 = arith.cmpi slt, %568, %0 : vector<8x1xi32>
      %570 = vector.shape_cast %569 : vector<8x1xi1> to vector<8x1xi1>
      %571 = vector.broadcast %570 : vector<8x1xi1> to vector<8x128xi1>
      %572 = arith.select %571, %567, %526 : vector<8x128xi1>, vector<8x128xf32>
      %573 = arith.cmpi slt, %535, %1 : i32
      %cst_132 = arith.constant 0.000000e+00 : f32
      %cst_133 = arith.constant 0xFF800000 : f32
      %574 = arith.select %573, %cst_132, %cst_133 : f32
      %575 = vector.shape_cast %569 : vector<8x1xi1> to vector<8x1xi1>
      %576 = vector.broadcast %575 : vector<8x1xi1> to vector<8x128xi1>
      %577 = vector.broadcast %574 : f32 to vector<8x128xf32>
      %578 = arith.select %576, %567, %577 : vector<8x128xi1>, vector<8x128xf32>
      %579 = arith.maximumf %533, %578 : vector<8x128xf32>
      %c12_i32_134 = arith.constant 12 : i32
      %c0_135 = arith.constant 0 : index
      %c0_136 = arith.constant 0 : index
      %580 = vector.load %arg14[%c0_135, %c0_136] : memref<8x128xf32, #tpu.memory_space<vmem>>, vector<8x128xf32>
      tpu.vector_store %arg14[%c0_135, %c0_136], %572 {strides = array<i32>} : memref<8x128xf32, #tpu.memory_space<vmem>>, vector<8x128xf32>,
      %c0_137 = arith.constant 0 : index
      %c0_138 = arith.constant 0 : index
      %581 = vector.load %arg16[%c0_137, %c0_138] : memref<8x128xf32, #tpu.memory_space<vmem>>, vector<8x128xf32>
      tpu.vector_store %arg16[%c0_137, %c0_138], %579 {strides = array<i32>} : memref<8x128xf32, #tpu.memory_space<vmem>>, vector<8x128xf32>,
    } else {
    }
    %c0_i32_11 = arith.constant 0 : i32
    %16 = arith.cmpi eq, %arg1, %c0_i32_11 : i32
    %17 = arith.extui %16 : i1 to i32
    %c0_i32_12 = arith.constant 0 : i32
    %18 = arith.cmpi ne, %17, %c0_i32_12 : i32
    scf.if %18 {
      %c0_13 = arith.constant 0 : index
      %c0_14 = arith.constant 0 : index
      %19 = vector.load %arg15[%c0_13, %c0_14] : memref<8x128xf32, #tpu.memory_space<vmem>>, vector<8x128xf32>
      %c0_15 = arith.constant 0 : index
      %c0_16 = arith.constant 0 : index
      %20 = vector.load %arg10[%c0_15, %c0_16] : memref<8x256xf32, #tpu.memory_space<vmem>>, vector<8x128xf32>
      tpu.vector_store %arg10[%c0_15, %c0_16], %19 {strides = array<i32>} : memref<8x256xf32, #tpu.memory_space<vmem>>, vector<8x128xf32>,
      %c0_17 = arith.constant 0 : index
      %c0_18 = arith.constant 0 : index
      %21 = vector.load %arg16[%c0_17, %c0_18] : memref<8x128xf32, #tpu.memory_space<vmem>>, vector<8x128xf32>
      %c0_19 = arith.constant 0 : index
      %c128 = arith.constant 128 : index
      %22 = vector.load %arg10[%c0_19, %c128] : memref<8x256xf32, #tpu.memory_space<vmem>>, vector<8x128xf32>
      tpu.vector_store %arg10[%c0_19, %c128], %21 {strides = array<i32>} : memref<8x256xf32, #tpu.memory_space<vmem>>, vector<8x128xf32>,
    } else {
    }
    return
  }
  func.func @transform_0(%arg0: i32, %arg1: i32, %arg2: memref<1xi32, #tpu.memory_space<smem>>) -> (i32, i32, i32) {
    %c0_i32 = arith.constant 0 : i32
    %c0_i32_0 = arith.constant 0 : i32
    return %arg1, %arg0, %c0_i32 : i32, i32, i32
  }
  func.func @transform_1(%arg0: i32, %arg1: i32, %arg2: memref<1xi32, #tpu.memory_space<smem>>) -> (i32, i32, i32) {
    %c0_i32 = arith.constant 0 : i32
    %0 = arith.subi %c0_i32, %arg1 : i32
    %c0_i32_0 = arith.constant 0 : i32
    %c0_i32_1 = arith.constant 0 : i32
    return %0, %arg0, %c0_i32_0 : i32, i32, i32
  }
  func.func @transform_2(%arg0: i32, %arg1: i32, %arg2: memref<1xi32, #tpu.memory_space<smem>>) -> (i32, i32) {
    %c0_i32 = arith.constant 0 : i32
    %c0_i32_0 = arith.constant 0 : i32
    return %arg0, %c0_i32 : i32, i32
  }
  func.func @transform_3(%arg0: i32, %arg1: i32, %arg2: memref<1xi32, #tpu.memory_space<smem>>) -> (i32, i32) {
    %c0_i32 = arith.constant 0 : i32
    %c0_i32_0 = arith.constant 0 : i32
    %c0_i32_1 = arith.constant 0 : i32
    return %c0_i32, %c0_i32_0 : i32, i32
  }
  func.func @transform_4(%arg0: i32, %arg1: i32, %arg2: memref<1xi32, #tpu.memory_space<smem>>) -> (i32, i32) {
    %c0_i32 = arith.constant 0 : i32
    %c0_i32_0 = arith.constant 0 : i32
    %c0_i32_1 = arith.constant 0 : i32
    return %c0_i32, %c0_i32_0 : i32, i32
  }
  func.func @transform_5(%arg0: i32, %arg1: i32, %arg2: memref<1xi32, #tpu.memory_space<smem>>) -> (i32, i32) {
    %c0_i32 = arith.constant 0 : i32
    %c0_i32_0 = arith.constant 0 : i32
    %c0_i32_1 = arith.constant 0 : i32
    return %c0_i32, %c0_i32_0 : i32, i32
  }
  func.func @transform_6(%arg0: i32, %arg1: i32, %arg2: memref<1xi32, #tpu.memory_space<smem>>) -> (i32, i32) {
    %c0_i32 = arith.constant 0 : i32
    %c0_i32_0 = arith.constant 0 : i32
    %c0_i32_1 = arith.constant 0 : i32
    return %c0_i32, %c0_i32_0 : i32, i32
  }
  func.func @transform_7(%arg0: i32, %arg1: i32, %arg2: memref<1xi32, #tpu.memory_space<smem>>) -> (i32, i32) {
    %c0_i32 = arith.constant 0 : i32
    %c0_i32_0 = arith.constant 0 : i32
    return %arg0, %c0_i32 : i32, i32
  }
}

</mosaic_0001>

<bundles_post_ra>
// kernel: tpu_custom_call.1
= control target key start
LH: loop header
LB: loop body
LE: loop exit
PB: predicated region body
PF: predicated region fallthrough
CT: control target
= control target key end

     0   :  { %s8600_s0 = inlined_call_operand.<no memory space> [shape: s32[1], index: 0, kind: input, shape index: {}]   ;;  %s8601_s1 = inlined_call_operand.hbm [shape: bf16[12,16,32], index: 1, kind: input, shape index: {}]   ;;  %s8602_s2 = inlined_call_operand.hbm [shape: bf16[12,16,32], index: 2, kind: input, shape index: {}]   ;;  %s8603_s3 = inlined_call_operand.vmem [shape: s32[16,1], index: 3, kind: input, shape index: {}]   ;;  %s8604_s4 = inlined_call_operand.hbm [shape: bf16[32,384], index: 4, kind: input, shape index: {}]   ;;  %s8605_s5 = inlined_call_operand.hbm [shape: bf16[32,384], index: 5, kind: input, shape index: {}]   ;;  %s8606_s6 = inlined_call_operand.hbm [shape: bf16[128,384], index: 6, kind: input, shape index: {}]   ;;  %s8607_s7 = inlined_call_operand.hbm [shape: bf16[128,384], index: 7, kind: input, shape index: {}]   ;;  %s8608_s8 = inlined_call_operand.hbm [shape: f32[16,256], index: 8, kind: output, shape index: {}]  }
   0x1   :  { %8631 = sst [smem:[#allocation53_spill]] %s8601_s1 }
   0x2   :  { %8632 = sst [smem:[#allocation54_spill]] %s8604_s4 }
   0x3   :  { %8633 = sst [smem:[#allocation55_spill]] %s8605_s5 }
   0x4   :  { %8634 = sst [smem:[#allocation56_spill]] %s8606_s6 }
   0x5   :  { %8635 = sst [smem:[#allocation57_spill]] %s8608_s8 }
   0x6   :  { %13 = sst [smem:[#allocation9]] %s8600_s0 }
   0x7   :  { %14 = vsyncpa [#allocation11], 0 }
   0x8   :  { %16 = vsyncpa [#allocation11 + $0x1], 0 }
   0x9   :  { %17 = vsyncpa [#allocation14], 0 }
   0xa   :  { %19 = vsyncpa [#allocation14 + $0x1], 0 }
   0xb   :  { %20 = vsyncpa [#allocation17], 0 }
   0xc   :  { %21 = vsyncpa [#allocation20], 0 }
   0xd   :  { %22 = vsyncpa [#allocation12], 0 }
   0xe   :  { %24 = vsyncpa [#allocation12 + $0x1], 0  ;;  %s6621_s29 = smov 0   ;;  %s6623_s30 = smov 0  }
   0xf   :  { %s6625_s9 = smov 0   ;;  %s6627_s10 = smov 0  }
  0x10   :  { %s6629_s11 = smov 0   ;;  %s6631_s12 = smov 0  }
  0x11 LB: > { %8636 = sst [smem:[#allocation28_spill]] %s6531_s29  ;;  %s6652_s0 = sadd.s32 4294967295, %s6551_s12   ;;  %s6551_s12 = sphi %s6631_s12, %s30_s12   ;;  %s6547_s11 = sphi %s6629_s11, %s8715_s11   ;;  %s6543_s10 = sphi %s6627_s10, %s8714_s10   ;;  %s6539_s9 = sphi %s6625_s9, %s8713_s9   ;;  %s6535_s30 = sphi %s6623_s30, %s8712_s30   ;;  %s6531_s29 = sphi %s6621_s29, %s8711_s29  }
  0x12   : > { %s4820_s13 = sadd.s32 4294967294, %s6551_s12   ;;  %p64_p0 = scmp.ne.s32.totalorder %s6535_s30, %s6531_s29 }
  0x13   : > { %p8609_p1 = scmp.eq.s32.totalorder %s6652_s0, 0  ;;  %p234_p3 = scmp.eq.s32.totalorder %s4820_s13, 1 }
  0x14   : > { %p4821_p5 = scmp.ge.s32.totalorder %s6551_s12, 1  ;;  %p241_p7 = scmp.lt.s32.totalorder %s6551_s12, 3 }
  0x15   : > { %p6661_p4 = por %p8609_p1, %p64_p0  ;;  %p6666_p6 = por %p234_p3, %p64_p0 }
  0x16   : > { %p6671_p8 = pnand %p4821_p5, %p241_p7  ;;  %s6553_s17 = smov [#allocation15]  }
  0x17   : > { %s8637_s14 = scalar_select %p6661_p4, 1, 0 }
  0x18   : > { %s8638_s15 = scalar_select %p6666_p6, 1, 0 }
  0x19   : > { %s8640_s16 = scalar_select %p6671_p8, 1, 0 }
  0x1a   : > { %8639 = sst [smem:[#allocation29_spill]] %s8638_s15  ;;  %s253_s18 = sshll.u32 %s6553_s17, 4  ;;  %s6675_s18 = int_to_ptr.vmem [resolvable:$true] %s253_s18 }
  0x1b   : > { %p5909_p9 = pneg %p6671_p8  ;;  %s6554_s20 = smov [#allocation16]  }
  0x1c   : > { %s266_s21 = sshll.u32 %s6554_s20, 4  ;;  %s6555_s22 = smov [#allocation18]   ;;  %s6686_s21 = int_to_ptr.vmem [resolvable:$true] %s266_s21 }
  0x1d   : > { %p6682_p11 = pnand %p5909_p9, %p8609_p1  ;;  %s6688_s23 = sshll.u32 %s6555_s22, 4  ;;  %s280_s23 = int_to_ptr.vmem [resolvable:$true] %s6688_s23 }
  0x1e   : > { %s8642_s4 = sld [smem:[#allocation54_spill]] }
  0x1f   : > { %p6698_p13 = pneg %p6682_p11 }
  0x24   : > { %s6281_s26 = scalar_lea.hbm %s8642_s4, 768 }
  0x25   : > { %p6282_p12 = scmp.ne.s32.totalorder %s8642_s4, %s6281_s26  ;;  %p6288_p5 = scmp.lt.u32.totalorder %s6281_s26, %s8642_s4 }
  0x27   : > { %p6284_p0 = pnand %p6698_p13, %p6282_p12 }
  0x29   : > { %p6285_p3 = pneg %p6284_p0 }
  0x2b   : > { %p6290_p7 = pnand %p6288_p5, %p6285_p3 }
  0x2d   : > { %6293 = shalt.err (!%p6290_p7)
}
  0x2e   : > { %s6294_s22 = scalar_lea.vmem %s6675_s18, 768  ;;  %p6302_p2 = scmp.lt.s32.totalorder %s6675_s18, %s6675_s18 }
  0x2f   : > { %p6295_p9 = scmp.ne.s32.totalorder %s6675_s18, %s6294_s22  ;;  %p6303_p6 = scmp.lt.s32.totalorder %s6294_s22, %s6294_s22 }
  0x31   : > { %p6297_p10 = pnand %p6295_p9, %p6698_p13  ;;  %p6304_p12 = por %p6303_p6, %p6302_p2 }
  0x33   : > { %p6298_p1 = pneg %p6297_p10 }
  0x35   : > { %p6305_p0 = pnand %p6304_p12, %p6298_p1 }
  0x37   : > { %6308 = shalt.err (!%p6305_p0)
}
  0x38   : > { %s6556_s24 = smov 192   ;;  %s6557_s25 = smov 12  }
  0x39   : > { %5912 = dma.hbm_to_vmem [thread:$0]  (!%p6682_p11), %s8642_s4, 768, %s6675_s18, [#allocation14], %s6556_s24, %s6556_s24, %s6557_s25  }
  0x3a   : > { %s8644_s5 = sld [smem:[#allocation55_spill]] }
  0x40   : > { %s6309_s20 = scalar_lea.hbm %s8644_s5, 768 }
  0x41   : > { %p6310_p1 = scmp.ne.s32.totalorder %s8644_s5, %s6309_s20  ;;  %p6316_p10 = scmp.lt.u32.totalorder %s6309_s20, %s8644_s5 }
  0x43   : > { %p6312_p2 = pnand %p6310_p1, %p6698_p13 }
  0x45   : > { %p6313_p6 = pneg %p6312_p2 }
  0x47   : > { %p6318_p3 = pnand %p6316_p10, %p6313_p6 }
  0x49   : > { %6321 = shalt.err (!%p6318_p3)
}
  0x4a   : > { %s6322_s18 = scalar_lea.vmem %s6686_s21, 768  ;;  %p6330_p12 = scmp.lt.s32.totalorder %s6686_s21, %s6686_s21 }
  0x4b   : > { %p6323_p5 = scmp.ne.s32.totalorder %s6686_s21, %s6322_s18  ;;  %p6331_p0 = scmp.lt.s32.totalorder %s6322_s18, %s6322_s18 }
  0x4d   : > { %p6325_p7 = pnand %p6323_p5, %p6698_p13  ;;  %p6332_p1 = por %p6331_p0, %p6330_p12 }
  0x4f   : > { %p6326_p9 = pneg %p6325_p7 }
  0x51   : > { %p6333_p2 = pnand %p6332_p1, %p6326_p9 }
  0x53   : > { %6336 = shalt.err (!%p6333_p2)
}
  0x54   : > { %5915 = dma.hbm_to_vmem [thread:$0]  (!%p6682_p11), %s8644_s5, 768, %s6686_s21, [#allocation17], %s6556_s24, %s6556_s24, %s6557_s25  }
  0x55   : > { %s8645_s6 = sld [smem:[#allocation56_spill]] }
  0x5b   : > { %s6337_s27 = scalar_lea.hbm %s8645_s6, 3072 }
  0x5c   : > { %p6338_p6 = scmp.ne.s32.totalorder %s8645_s6, %s6337_s27  ;;  %p6344_p5 = scmp.lt.u32.totalorder %s6337_s27, %s8645_s6 }
  0x5e   : > { %p6340_p10 = pnand %p6338_p6, %p6698_p13 }
  0x60   : > { %p6341_p3 = pneg %p6340_p10 }
  0x62   : > { %p6346_p7 = pnand %p6344_p5, %p6341_p3 }
  0x64   : > { %6349 = shalt.err (!%p6346_p7)
}
  0x65   : > { %s6350_s18 = scalar_lea.vmem %s280_s23, 3072  ;;  %p6358_p1 = scmp.lt.s32.totalorder %s280_s23, %s280_s23 }
  0x66   : > { %p6351_p9 = scmp.ne.s32.totalorder %s280_s23, %s6350_s18  ;;  %p6359_p2 = scmp.lt.s32.totalorder %s6350_s18, %s6350_s18 }
  0x68   : > { %p6353_p12 = pnand %p6351_p9, %p6698_p13  ;;  %p6360_p4 = por %p6359_p2, %p6358_p1 }
  0x6a   : > { %p6354_p0 = pneg %p6353_p12 }
  0x6c   : > { %p6361_p8 = pnand %p6360_p4, %p6354_p0 }
  0x6e   : > { %6364 = shalt.err (!%p6361_p8)
}
  0x6f   : > { %5918 = dma.hbm_to_vmem [thread:$0]  (!%p6682_p11), %s8645_s6, 3072, %s280_s23, [#allocation17], %s6556_s24, %s6556_s24, %s6557_s25  }
  0x70   : > { %s6558_s29 = smov [#allocation19]   ;;  %s6365_s28 = scalar_lea.hbm %s8607_s7, 3072 }
  0x71   : > { %s292_s15 = sshll.u32 %s6558_s29, 4  ;;  %p6366_p4 = scmp.ne.s32.totalorder %s8607_s7, %s6365_s28  ;;  %s293_s15 = int_to_ptr.vmem [resolvable:$true] %s292_s15 }
  0x72   : > { %p6372_p10 = scmp.lt.u32.totalorder %s6365_s28, %s8607_s7 }
  0x73   : > { %p6368_p8 = pnand %p6366_p4, %p6698_p13 }
  0x75   : > { %p6369_p6 = pneg %p6368_p8 }
  0x77   : > { %p6374_p3 = pnand %p6372_p10, %p6369_p6 }
  0x79   : > { %6377 = shalt.err (!%p6374_p3)
}
  0x7a   : > { %s6378_s23 = scalar_lea.vmem %s293_s15, 3072  ;;  %p6386_p12 = scmp.lt.s32.totalorder %s293_s15, %s293_s15 }
  0x7b   : > { %p6379_p5 = scmp.ne.s32.totalorder %s293_s15, %s6378_s23  ;;  %p6387_p0 = scmp.lt.s32.totalorder %s6378_s23, %s6378_s23 }
  0x7d   : > { %p6381_p7 = pnand %p6379_p5, %p6698_p13  ;;  %p6388_p1 = por %p6387_p0, %p6386_p12 }
  0x7f   : > { %p6382_p9 = pneg %p6381_p7 }
  0x81   : > { %p6389_p2 = pnand %p6388_p1, %p6382_p9 }
  0x83   : > { %6392 = shalt.err (!%p6389_p2)
}
  0x84   : > { %5921 = dma.hbm_to_vmem [thread:$0]  (!%p6682_p11), %s8607_s7, 3072, %s293_s15, [#allocation20], %s6556_s24, %s6556_s24, %s6557_s25  }
  0x85   : > { %s42_s19 = sadd.s32 1, %s6547_s11  ;;  %s51_s13 = sadd.s32 1, %s6539_s9 }
  0x86   : > { %p44_p13 = scmp.ge.s32.totalorder %s42_s19, 2  ;;  %p58_p4 = scmp.ne.s32.totalorder %s6539_s9, %s6535_s30 }
  0x87   : > { %p59_p8 = scmp.eq.s32.totalorder %s6551_s12, 0  ;;  %p5937_p6 = scmp.lt.s32.totalorder %s6551_s12, 2 }
  0x88   : > { %s8717_s19 = smov (%p44_p13, %s42_s19), 0  ;;  %p8646_p3 = scmp.eq.s32.totalorder %s6652_s0, 1 }
  0x89   : > { %p60_p10 = por %p59_p8, %p58_p4  ;;  %s47_s26 = ssub.s32 %s6547_s11, %s8717_s19 }
  0x8a   : > { %p6801_p5 = por %p8646_p3, %p58_p4  ;;  %s306_s27 = sand.u32 1, %s6539_s9  }
  0x8b   : > { %p49_p11 = scmp.eq.s32.totalorder %s47_s26, 0  ;;  %s6808_s24 = smul.u32 48, %s306_s27 }
  0x8c   : > { %s4827_s25 = sshll.u32 %s6547_s11, 6  ;;  %s8648_s1 = sld [smem:[#allocation53_spill]] }
  0x8d   : > { %s6812_s15 = scalar_select %p49_p11, %s6539_s9, %s51_s13  }
  0x8e   : > { %s310_s22 = scalar_lea.vmem [#allocation10], %s6808_s24  ;;  %p6824_p7 = pnand %p5937_p6, %p60_p10 }
  0x8f   : > { %s319_s18 = sshll.u32 %s310_s22, 4  ;;  %s6830_s21 = scalar_lea.sflag [#allocation11], %s306_s27  ;;  %s6828_s18 = int_to_ptr.vmem [resolvable:$true] %s319_s18 }
  0x90   : > { %p6395_p12 = pneg %p6824_p7 }
  0x92   : > { %s6819_s20 = scalar_lea.hbm %s8648_s1, %s4827_s25  ;;  %s6398_s28 = scalar_lea.hbm %s8648_s1, 1536 }
  0x93   : > { %s6393_s8 = scalar_lea.hbm %s6819_s20, 768  ;;  %p6399_p2 = scmp.lt.u32.totalorder %s6819_s20, %s8648_s1 }
  0x94   : > { %p6394_p9 = scmp.ne.s32.totalorder %s6819_s20, %s6393_s8  ;;  %p6400_p13 = scmp.lt.u32.totalorder %s6398_s28, %s6393_s8 }
  0x95   : > { %p6402_p8 = scmp.lt.u32.totalorder %s6393_s8, %s6819_s20 }
  0x96   : > { %p6396_p0 = pnand %p6395_p12, %p6394_p9  ;;  %p6401_p4 = por %p6400_p13, %p6399_p2 }
  0x98   : > { %p6397_p1 = pneg %p6396_p0  ;;  %p6403_p6 = por %p6402_p8, %p6401_p4 }
  0x9a   : > { %p6404_p10 = pnand %p6403_p6, %p6397_p1 }
  0x9c   : > { %6407 = shalt.err (!%p6404_p10)
}
  0x9d   : > { %s6408_s27 = scalar_lea.vmem %s6828_s18, 768  ;;  %s6559_s13 = smov [#allocation10]  }
  0x9e   : > { %p6409_p3 = scmp.ne.s32.totalorder %s6828_s18, %s6408_s27  ;;  %s6413_s26 = sshll.u32 %s6559_s13, 4  ;;  %s6414_s26 = int_to_ptr.vmem [resolvable:$false] %s6413_s26 }
  0x9f   : > { %s6415_s17 = scalar_lea.vmem %s6414_s26, 1536  ;;  %p6416_p0 = scmp.lt.s32.totalorder %s6828_s18, %s6414_s26 }
  0xa0   : > { %p6411_p11 = pnand %p6409_p3, %p6395_p12  ;;  %p6417_p2 = scmp.lt.s32.totalorder %s6415_s17, %s6408_s27 }
  0xa2   : > { %p6412_p9 = pneg %p6411_p11  ;;  %p6418_p13 = por %p6417_p2, %p6416_p0 }
  0xa4   : > { %p6419_p4 = pnand %p6418_p13, %p6412_p9 }
  0xa6   : > { %6422 = shalt.err (!%p6419_p4)
}
  0xa7   : > { %s6560_s8 = smov 128   ;;  %s6561_s28 = smov 64  }
  0xa8   : > { %s6562_s22 = smov 4   ;;  %s6866_s26 = scalar_lea.hbm %s8602_s2, %s4827_s25 }
  0xa9   : > { %5925 = dma.hbm_to_vmem [thread:$0]  (!%p6824_p7), %s6819_s20, 768, %s6828_s18, %s6830_s21, %s6560_s8, %s6561_s28, %s6562_s22  }
  0xaa   : > { %s329_s17 = sand.u32 1, %s6551_s12   ;;  %s333_s1 = scalar_lea.vmem [#allocation13], %s6808_s24 }
  0xab   : > { %s343_s4 = sshll.u32 %s333_s1, 4  ;;  %s6872_s5 = scalar_lea.sflag [#allocation14], %s329_s17  ;;  %s6870_s4 = int_to_ptr.vmem [resolvable:$true] %s343_s4 }
  0xac   : > { %s6423_s6 = scalar_lea.hbm %s6866_s26, 768  ;;  %s6428_s18 = scalar_lea.hbm %s8602_s2, 1536 }
  0xad   : > { %p6424_p1 = scmp.ne.s32.totalorder %s6866_s26, %s6423_s6  ;;  %p6429_p10 = scmp.lt.u32.totalorder %s6866_s26, %s8602_s2 }
  0xae   : > { %p6430_p3 = scmp.lt.u32.totalorder %s6428_s18, %s6423_s6  ;;  %p6432_p9 = scmp.lt.u32.totalorder %s6423_s6, %s6866_s26 }
  0xaf   : > { %p6426_p8 = pnand %p6424_p1, %p6395_p12 }
  0xb0   : > { %p6431_p11 = por %p6430_p3, %p6429_p10 }
  0xb1   : > { %p6427_p6 = pneg %p6426_p8 }
  0xb2   : > { %p6433_p0 = por %p6432_p9, %p6431_p11 }
  0xb4   : > { %p6434_p2 = pnand %p6433_p0, %p6427_p6 }
  0xb6   : > { %6437 = shalt.err (!%p6434_p2)
}
  0xb7   : > { %s6438_s1 = scalar_lea.vmem %s6870_s4, 768  ;;  %s6563_s24 = smov [#allocation13]  }
  0xb8   : > { %p6439_p13 = scmp.ne.s32.totalorder %s6870_s4, %s6438_s1  ;;  %s6443_s13 = sshll.u32 %s6563_s24, 4  ;;  %s6444_s13 = int_to_ptr.vmem [resolvable:$false] %s6443_s13 }
  0xb9   : > { %s6445_s17 = scalar_lea.vmem %s6444_s13, 1536  ;;  %p6446_p8 = scmp.lt.s32.totalorder %s6870_s4, %s6444_s13 }
  0xba   : > { %p6441_p4 = pnand %p6439_p13, %p6395_p12  ;;  %p6447_p10 = scmp.lt.s32.totalorder %s6445_s17, %s6438_s1 }
  0xbc   : > { %p6442_p1 = pneg %p6441_p4  ;;  %p6448_p3 = por %p6447_p10, %p6446_p8 }
  0xbe   : > { %p6449_p11 = pnand %p6448_p3, %p6442_p1 }
  0xc0   : > { %6452 = shalt.err (!%p6449_p11)
}
  0xc1   : > { %5928 = dma.hbm_to_vmem [thread:$0]  (!%p6824_p7), %s6866_s26, 768, %s6870_s4, %s6872_s5, %s6560_s8, %s6561_s28, %s6562_s22  }
  0xc2   : > { %p8650_p12 = scmp.ne.s32.totalorder %s8640_s16, 0 }
  0xc4   : > { %362 = sbr.rel (%p8650_p12) target bundleno = 6658 (0x1a02), region = 48 }
  0xcb   : > { %s6904_s6 = sand.u32 1, %s6535_s30   ;;  %p8651_p6 = scmp.ne.s32.totalorder %s8637_s14, 0 }
  0xcc   : > { %s5886_s20 = smul.u32 48, %s6904_s6  ;;  %s365_s25 = scalar_lea.sflag [#allocation11], %s6904_s6 }
  0xce   : > { %s6908_s18 = scalar_lea.vmem [#allocation10], %s5886_s20 }
  0xcf   : > { %6506 = dma.done.wait (%p8651_p6), %s365_s25, 768  }
  0xd0   : > { %6508 = vsyncadd (%p8651_p6), %s365_s25, 4294966528  ;;  %s373_s4 = sand.u32 1, %s6652_s0   ;;  %s6915_s16 = scalar_lea.vmem [#allocation13], %s5886_s20 }
  0xd1   : > { %s374_s5 = scalar_lea.sflag [#allocation14], %s373_s4 }
  0xd2   : > { %6510 = dma.done.wait (%p8651_p6), %s374_s5, 768  }
  0xd3   : > { %6512 = vsyncadd (%p8651_p6), %s374_s5, 4294966528  ;;  %p8652_p7 = scmp.eq.s32.totalorder %s6652_s0, 0 }
  0xd5   : > { %6514 = dma.done.wait (%p8652_p7), [#allocation14], 768   ;;  %p8653_p9 = pmov %p8652_p7 }
  0xd6   : > { %p8654_p0 = pmov %p8652_p7 }
  0xd7   : > { %6516 = vsyncadd (%p8653_p9), [#allocation14], 4294966528 }
  0xd8   : > { %6518 = dma.done.wait (%p8654_p0), [#allocation17], 3840   ;;  %p8655_p2 = pmov %p8654_p0 }
  0xd9   : > { %p8656_p13 = pmov %p8654_p0 }
  0xda   : > { %6520 = vsyncadd (%p8655_p2), [#allocation17], 4294963456 }
  0xdb   : > { %6522 = dma.done.wait (%p8656_p13), [#allocation20], 3072   ;;  %p8657_p4 = pmov %p8654_p0 }
  0xdc   : > { %p436_p1 = scmp.lt.s32.totalorder %s6543_s10, 1  ;;  %s4834_s14 = sshll.u32 %s6904_s6, 4  ;;  %v6564_v0 = vmov 0.0   ;;  %v6565_v1 = vmov -inf   ;;  %v6943_v3 = vld [vmem:[#allocation18] sm:$0xff]  ;;  %v6947_v5 = vld [vmem:[#allocation18 + $0xc] sm:$0xff] }
  0xdd   : > { %6524 = vsyncadd (%p8657_p4), [#allocation20], 4294964224  ;;  %s6935_s23 = sld [smem:[#allocation9]]  ;;  %447 = vst [vmem:[#allocation4] sm:$0xff] %v6564_v0  ;;  %v6945_v4 = vld [vmem:[#allocation18 + $0x8] sm:$0xf] }
  0xde   : > { %448 = vst [vmem:[#allocation5] sm:$0xff] %v6564_v0  ;;  %449 = vst [vmem:[#allocation6] sm:$0xff] %v6565_v1  ;;  %s437_s8 = scalar_select %p436_p1, %s6543_s10, 1  ;;  %v6949_v6 = vld [vmem:[#allocation18 + $0x14] sm:$0xf]  ;;  %v6951_v7 = vld [vmem:[#allocation18 + $0x18] sm:$0xff] }
  0xdf   : > { %450 = vst [vmem:[#allocation7] sm:$0xff] %v6565_v1  ;;  %v6953_v8 = vld [vmem:[#allocation18 + $0x20] sm:$0xf]  ;;  %v6955_v9 = vld [vmem:[#allocation18 + $0x24] sm:$0xff]  ;;  %v6957_v10 = vld [vmem:[#allocation18 + $0x2c] sm:$0xf] }
  0xe0   : > { %s4835_s28 = sshll.u32 %s437_s8, 3  ;;  %v6959_v11 = vld [vmem:[#allocation18 + $0x30] sm:$0xff]  ;;  %v6961_v12 = vld [vmem:[#allocation18 + $0x38] sm:$0xf]  ;;  %v6963_v13 = vld [vmem:[#allocation18 + $0x3c] sm:$0xff]  ;;  %s7073_s21 = scalar_lea.vmem [#allocation21], %s4834_s14 }
  0xe1   : > { %s439_s0 = scalar_lea.vmem %s8603_s3, %s4835_s28  ;;  %v6965_v14 = vld [vmem:[#allocation18 + $0x44] sm:$0xf]  ;;  %v6967_v15 = vld [vmem:[#allocation18 + $0x48] sm:$0xff]  ;;  %v6969_v16 = vld [vmem:[#allocation18 + $0x50] sm:$0xf] }
  0xe2   : > { %v6941_v2 = vld [vmem:[%s439_s0] sm:$0xff]  ;;  %v6971_v17 = vld [vmem:[#allocation18 + $0x54] sm:$0xff]  ;;  %v6973_v18 = vld [vmem:[#allocation18 + $0x5c] sm:$0xf] }
  0xe3   : > { %v6975_v19 = vld [vmem:[#allocation18 + $0x60] sm:$0xff]  ;;  %v6977_v20 = vld [vmem:[#allocation18 + $0x68] sm:$0xf]  ;;  %v6979_v21 = vld [vmem:[#allocation18 + $0x6c] sm:$0xff]  ;;  %p4837_p8 = scmp.le.s32.totalorder %s6935_s23, 0 }
  0xe4   : > { %v6981_v22 = vld [vmem:[#allocation18 + $0x74] sm:$0xf]  ;;  %v6983_v23 = vld [vmem:[#allocation18 + $0x78] sm:$0xff]  ;;  %v6985_v24 = vld [vmem:[#allocation18 + $0x80] sm:$0xf]  ;;  %vm604_vm0 = vcmask (!%p4837_p8), 261120  }
  0xe5   : > { %v6987_v25 = vld [vmem:[#allocation18 + $0x84] sm:$0xff]  ;;  %v6989_v26 = vld [vmem:[#allocation18 + $0x8c] sm:$0xf]  ;;  %v6991_v27 = vld [vmem:[#allocation18 + $0x90] sm:$0xff]  ;;  %vm4912_vm1 = vcmp.gt.s32.totalorder (!%p4837_p8), %v6941_v2, 0  ;;  %vm4915_vm2 = vcmp.gt.s32.totalorder (!%p4837_p8), %v6941_v2, 1 }
  0xe6   : > { %v6993_v28 = vld [vmem:[#allocation18 + $0x98] sm:$0xf]  ;;  %v6995_v29 = vld [vmem:[#allocation18 + $0x9c] sm:$0xff]  ;;  %v6997_v30 = vld [vmem:[#allocation18 + $0xa4] sm:$0xf]  ;;  %vm4927_vm3 = vcmp.gt.s32.totalorder (!%p4837_p8), %v6941_v2, 4 }
  0xe7   : > { %v6999_v31 = vld [vmem:[#allocation18 + $0xa8] sm:$0xff]  ;;  %v7001_v32 = vld [vmem:[#allocation18 + $0xb0] sm:$0xf]  ;;  %v7003_v33 = vld [vmem:[#allocation18 + $0xb4] sm:$0xff]  ;;  %vm4935_vm4 = vcmp.gt.s32.totalorder (!%p4837_p8), %v6941_v2, 6  ;;  %vm4943_vm5 = vcmp.gt.s32.totalorder (!%p4837_p8), %v6941_v2, 8 }
  0xe8   : > { %v7005_v34 = vld [vmem:[#allocation18 + $0xbc] sm:$0xf]  ;;  %v7007_v35 = vld [vmem:[#allocation19] sm:$0xff]  ;;  %v7009_v36 = vld [vmem:[#allocation19 + $0x8] sm:$0xf]  ;;  %vm4951_vm6 = vcmp.gt.s32.totalorder (!%p4837_p8), %v6941_v2, 10 }
  0xe9   : > { %v7011_v37 = vld [vmem:[#allocation19 + $0xc] sm:$0xff]  ;;  %v7013_v38 = vld [vmem:[#allocation19 + $0x14] sm:$0xf]  ;;  %v7015_v39 = vld [vmem:[#allocation19 + $0x18] sm:$0xff]  ;;  %vm6568_vm7 = vmmov (!%p4837_p8), 0   ;;  %vm4919_vm9 = vcmp.gt.s32.totalorder (!%p4837_p8), %v6941_v2, 2 }
  0xea   : > { %v7017_v40 = vld [vmem:[#allocation19 + $0x20] sm:$0xf]  ;;  %v7019_v41 = vld [vmem:[#allocation19 + $0x24] sm:$0xff]  ;;  %v7021_v42 = vld [vmem:[#allocation19 + $0x2c] sm:$0xf]  ;;  %vm4923_vm10 = vcmp.gt.s32.totalorder (!%p4837_p8), %v6941_v2, 3 }
  0xeb   : > { %v7023_v43 = vld [vmem:[#allocation19 + $0x30] sm:$0xff]  ;;  %v7025_v44 = vld [vmem:[#allocation19 + $0x38] sm:$0xf]  ;;  %v7027_v45 = vld [vmem:[#allocation19 + $0x3c] sm:$0xff]  ;;  %vm4931_vm11 = vcmp.gt.s32.totalorder (!%p4837_p8), %v6941_v2, 5  ;;  %vm4939_vm12 = vcmp.gt.s32.totalorder (!%p4837_p8), %v6941_v2, 7 }
  0xec   : > { %8658 = vst [vmem:[#allocation30_spill] sm:$0xff] %v7023_v43  ;;  %8659 = vst [vmem:[#allocation31_spill] sm:$0xff] %v7025_v44  ;;  %v7029_v46 = vld [vmem:[#allocation19 + $0x44] sm:$0xf]  ;;  %v7031_v47 = vld [vmem:[#allocation19 + $0x48] sm:$0xff]  ;;  %vm4947_vm13 = vcmp.gt.s32.totalorder (!%p4837_p8), %v6941_v2, 9 }
  0xed   : > { %8660 = vst [vmem:[#allocation32_spill] sm:$0xff] %v7027_v45  ;;  %8661 = vst [vmem:[#allocation33_spill] sm:$0xff] %v7031_v47  ;;  %v7033_v48 = vld [vmem:[#allocation19 + $0x50] sm:$0xf]  ;;  %v7035_v49 = vld [vmem:[#allocation19 + $0x54] sm:$0xff]  ;;  %vm4955_vm14 = vcmp.gt.s32.totalorder (!%p4837_p8), %v6941_v2, 11 }
  0xee   : > { %8662 = vst [vmem:[#allocation34_spill] sm:$0xff] %v7033_v48  ;;  %8663 = vst [vmem:[#allocation35_spill] sm:$0xff] %v7035_v49  ;;  %v7037_v50 = vld [vmem:[#allocation19 + $0x5c] sm:$0xf]  ;;  %v7039_v51 = vld [vmem:[#allocation19 + $0x60] sm:$0xff]  ;;  %p4916_p10 = scmp.gt.s32.totalorder (!%p4837_p8), %s6935_s23, 1 }
  0xef   : > { %8664 = vst [vmem:[#allocation36_spill] sm:$0xff] %v7037_v50  ;;  %8665 = vst [vmem:[#allocation37_spill] sm:$0xff] %v7039_v51  ;;  %v7041_v52 = vld [vmem:[#allocation19 + $0x68] sm:$0xf]  ;;  %v7043_v53 = vld [vmem:[#allocation19 + $0x6c] sm:$0xff]  ;;  %p4920_p3 = scmp.gt.s32.totalorder (!%p4837_p8), %s6935_s23, 2 }
  0xf0   : > { %8666 = vst [vmem:[#allocation38_spill] sm:$0xff] %v7041_v52  ;;  %8667 = vst [vmem:[#allocation39_spill] sm:$0xff] %v7043_v53  ;;  %v7045_v54 = vld [vmem:[#allocation19 + $0x74] sm:$0xf]  ;;  %v7047_v55 = vld [vmem:[#allocation19 + $0x78] sm:$0xff]  ;;  %p4924_p11 = scmp.gt.s32.totalorder (!%p4837_p8), %s6935_s23, 3 }
  0xf1   : > { %8668 = vst [vmem:[#allocation40_spill] sm:$0xff] %v7045_v54  ;;  %8669 = vst [vmem:[#allocation41_spill] sm:$0xff] %v7047_v55  ;;  %v7049_v56 = vld [vmem:[#allocation19 + $0x80] sm:$0xf]  ;;  %v7051_v57 = vld [vmem:[#allocation19 + $0x84] sm:$0xff]  ;;  %521 = sbr.rel (%p4837_p8) target bundleno = 3440 (0xd70), region = 80 }
  0xf2   : > { %8670 = vst [vmem:[#allocation42_spill] sm:$0xff] %v7049_v56  ;;  %8671 = vst [vmem:[#allocation43_spill] sm:$0xff] %v7051_v57  ;;  %v7053_v58 = vld [vmem:[#allocation19 + $0x8c] sm:$0xf]  ;;  %v7055_v59 = vld [vmem:[#allocation19 + $0x90] sm:$0xff]  ;;  %v8623_v56 = vmov (!%p4837_p8), 0.0  }
  0xf3   : > { %8672 = vst [vmem:[#allocation44_spill] sm:$0xff] %v7053_v58  ;;  %8673 = vst [vmem:[#allocation45_spill] sm:$0xff] %v7055_v59  ;;  %v7057_v60 = vld [vmem:[#allocation19 + $0x98] sm:$0xf]  ;;  %v7059_v61 = vld [vmem:[#allocation19 + $0x9c] sm:$0xff]  ;;  %p4928_p12 = scmp.gt.s32.totalorder (!%p4837_p8), %s6935_s23, 4 }
  0xf4   : > { %8674 = vst [vmem:[#allocation46_spill] sm:$0xff] %v7057_v60  ;;  %8675 = vst [vmem:[#allocation47_spill] sm:$0xff] %v7059_v61  ;;  %v7061_v62 = vld [vmem:[#allocation19 + $0xa4] sm:$0xf]  ;;  %v7063_v63 = vld [vmem:[#allocation19 + $0xa8] sm:$0xff]  ;;  %v8621_v60 = vmov (!%p4837_p8), 0  }
  0xf5   : > { %8676 = vst [vmem:[#allocation48_spill] sm:$0xff] %v7061_v62  ;;  %8677 = vst [vmem:[#allocation49_spill] sm:$0xff] %v7063_v63  ;;  %v7065_v0 = vld [vmem:[#allocation19 + $0xb0] sm:$0xf]  ;;  %v7067_v1 = vld [vmem:[#allocation19 + $0xb4] sm:$0xff]  ;;  %705 = vmatprep.mubr.bf16.mxu1 (!%p4837_p8), %v8621_v60  ;;  %655 = vmatprep.mubr.bf16.mxu0 (!%p4837_p8), %v8621_v60  ;;  %p4932_p6 = scmp.gt.s32.totalorder (!%p4837_p8), %s6935_s23, 5 }
  0xf6   : > { %8678 = vst [vmem:[#allocation50_spill] sm:$0xff] %v7065_v0  ;;  %8679 = vst [vmem:[#allocation51_spill] sm:$0xff] %v7067_v1  ;;  %v7069_v55 = vld [vmem:[#allocation19 + $0xbc] sm:$0xf]  ;;  %v6010_v59 = vld [vmem:[#allocation15 + $0x4] ss:$12 sps:$4 sm:$0xff] (!%p4837_p8)   ;;  %6008 = vset.pattern.permute.xlu0 (!%p4837_p8), %v8621_v60  ;;  %6009 = vset.pattern.permute.xlu1 (!%p4837_p8), %v8621_v60 }
  0xf7   : > { %8680 = vst [vmem:[#allocation52_spill] sm:$0xff] %v7069_v55  ;;  %v6012_v61 = vld [vmem:[#allocation15] ss:$12 sps:$4 sm:$0xff] (!%p4837_p8)   ;;  %5876 = vmatprep.subr.bf16.mxu1 (!%p4837_p8), %v6010_v59  ;;  %v6013_v63 = vld [vmem:[#allocation15 + $0x1c] ss:$12 sps:$4 sm:$0xff] (!%p4837_p8)   ;;  %623 = vmatprep.subr.bf16.mxu0 (!%p4837_p8), %v6010_v59  ;;  %v7088_v59 = vcombine.low (!%p4837_p8), %v6945_v4, %v6949_v6  ;;  %v7099_v4 = vcombine.high (!%p4837_p8), %v6943_v3, %v6947_v5  ;;  %p4936_p7 = scmp.gt.s32.totalorder (!%p4837_p8), %s6935_s23, 6 }
  0xf8   : > { %5878 = vmatpush1.bf16.msra.mxu1 %v6012_v61  ;;  %v6015_v1 = vld [vmem:[#allocation15 + $0x18] ss:$12 sps:$4 sm:$0xff]   ;;  %624 = vmatpush1.bf16.msra.mxu0 %v6012_v61  ;;  %v6017_v0 = vld [vmem:[#allocation15 + $0x8] ss:$12 sps:$4 sm:$0xff]   ;;  %v6018_v62 = vld [vmem:[#allocation15 + $0x20] ss:$12 sps:$4 sm:$0xff]   ;;  %v7104_v6 = vcombine.low %v6953_v8, %v6957_v10  ;;  %v7122_v8 = vcombine.low %v6961_v12, %v6965_v14  ;;  %v7138_v10 = vcombine.high %v6959_v11, %v6963_v13 }
  0xf9   : > { %5877 = vmatprep.subr.bf16.mxu1 %v6013_v63  ;;  %625 = vmatprep.subr.bf16.mxu0 %v6013_v63  ;;  %v7080_v55 = vld [vmem:[%s6908_s18 + $0x28] sm:$0xff]   ;;  %v6019_v57 = vld [vmem:[%s6908_s18] sm:$0xff]   ;;  %v1217_v61 = vsel %vm4912_vm1, 1, %v8621_v60  ;;  %v7143_v12 = vcombine.low %v6969_v16, %v6973_v18  ;;  %v7158_v16 = vcombine.high %v6967_v15, %v6971_v17  ;;  %v7164_v18 = vcombine.low %v6977_v20, %v6981_v22  ;;  %s1344_s27 = scalar_select %p4916_p10, 0.0, -inf }
  0xfa   : > { %v6020_v63 = vld [vmem:[%s6908_s18 + $0x8] sm:$0xff]   ;;  %1219 = vperm.xlu0 %6008, %v1217_v61   ;;  %v6023_v14 = vld [vmem:[%s6908_s18 + $0x20] sm:$0xff]   ;;  %v7179_v20 = vcombine.high %v6975_v19, %v6979_v21  ;;  %v7185_v22 = vcombine.low %v6985_v24, %v6989_v26  ;;  %v7212_v24 = vcombine.low %v6983_v23, %v6987_v25  ;;  %v7219_v26 = vcombine.high %v6991_v27, %v6995_v29  ;;  %s1467_s1 = scalar_select %p4920_p3, 0.0, -inf }
  0xfb   : > { %s1590_s24 = scalar_select %p4924_p11, 0.0, -inf }
  0xfc   : > { %5879 = vmatpush1.bf16.msra.mxu1 %v6015_v1  ;;  %626 = vmatpush1.bf16.msra.mxu0 %v6015_v1  ;;  %v7117_v1 = vcombine.high %v6951_v7, %v6955_v9  ;;  %s1713_s13 = scalar_select %p4928_p12, 0.0, -inf }
  0xfd   : > { %5364 = vmatprep.subr.bf16.mxu1 %v6017_v0  ;;  %5380 = vmatprep.subr.bf16.mxu0 %v8623_v56  ;;  %s1836_s17 = scalar_select %p4932_p6, 0.0, -inf }
  0xfe   : > { %s1959_s20 = scalar_select %p4936_p7, 0.0, -inf }
  0xff   : > { %4855 = vmatmul.mubr.msk.bf16.vlgmr.msra.gmra.mrb[0].mxu1 %vm604_vm0, %v7080_v55  ;;  %4850 = vmatmul.mubr.msk.bf16.vlgmr.msra.gmra.mrb[0].mxu0 %vm604_vm0, %v6019_v57  ;;  %p4940_p9 = scmp.gt.s32.totalorder %s6935_s23, 7  ;;  %p4944_p0 = scmp.gt.s32.totalorder %s6935_s23, 8 }
 0x100   : > { %5365 = vmatpush3.bf16.msra.mxu1 %v6017_v0  ;;  %5368 = vmatprep.mubr.msk.bf16.mxu1 %vm604_vm0, %v6019_v57  ;;  %v7111_v57 = vcombine.low %v6943_v3, %v6947_v5  ;;  %v6021_v0 = vld [vmem:[%s6908_s18 + $0x10] sm:$0xff]   ;;  %v7131_v3 = vcombine.low %v6951_v7, %v6955_v9  ;;  %v1337_v5 = vsel %vm4915_vm2, 1, %v8621_v60  ;;  %v6022_v7 = vld [vmem:[%s6908_s18 + $0x18] sm:$0xff]   ;;  %v7151_v9 = vcombine.low %v6959_v11, %v6963_v13  ;;  %p4948_p2 = scmp.gt.s32.totalorder %s6935_s23, 9  ;;  %p4952_p13 = scmp.gt.s32.totalorder %s6935_s23, 10 }
 0x101   : > { %5366 = vmatprep.subr.bf16.mxu1 %v6018_v62  ;;  %5381 = vmatpush3.bf16.msra.mxu0 %v7088_v59  ;;  %v1706_v11 = vsel %vm4927_vm3, 1, %v8621_v60  ;;  %v7172_v13 = vcombine.low %v6967_v15, %v6971_v17  ;;  %v1952_v15 = vsel %vm4935_vm4, 1, %v8621_v60  ;;  %v7192_v17 = vcombine.low %v6975_v19, %v6979_v21  ;;  %s2082_s25 = scalar_select %p4940_p9, 0.0, -inf }
 0x102   : > { %665 = vmatprep.mubr.bf16.mxu0 %v8621_v60  ;;  %5382 = vmatprep.subr.bf16.mxu0 %v8623_v56  ;;  %v7206_v19 = vcombine.low %v6993_v28, %v6997_v30  ;;  %v2198_v21 = vsel %vm4943_vm5, 1, %v8621_v60  ;;  %v7233_v28 = vcombine.low %v7001_v32, %v7005_v34  ;;  %v7238_v30 = vcombine.high %v6999_v31, %v7003_v33  ;;  %s2205_s18 = scalar_select %p4944_p0, 0.0, -inf }
 0x103   : > { %1339 = vperm.xlu0 %6008, %v1337_v5   ;;  %s2328_s4 = scalar_select %p4948_p2, 0.0, -inf }
 0x104   : > { %5367 = vmatpush3.bf16.msra.mxu1 %v6018_v62  ;;  %v7198_v62 = vcombine.high %v6983_v23, %v6987_v25  ;;  %v2444_v23 = vsel %vm4951_vm6, 1, %v8621_v60  ;;  %v7228_v25 = vcombine.low %v6991_v27, %v6995_v29  ;;  %v7244_v27 = vcombine.low %v6999_v31, %v7003_v33  ;;  %v7246_v29 = vld [vmem:[#allocation4] sm:$0xff]  ;;  %s2451_s5 = scalar_select %p4952_p13, 0.0, -inf }
 0x105   : > { %1110 = vmatprep.subr.bf16.mxu1 %v7099_v4  ;;  %5383 = vmatpush3.bf16.msra.mxu0 %v7104_v6  ;;  %v981_v32 = vpack.c.bf16 %v7246_v29, %v7246_v29  ;;  %p4956_p4 = scmp.gt.s32.totalorder %s6935_s23, 11 }
 0x106   : > { %5384 = vmatprep.subr.bf16.mxu0 %v8623_v56 }
 0x107   : > { %5369 = vmatmul.mubr.msk.bf16.vlgmr.msra.gmra.mrb[4].mxu1 %vm604_vm0, %v6020_v63  ;;  %4851 = vmatmul.mubr.msk.bf16.gmra.mrb[4].mxu0 %vm604_vm0, %v6020_v63  ;;  %s2574_s14 = scalar_select %p4956_p4, 0.0, -inf }
 0x108   : > { %1111 = vmatpush1.bf16.msra.mxu1 %v7111_v57  ;;  %5372 = vmatprep.mubr.msk.bf16.mxu1 %vm604_vm0, %v6021_v0 }
 0x109   : > { %1112 = vmatprep.subr.bf16.mxu1 %v7117_v1  ;;  %5385 = vmatpush3.bf16.msra.mxu0 %v7122_v8 }
 0x10a   : > { %675 = vmatprep.mubr.bf16.mxu0 %v8621_v60  ;;  %5386 = vmatprep.subr.bf16.mxu0 %v8623_v56 }
 0x10b   : > { %1708 = vperm.xlu0 %6008, %v1706_v11  }
 0x10c   : > { %1113 = vmatpush1.bf16.msra.mxu1 %v7131_v3 }
 0x10d   : > { %1114 = vmatprep.subr.bf16.mxu1 %v7138_v10  ;;  %5387 = vmatpush3.bf16.msra.mxu0 %v7143_v12 }
 0x10e   : > { %5388 = vmatprep.subr.bf16.mxu0 %v8623_v56 }
 0x10f   : > { %5373 = vmatmul.mubr.msk.bf16.gmra.mrb[8].mxu1 %vm604_vm0, %v6022_v7  ;;  %4852 = vmatmul.mubr.msk.bf16.gmra.mrb[8].mxu0 %vm604_vm0, %v6021_v0 }
 0x110   : > { %1115 = vmatpush1.bf16.msra.mxu1 %v7151_v9  ;;  %5376 = vmatprep.mubr.msk.bf16.mxu1 %vm604_vm0, %v6023_v14 }
 0x111   : > { %1116 = vmatprep.subr.bf16.mxu1 %v7158_v16  ;;  %685 = vmatprep.mubr.bf16.mxu0 %v8621_v60 }
 0x112   : > { %5389 = vmatpush3.bf16.msra.mxu0 %v7164_v18  ;;  %1954 = vperm.xlu0 %6008, %v1952_v15  }
 0x113   : > { %5390 = vmatprep.subr.bf16.mxu0 %v8623_v56 }
 0x114   : > { %1117 = vmatpush1.bf16.msra.mxu1 %v7172_v13 }
 0x115   : > { %1118 = vmatprep.subr.bf16.mxu1 %v7179_v20 }
 0x116   : > { %5391 = vmatpush3.bf16.msra.mxu0 %v7185_v22  ;;  %2200 = vperm.xlu0 %6008, %v2198_v21  }
 0x117   : > { %5377 = vmatmul.mubr.msk.bf16.gmra.mrb[12].mxu1 %vm604_vm0, %v7080_v55  ;;  %4853 = vmatmul.mubr.msk.bf16.gmra.mrb[12].mxu0 %vm604_vm0, %v6022_v7 }
 0x118   : > { %1119 = vmatpush1.bf16.msra.mxu1 %v7192_v17  ;;  %1142 = vmatprep.mubr.bf16.mxu1 %v8621_v60 }
 0x119   : > { %1120 = vmatprep.subr.bf16.mxu1 %v7198_v62  ;;  %695 = vmatprep.mubr.bf16.mxu0 %v8621_v60 }
 0x11a   : > { %5392 = vmatprep.subr.bf16.mxu0 %v8623_v56  ;;  %2446 = vperm.xlu0 %6008, %v2444_v23  }
 0x11b   : > { %5393 = vmatpush3.bf16.msra.mxu0 %v7206_v19 }
 0x11c   : > { %1121 = vmatpush1.bf16.msra.mxu1 %v7212_v24  ;;  %5394 = vmatprep.subr.bf16.mxu0 %v8623_v56 }
 0x11d   : > { %1122 = vmatprep.subr.bf16.mxu1 %v7219_v26 }
 0x11f   : > { %4854 = vmatmul.mubr.msk.bf16.gmra.mrb[16].mxu0 %vm604_vm0, %v6023_v14 }
 0x120   : > { %1123 = vmatpush1.bf16.msra.mxu1 %v7228_v25  ;;  %5395 = vmatpush3.bf16.msra.mxu0 %v7233_v28 }
 0x121   : > { %1124 = vmatprep.subr.bf16.mxu1 %v7238_v30  ;;  %5396 = vmatprep.mubr.msk.bf16.mxu0 %vm6568_vm7, %v8623_v56 }
 0x122   : > { %5400 = vmatprep.subr.bf16.mxu0 %v8623_v56 }
 0x124   : > { %1125 = vmatpush1.bf16.msra.mxu1 %v7244_v27 }
 0x125   : > { %1230 = vmatprep.subr.bf16.mxu1 %v7099_v4 }
 0x127   : > { %1143 = vmatmul.mubr.bf16.vlgmr.msra.gmra.mrb[16].mxu1 %v981_v32  ;;  %5397 = vmatmul.mubr.bf16.vlgmr.msra.gmra.mrb[20].mxu0 %v981_v32 }
 0x128   : > { %1231 = vmatpush1.bf16.msra.mxu1 %v7111_v57  ;;  %5401 = vmatpush3.bf16.msra.mxu0 %v7088_v59 }
 0x129   : > { %1232 = vmatprep.subr.bf16.mxu1 %v7117_v1  ;;  %5402 = vmatprep.subr.bf16.mxu0 %v8623_v56 }
 0x12a   : > { %1262 = vmatprep.mubr.bf16.mxu1 %v8621_v60  ;;  %5416 = vmatprep.mubr.msk.bf16.mxu0 %vm6568_vm7, %v8623_v56 }
 0x12c   : > { %1233 = vmatpush1.bf16.msra.mxu1 %v7131_v3  ;;  %5403 = vmatpush3.bf16.msra.mxu0 %v7104_v6 }
 0x12d   : > { %1234 = vmatprep.subr.bf16.mxu1 %v7138_v10  ;;  %5404 = vmatprep.subr.bf16.mxu0 %v8623_v56 }
 0x130   : > { %1235 = vmatpush1.bf16.msra.mxu1 %v7151_v9  ;;  %5405 = vmatpush3.bf16.msra.mxu0 %v7122_v8 }
 0x131   : > { %1236 = vmatprep.subr.bf16.mxu1 %v7158_v16  ;;  %5406 = vmatprep.subr.bf16.mxu0 %v8623_v56 }
 0x134   : > { %1237 = vmatpush1.bf16.msra.mxu1 %v7172_v13  ;;  %5407 = vmatpush3.bf16.msra.mxu0 %v7143_v12 }
 0x135   : > { %1238 = vmatprep.subr.bf16.mxu1 %v7179_v20  ;;  %5408 = vmatprep.subr.bf16.mxu0 %v8623_v56 }
 0x138   : > { %1239 = vmatpush1.bf16.msra.mxu1 %v7192_v17  ;;  %5409 = vmatpush3.bf16.msra.mxu0 %v7164_v18 }
 0x139   : > { %1240 = vmatprep.subr.bf16.mxu1 %v7198_v62  ;;  %5410 = vmatprep.subr.bf16.mxu0 %v8623_v56 }
 0x13c   : > { %1241 = vmatpush1.bf16.msra.mxu1 %v7212_v24  ;;  %5411 = vmatpush3.bf16.msra.mxu0 %v7185_v22 }
 0x13d   : > { %1242 = vmatprep.subr.bf16.mxu1 %v7219_v26  ;;  %5412 = vmatprep.subr.bf16.mxu0 %v8623_v56 }
 0x140   : > { %1243 = vmatpush1.bf16.msra.mxu1 %v7228_v25  ;;  %5413 = vmatpush3.bf16.msra.mxu0 %v7206_v19 }
 0x141   : > { %1244 = vmatprep.subr.bf16.mxu1 %v7238_v30  ;;  %5414 = vmatprep.subr.bf16.mxu0 %v8623_v56 }
 0x144   : > { %1245 = vmatpush1.bf16.msra.mxu1 %v7244_v27  ;;  %5415 = vmatpush3.bf16.msra.mxu0 %v7233_v28 }
 0x145   : > { %1353 = vmatprep.subr.bf16.mxu1 %v7099_v4  ;;  %5420 = vmatprep.subr.bf16.mxu0 %v8623_v56 }
 0x1d2   : > { %v707_v31 = vpop.f32.mrb[0].mxu1  ;;  %v657_v33 = vpop.f32.mrb[0].mxu0 }
 0x1d3   : > { %v709_v34 = vpop.f32.mrb[1].mxu1  ;;  %v659_v55 = vpop.f32.mrb[1].mxu0 }
 0x1d4   : > { %v5103_v61 = vpack.c.bf16 %v709_v34, %v707_v31  ;;  %v711_v63 = vpop.f32.mrb[2].mxu1  ;;  %v7292_v0 = vpack.c.bf16 %v659_v55, %v657_v33  ;;  %v661_v5 = vpop.f32.mrb[2].mxu0 }
 0x1d5   : > { %v713_v7 = vpop.f32.mrb[3].mxu1  ;;  %v663_v14 = vpop.f32.mrb[3].mxu0 }
 0x1d6   : > { %973 = vst [vmem:[#allocation2 + $0x78] sm:$0xff] %v5103_v61  ;;  %v5105_v11 = vpack.c.bf16 %v713_v7, %v711_v63  ;;  %v7294_v15 = vpack.c.bf16 %v663_v14, %v661_v5 }
 0x1d8   : > { %975 = vst [vmem:[#allocation2 + $0x84] sm:$0xff] %v5105_v11 }
 0x1da   : > { %v5370_v21 = vpop.f32.mrb[4].mxu1  ;;  %v667_v23 = vpop.f32.mrb[4].mxu0 }
 0x1db   : > { %v5088_v32 = vpack.c.bf16 %v5370_v21, %v5370_v21  ;;  %v750_v60 = vpop.f32.mrb[5].mxu1  ;;  %v669_v56 = vpop.f32.mrb[5].mxu0 }
 0x1dc   : > { %v5084_v58 = vpack.c.bf16 %v750_v60, %v750_v60  ;;  %v5371_v51 = vpop.f32.mrb[6].mxu1  ;;  %v7296_v53 = vpack.c.bf16 %v669_v56, %v667_v23  ;;  %v671_v31 = vpop.f32.mrb[6].mxu0 }
 0x1dd   : > { %958 = vst [vmem:[#allocation2 + $0x20] sm:$0xf] %v5088_v32  ;;  %v5090_v33 = vpack.c.bf16 %v5371_v51, %v5371_v51  ;;  %v753_v34 = vpop.f32.mrb[7].mxu1  ;;  %v673_v55 = vpop.f32.mrb[7].mxu0 }
 0x1de   : > { %954 = vst [vmem:[#allocation2 + $0x8] sm:$0xf] %v5084_v58  ;;  %v5086_v61 = vpack.c.bf16 %v753_v34, %v753_v34  ;;  %v7298_v63 = vpack.c.bf16 %v673_v55, %v671_v31 }
 0x1df   : > { %960 = vst [vmem:[#allocation2 + $0x2c] sm:$0xf] %v5090_v33 }
 0x1e0   : > { %956 = vst [vmem:[#allocation2 + $0x14] sm:$0xf] %v5086_v61 }
 0x1e2   : > { %v5374_v5 = vpop.f32.mrb[8].mxu1  ;;  %v677_v7 = vpop.f32.mrb[8].mxu0 }
 0x1e3   : > { %v5096_v14 = vpack.c.bf16 %v5374_v5, %v5374_v5  ;;  %v766_v11 = vpop.f32.mrb[9].mxu1  ;;  %v679_v21 = vpop.f32.mrb[9].mxu0 }
 0x1e4   : > { %v5092_v60 = vpack.c.bf16 %v766_v11, %v766_v11  ;;  %v5375_v52 = vpop.f32.mrb[10].mxu1  ;;  %v7300_v56 = vpack.c.bf16 %v679_v21, %v677_v7  ;;  %v681_v23 = vpop.f32.mrb[10].mxu0 }
 0x1e5   : > { %966 = vst [vmem:[#allocation2 + $0x50] sm:$0xf] %v5096_v14  ;;  %v5098_v51 = vpack.c.bf16 %v5375_v52, %v5375_v52  ;;  %v769_v32 = vpop.f32.mrb[11].mxu1  ;;  %v683_v54 = vpop.f32.mrb[11].mxu0 }
 0x1e6   : > { %962 = vst [vmem:[#allocation2 + $0x38] sm:$0xf] %v5092_v60  ;;  %v5094_v58 = vpack.c.bf16 %v769_v32, %v769_v32  ;;  %v7302_v31 = vpack.c.bf16 %v683_v54, %v681_v23 }
 0x1e7   : > { %968 = vst [vmem:[#allocation2 + $0x5c] sm:$0xf] %v5098_v51  ;;  %v7308_v50 = vld [vmem:[#allocation2 + $0x8] ss:$12 sps:$4 sm:$0xff]  }
 0x1e8   : > { %964 = vst [vmem:[#allocation2 + $0x44] sm:$0xf] %v5094_v58 }
 0x1ea   : > { %v5378_v33 = vpop.f32.mrb[12].mxu1  ;;  %v687_v34 = vpop.f32.mrb[12].mxu0 }
 0x1eb   : > { %v5104_v55 = vpack.c.bf16 %v5378_v33, %v5378_v33  ;;  %v782_v61 = vpop.f32.mrb[13].mxu1  ;;  %v689_v5 = vpop.f32.mrb[13].mxu0 }
 0x1ec   : > { %v5100_v11 = vpack.c.bf16 %v782_v61, %v782_v61  ;;  %v5379_v47 = vpop.f32.mrb[14].mxu1  ;;  %v7304_v7 = vpack.c.bf16 %v689_v5, %v687_v34  ;;  %v691_v21 = vpop.f32.mrb[14].mxu0  ;;  %v1191_v34 = vunpack.c.l.bf16 %v7292_v0 }
 0x1ed   : > { %974 = vst [vmem:[#allocation2 + $0x80] sm:$0xf] %v5104_v55  ;;  %v5106_v52 = vpack.c.bf16 %v5379_v47, %v5379_v47  ;;  %v785_v14 = vpop.f32.mrb[15].mxu1  ;;  %v693_v49 = vpop.f32.mrb[15].mxu0  ;;  %v1192_v47 = vunpack.c.h.bf16 %v7292_v0 }
 0x1ee   : > { %970 = vst [vmem:[#allocation2 + $0x68] sm:$0xf] %v5100_v11  ;;  %v5102_v60 = vpack.c.bf16 %v785_v14, %v785_v14  ;;  %v5097_v54 = vpack.c.bf16 %v693_v49, %v691_v21 }
 0x1ef   : > { %976 = vst [vmem:[#allocation2 + $0x8c] sm:$0xf] %v5106_v52 }
 0x1f0   : > { %972 = vst [vmem:[#allocation2 + $0x74] sm:$0xf] %v5102_v60  ;;  %967 = vst [vmem:[#allocation2 + $0x54] sm:$0xff] %v5097_v54 }
 0x1f2   : > { %v697_v23 = vpop.f32.mrb[16].mxu0 }
 0x1f3   : > { %v699_v51 = vpop.f32.mrb[17].mxu0 }
 0x1f4   : > { %v5099_v32 = vpack.c.bf16 %v699_v51, %v697_v23  ;;  %v701_v58 = vpop.f32.mrb[18].mxu0 }
 0x1f5   : > { %v703_v33 = vpop.f32.mrb[19].mxu0 }
 0x1f6   : > { %969 = vst [vmem:[#allocation2 + $0x60] sm:$0xff] %v5099_v32  ;;  %v5101_v61 = vpack.c.bf16 %v703_v33, %v701_v58 }
 0x1f8   : > { %971 = vst [vmem:[#allocation2 + $0x6c] sm:$0xff] %v5101_v61 }
 0x1fa   : > { %v1144_v55 = vpop.f32.mrb[16].mxu1  ;;  %v1185_v5 = vpop.f32.mrb[20].mxu0 }
 0x1fb   : > { %v1194_v11 = vadd.f32 %v1191_v34, %v1144_v55  ;;  %v1146_v14 = vpop.f32.mrb[17].mxu1  ;;  %v5398_v49 = vpop.f32.mrb[21].mxu0  ;;  %v1193_v34 = vunpack.c.l.bf16 %v7308_v50 }
 0x1fc   : > { %v1201_v21 = vadd.f32 %v1192_v47, %v1146_v14  ;;  %v1148_v52 = vpop.f32.mrb[18].mxu1  ;;  %v1188_v60 = vpop.f32.mrb[22].mxu0 }
 0x1fd   : > { %v4910_v54 = vmul.f32 -1.442695, %v1194_v11  ;;  %v1149_v48 = vpop.f32.mrb[19].mxu1  ;;  %v5399_v23 = vpop.f32.mrb[23].mxu0 }
 0x1fe   : > { %v4911_v51 = vmul.f32 -1.442695, %v1201_v21  ;;  %v1220_v49 = vpop.permute.xlu0 %1219 }
 0x1ff   : > { %6024 = vpow2.f32 %v4910_v54  ;;  %vm1221_vm8 = vcmp.eq.s32.totalorder %v1220_v49, 1 }
 0x200   : > { %6026 = vpow2.f32 %v4911_v51 }
 0x209   : > { %v6025_v32 = vpop.eup %6024 }
 0x20a   : > { %v1198_v58 = vadd.f32 1.0, %v6025_v32  ;;  %v6027_v33 = vpop.eup %6026  ;;  %v8682_v32 = vmov 0  }
 0x20b   : > { %v1205_v61 = vadd.f32 1.0, %v6027_v33  ;;  %v1829_v33 = vsel %vm4931_vm11, 1, %v8682_v32 }
 0x20c   : > { %6028 = vrcp.f32 %v1198_v58  ;;  %v1583_v58 = vsel %vm4923_vm10, 1, %v8682_v32 }
 0x20d   : > { %6030 = vrcp.f32 %v1205_v61  ;;  %v2075_v61 = vsel %vm4939_vm12, 1, %v8682_v32 }
 0x216   : > { %v6029_v0 = vpop.eup %6028 }
 0x217   : > { %v1208_v55 = vmul.f32 %v6029_v0, %v1185_v5  ;;  %v6031_v11 = vpop.eup %6030  ;;  %v8681_v5 = vmov 0.0   ;;  %v2321_v0 = vsel %vm4947_vm13, 1, %v8682_v32 }
 0x218   : > { %v1211_v48 = vsub.f32 1.0, %v6031_v11  ;;  %v1213_v52 = vmul.f32 %v6031_v11, %v7246_v29 }
 0x219   : > { %v1209_v47 = vadd.f32 %v1208_v55, %v1193_v34  ;;  %v2567_v34 = vsel %vm4955_vm14, 1, %v8682_v32  ;;  %v1311_v55 = vunpack.c.l.bf16 %v7294_v15 }
 0x21b   : > { %6032 = vtanh.f32 %v1209_v47 }
 0x225   : > { %v6033_v14 = vpop.eup %6032 }
 0x226   : > { %v1212_v21 = vmul.f32 %v6033_v14, %v1211_v48  ;;  %v1312_v48 = vunpack.c.h.bf16 %v7294_v15  ;;  %v1313_v15 = vunpack.c.h.bf16 %v7308_v50 }
 0x228   : > { %v1214_v60 = vadd.f32 %v1213_v52, %v1212_v21 }
 0x22a   : > { %v7313_v54 = vsel %vm1221_vm8, %v1214_v60, %v7246_v29  ;;  %v7315_v23 = vsel %vm1221_vm8, %v1214_v60, 0.0  ;;  %v1460_v29 = vsel %vm4919_vm9, 1, %v8682_v32 }
 0x22b   : > { %v1229_v51 = vpack.c.bf16 %v7313_v54, %v7313_v54  ;;  %1462 = vperm.xlu1 %6009, %v1460_v29  }
 0x22d   : > { %1263 = vmatmul.mubr.bf16.vlgmr.msra.gmra.mrb[20].mxu1 %v1229_v51  ;;  %5417 = vmatmul.mubr.bf16.vlgmr.msra.gmra.mrb[24].mxu0 %v1229_v51 }
 0x22e   : > { %1354 = vmatpush1.bf16.msra.mxu1 %v7111_v57  ;;  %5421 = vmatpush3.bf16.msra.mxu0 %v7088_v59 }
 0x22f   : > { %1355 = vmatprep.subr.bf16.mxu1 %v7117_v1  ;;  %5422 = vmatprep.subr.bf16.mxu0 %v8681_v5 }
 0x230   : > { %1385 = vmatprep.mubr.bf16.mxu1 %v8682_v32  ;;  %5436 = vmatprep.mubr.msk.bf16.mxu0 %vm6568_vm7, %v8681_v5 }
 0x231   : > { %1585 = vperm.xlu1 %6009, %v1583_v58  }
 0x232   : > { %1356 = vmatpush1.bf16.msra.mxu1 %v7131_v3  ;;  %5423 = vmatpush3.bf16.msra.mxu0 %v7104_v6 }
 0x233   : > { %1357 = vmatprep.subr.bf16.mxu1 %v7138_v10  ;;  %5424 = vmatprep.subr.bf16.mxu0 %v8681_v5 }
 0x235   : > { %1831 = vperm.xlu1 %6009, %v1829_v33  }
 0x236   : > { %1358 = vmatpush1.bf16.msra.mxu1 %v7151_v9  ;;  %5425 = vmatpush3.bf16.msra.mxu0 %v7122_v8 }
 0x237   : > { %1359 = vmatprep.subr.bf16.mxu1 %v7158_v16  ;;  %5426 = vmatprep.subr.bf16.mxu0 %v8681_v5 }
 0x239   : > { %2077 = vperm.xlu1 %6009, %v2075_v61  }
 0x23a   : > { %1360 = vmatpush1.bf16.msra.mxu1 %v7172_v13  ;;  %5427 = vmatpush3.bf16.msra.mxu0 %v7143_v12 }
 0x23b   : > { %1361 = vmatprep.subr.bf16.mxu1 %v7179_v20  ;;  %5428 = vmatprep.subr.bf16.mxu0 %v8681_v5 }
 0x23d   : > { %2323 = vperm.xlu1 %6009, %v2321_v0  }
 0x23e   : > { %1362 = vmatpush1.bf16.msra.mxu1 %v7192_v17  ;;  %5429 = vmatpush3.bf16.msra.mxu0 %v7164_v18 }
 0x23f   : > { %1363 = vmatprep.subr.bf16.mxu1 %v7198_v62  ;;  %5430 = vmatprep.subr.bf16.mxu0 %v8681_v5 }
 0x241   : > { %2569 = vperm.xlu1 %6009, %v2567_v34  }
 0x242   : > { %1364 = vmatpush1.bf16.msra.mxu1 %v7212_v24  ;;  %5431 = vmatpush3.bf16.msra.mxu0 %v7185_v22 }
 0x243   : > { %1365 = vmatprep.subr.bf16.mxu1 %v7219_v26  ;;  %5432 = vmatprep.subr.bf16.mxu0 %v8681_v5 }
 0x246   : > { %1366 = vmatpush1.bf16.msra.mxu1 %v7228_v25  ;;  %5433 = vmatpush3.bf16.msra.mxu0 %v7206_v19 }
 0x247   : > { %1367 = vmatprep.subr.bf16.mxu1 %v7238_v30  ;;  %5434 = vmatprep.subr.bf16.mxu0 %v8681_v5 }
 0x24a   : > { %1368 = vmatpush1.bf16.msra.mxu1 %v7244_v27  ;;  %5435 = vmatpush3.bf16.msra.mxu0 %v7233_v28 }
 0x24b   : > { %1476 = vmatprep.subr.bf16.mxu1 %v7099_v4  ;;  %5440 = vmatprep.subr.bf16.mxu0 %v8681_v5 }
 0x300   : > { %v1264_v47 = vpop.f32.mrb[20].mxu1  ;;  %v1305_v11 = vpop.f32.mrb[24].mxu0 }
 0x301   : > { %v1314_v14 = vadd.f32 %v1311_v55, %v1264_v47  ;;  %v1266_v49 = vpop.f32.mrb[21].mxu1  ;;  %v5418_v21 = vpop.f32.mrb[25].mxu0 }
 0x302   : > { %v1321_v52 = vadd.f32 %v1312_v48, %v1266_v49  ;;  %v1268_v60 = vpop.f32.mrb[22].mxu1  ;;  %v1308_v51 = vpop.f32.mrb[26].mxu0  ;;  %v978_v21 = vld [vmem:[#allocation6] sm:$0xff] }
 0x303   : > { %v4913_v29 = vmul.f32 -1.442695, %v1314_v14  ;;  %v1269_v58 = vpop.f32.mrb[23].mxu1  ;;  %v5419_v33 = vpop.f32.mrb[27].mxu0  ;;  %v1345_v51 = vstv %s1344_s27 }
 0x304   : > { %v4914_v61 = vmul.f32 -1.442695, %v1321_v52 }
 0x305   : > { %6034 = vpow2.f32 %v4913_v29  ;;  %v1340_v29 = vpop.permute.xlu0 %1339 }
 0x306   : > { %6036 = vpow2.f32 %v4914_v61  ;;  %vm1341_vm15 = vcmp.eq.s32.totalorder %v1340_v29, 1  ;;  %v1435_v61 = vunpack.c.h.bf16 %v7296_v53 }
 0x30f   : > { %v6035_v0 = vpop.eup %6034 }
 0x310   : > { %v1318_v34 = vadd.f32 1.0, %v6035_v0  ;;  %v6037_v43 = vpop.eup %6036 }
 0x311   : > { %v1325_v45 = vadd.f32 1.0, %v6037_v43  ;;  %v1224_v43 = vmax.f32 %v978_v21, %v7315_v23 }
 0x312   : > { %6038 = vrcp.f32 %v1318_v34 }
 0x313   : > { %6040 = vrcp.f32 %v1325_v45 }
 0x31c   : > { %v6039_v44 = vpop.eup %6038 }
 0x31d   : > { %v1328_v55 = vmul.f32 %v6039_v44, %v1305_v11  ;;  %v6041_v48 = vpop.eup %6040 }
 0x31e   : > { %v1331_v14 = vsub.f32 1.0, %v6041_v48  ;;  %v1333_v52 = vmul.f32 %v6041_v48, %v7313_v54 }
 0x31f   : > { %v1329_v47 = vadd.f32 %v1328_v55, %v1313_v15 }
 0x321   : > { %6042 = vtanh.f32 %v1329_v47 }
 0x32b   : > { %v6043_v49 = vpop.eup %6042 }
 0x32c   : > { %v1332_v60 = vmul.f32 %v6043_v49, %v1331_v14 }
 0x32e   : > { %v1334_v58 = vadd.f32 %v1333_v52, %v1332_v60 }
 0x330   : > { %v7373_v44 = vsel %vm1341_vm15, %v1334_v58, %v7313_v54  ;;  %v1346_v45 = vsel %vm1341_vm15, %v1334_v58, %v1345_v51  ;;  %v1434_v54 = vunpack.c.l.bf16 %v7296_v53 }
 0x331   : > { %v1352_v50 = vpack.c.bf16 %v7373_v44, %v7373_v44  ;;  %v7377_v11 = vmax.f32 %v1224_v43, %v1346_v45  ;;  %v7416_v43 = vld [vmem:[#allocation2 + $0x20] ss:$12 sps:$4 sm:$0xff]  }
 0x332   : > { %v1436_v45 = vunpack.c.l.bf16 %v7416_v43 }
 0x333   : > { %1386 = vmatmul.mubr.bf16.vlgmr.msra.gmra.mrb[24].mxu1 %v1352_v50  ;;  %5437 = vmatmul.mubr.bf16.vlgmr.msra.gmra.mrb[28].mxu0 %v1352_v50 }
 0x334   : > { %1477 = vmatpush1.bf16.msra.mxu1 %v7111_v57  ;;  %5441 = vmatpush3.bf16.msra.mxu0 %v7088_v59 }
 0x335   : > { %1478 = vmatprep.subr.bf16.mxu1 %v7117_v1  ;;  %5442 = vmatprep.subr.bf16.mxu0 %v8681_v5 }
 0x336   : > { %1508 = vmatprep.mubr.bf16.mxu1 %v8682_v32  ;;  %5456 = vmatprep.mubr.msk.bf16.mxu0 %vm6568_vm7, %v8681_v5 }
 0x338   : > { %1479 = vmatpush1.bf16.msra.mxu1 %v7131_v3  ;;  %5443 = vmatpush3.bf16.msra.mxu0 %v7104_v6 }
 0x339   : > { %1480 = vmatprep.subr.bf16.mxu1 %v7138_v10  ;;  %5444 = vmatprep.subr.bf16.mxu0 %v8681_v5 }
 0x33c   : > { %1481 = vmatpush1.bf16.msra.mxu1 %v7151_v9  ;;  %5445 = vmatpush3.bf16.msra.mxu0 %v7122_v8 }
 0x33d   : > { %1482 = vmatprep.subr.bf16.mxu1 %v7158_v16  ;;  %5446 = vmatprep.subr.bf16.mxu0 %v8681_v5 }
 0x340   : > { %1483 = vmatpush1.bf16.msra.mxu1 %v7172_v13  ;;  %5447 = vmatpush3.bf16.msra.mxu0 %v7143_v12 }
 0x341   : > { %1484 = vmatprep.subr.bf16.mxu1 %v7179_v20  ;;  %5448 = vmatprep.subr.bf16.mxu0 %v8681_v5 }
 0x344   : > { %1485 = vmatpush1.bf16.msra.mxu1 %v7192_v17  ;;  %5449 = vmatpush3.bf16.msra.mxu0 %v7164_v18 }
 0x345   : > { %1486 = vmatprep.subr.bf16.mxu1 %v7198_v62  ;;  %5450 = vmatprep.subr.bf16.mxu0 %v8681_v5 }
 0x348   : > { %1487 = vmatpush1.bf16.msra.mxu1 %v7212_v24  ;;  %5451 = vmatpush3.bf16.msra.mxu0 %v7185_v22 }
 0x349   : > { %1488 = vmatprep.subr.bf16.mxu1 %v7219_v26  ;;  %5452 = vmatprep.subr.bf16.mxu0 %v8681_v5 }
 0x34c   : > { %1489 = vmatpush1.bf16.msra.mxu1 %v7228_v25  ;;  %5453 = vmatpush3.bf16.msra.mxu0 %v7206_v19 }
 0x34d   : > { %1490 = vmatprep.subr.bf16.mxu1 %v7238_v30  ;;  %5454 = vmatprep.subr.bf16.mxu0 %v8681_v5 }
 0x350   : > { %1491 = vmatpush1.bf16.msra.mxu1 %v7244_v27  ;;  %5455 = vmatpush3.bf16.msra.mxu0 %v7233_v28 }
 0x351   : > { %1599 = vmatprep.subr.bf16.mxu1 %v7099_v4  ;;  %5460 = vmatprep.subr.bf16.mxu0 %v8681_v5 }
 0x406   : > { %v1387_v23 = vpop.f32.mrb[24].mxu1  ;;  %v1428_v33 = vpop.f32.mrb[28].mxu0 }
 0x407   : > { %v1437_v0 = vadd.f32 %v1434_v54, %v1387_v23  ;;  %v1389_v34 = vpop.f32.mrb[25].mxu1  ;;  %v5438_v15 = vpop.f32.mrb[29].mxu0 }
 0x408   : > { %v1444_v55 = vadd.f32 %v1435_v61, %v1389_v34  ;;  %v1391_v47 = vpop.f32.mrb[26].mxu1  ;;  %v1431_v48 = vpop.f32.mrb[30].mxu0 }
 0x409   : > { %v4917_v14 = vmul.f32 -1.442695, %v1437_v0  ;;  %v1392_v49 = vpop.f32.mrb[27].mxu1  ;;  %v5439_v21 = vpop.f32.mrb[31].mxu0  ;;  %v1468_v47 = vstv %s1467_s1 }
 0x40a   : > { %v4918_v52 = vmul.f32 -1.442695, %v1444_v55  ;;  %v1463_v34 = vpop.permute.xlu1 %1462 }
 0x40b   : > { %6044 = vpow2.f32 %v4917_v14  ;;  %vm1464_vm0 = vcmp.eq.s32.totalorder %v1463_v34, 1 }
 0x40c   : > { %6046 = vpow2.f32 %v4918_v52 }
 0x415   : > { %v6045_v60 = vpop.eup %6044 }
 0x416   : > { %v1441_v51 = vadd.f32 1.0, %v6045_v60  ;;  %v6047_v29 = vpop.eup %6046 }
 0x417   : > { %v1448_v58 = vadd.f32 1.0, %v6047_v29 }
 0x418   : > { %6048 = vrcp.f32 %v1441_v51  ;;  %v1558_v51 = vunpack.c.h.bf16 %v7298_v63 }
 0x419   : > { %6050 = vrcp.f32 %v1448_v58 }
 0x422   : > { %v6049_v53 = vpop.eup %6048 }
 0x423   : > { %v1451_v50 = vmul.f32 %v6049_v53, %v1428_v33  ;;  %v6051_v23 = vpop.eup %6050 }
 0x424   : > { %v1454_v61 = vsub.f32 1.0, %v6051_v23  ;;  %v1456_v55 = vmul.f32 %v6051_v23, %v7373_v44 }
 0x425   : > { %v1452_v54 = vadd.f32 %v1451_v50, %v1436_v45 }
 0x427   : > { %6052 = vtanh.f32 %v1452_v54 }
 0x431   : > { %v6053_v0 = vpop.eup %6052 }
 0x432   : > { %v1455_v15 = vmul.f32 %v6053_v0, %v1454_v61 }
 0x434   : > { %v1457_v48 = vadd.f32 %v1456_v55, %v1455_v15 }
 0x436   : > { %v7422_v14 = vsel %vm1464_vm0, %v1457_v48, %v7373_v44  ;;  %v7424_v49 = vsel %vm1464_vm0, %v1457_v48, %v1468_v47  ;;  %v1557_v44 = vunpack.c.l.bf16 %v7298_v63  ;;  %v1559_v63 = vunpack.c.h.bf16 %v7416_v43 }
 0x437   : > { %v1470_v33 = vmax.f32 %v7377_v11, %v7424_v49  ;;  %v1475_v21 = vpack.c.bf16 %v7422_v14, %v7422_v14  ;;  %v1680_v11 = vunpack.c.l.bf16 %v7300_v56 }
 0x439   : > { %1509 = vmatmul.mubr.bf16.vlgmr.msra.gmra.mrb[28].mxu1 %v1475_v21  ;;  %5457 = vmatmul.mubr.bf16.vlgmr.msra.gmra.mrb[32].mxu0 %v1475_v21 }
 0x43a   : > { %1600 = vmatpush1.bf16.msra.mxu1 %v7111_v57  ;;  %5461 = vmatpush3.bf16.msra.mxu0 %v7088_v59 }
 0x43b   : > { %1601 = vmatprep.subr.bf16.mxu1 %v7117_v1  ;;  %5462 = vmatprep.subr.bf16.mxu0 %v8681_v5 }
 0x43c   : > { %1631 = vmatprep.mubr.bf16.mxu1 %v8682_v32  ;;  %5476 = vmatprep.mubr.msk.bf16.mxu0 %vm6568_vm7, %v8681_v5 }
 0x43e   : > { %1602 = vmatpush1.bf16.msra.mxu1 %v7131_v3  ;;  %5463 = vmatpush3.bf16.msra.mxu0 %v7104_v6 }
 0x43f   : > { %1603 = vmatprep.subr.bf16.mxu1 %v7138_v10  ;;  %5464 = vmatprep.subr.bf16.mxu0 %v8681_v5 }
 0x442   : > { %1604 = vmatpush1.bf16.msra.mxu1 %v7151_v9  ;;  %5465 = vmatpush3.bf16.msra.mxu0 %v7122_v8 }
 0x443   : > { %1605 = vmatprep.subr.bf16.mxu1 %v7158_v16  ;;  %5466 = vmatprep.subr.bf16.mxu0 %v8681_v5 }
 0x446   : > { %1606 = vmatpush1.bf16.msra.mxu1 %v7172_v13  ;;  %5467 = vmatpush3.bf16.msra.mxu0 %v7143_v12 }
 0x447   : > { %1607 = vmatprep.subr.bf16.mxu1 %v7179_v20  ;;  %5468 = vmatprep.subr.bf16.mxu0 %v8681_v5 }
 0x44a   : > { %1608 = vmatpush1.bf16.msra.mxu1 %v7192_v17  ;;  %5469 = vmatpush3.bf16.msra.mxu0 %v7164_v18 }
 0x44b   : > { %1609 = vmatprep.subr.bf16.mxu1 %v7198_v62  ;;  %5470 = vmatprep.subr.bf16.mxu0 %v8681_v5 }
 0x44e   : > { %1610 = vmatpush1.bf16.msra.mxu1 %v7212_v24  ;;  %5471 = vmatpush3.bf16.msra.mxu0 %v7185_v22 }
 0x44f   : > { %1611 = vmatprep.subr.bf16.mxu1 %v7219_v26  ;;  %5472 = vmatprep.subr.bf16.mxu0 %v8681_v5 }
 0x452   : > { %1612 = vmatpush1.bf16.msra.mxu1 %v7228_v25  ;;  %5473 = vmatpush3.bf16.msra.mxu0 %v7206_v19 }
 0x453   : > { %1613 = vmatprep.subr.bf16.mxu1 %v7238_v30  ;;  %5474 = vmatprep.subr.bf16.mxu0 %v8681_v5 }
 0x456   : > { %1614 = vmatpush1.bf16.msra.mxu1 %v7244_v27  ;;  %5475 = vmatpush3.bf16.msra.mxu0 %v7233_v28 }
 0x457   : > { %1722 = vmatprep.subr.bf16.mxu1 %v7099_v4  ;;  %5480 = vmatprep.subr.bf16.mxu0 %v8681_v5 }
 0x50c   : > { %v1510_v52 = vpop.f32.mrb[28].mxu1  ;;  %v1551_v60 = vpop.f32.mrb[32].mxu0 }
 0x50d   : > { %v1560_v29 = vadd.f32 %v1557_v44, %v1510_v52  ;;  %v1512_v58 = vpop.f32.mrb[29].mxu1  ;;  %v5458_v53 = vpop.f32.mrb[33].mxu0 }
 0x50e   : > { %v1567_v45 = vadd.f32 %v1558_v51, %v1512_v58  ;;  %v1514_v50 = vpop.f32.mrb[30].mxu1  ;;  %v1554_v54 = vpop.f32.mrb[34].mxu0 }
 0x50f   : > { %v4921_v23 = vmul.f32 -1.442695, %v1560_v29  ;;  %v1515_v61 = vpop.f32.mrb[31].mxu1  ;;  %v5459_v0 = vpop.f32.mrb[35].mxu0  ;;  %v1591_v50 = vstv %s1590_s24 }
 0x510   : > { %v4922_v34 = vmul.f32 -1.442695, %v1567_v45  ;;  %v1586_v54 = vpop.permute.xlu1 %1585 }
 0x511   : > { %6054 = vpow2.f32 %v4921_v23  ;;  %vm1587_vm1 = vcmp.eq.s32.totalorder %v1586_v54, 1 }
 0x512   : > { %6056 = vpow2.f32 %v4922_v34 }
 0x51b   : > { %v6055_v15 = vpop.eup %6054 }
 0x51c   : > { %v1564_v55 = vadd.f32 1.0, %v6055_v15  ;;  %v6057_v47 = vpop.eup %6056 }
 0x51d   : > { %v1571_v48 = vadd.f32 1.0, %v6057_v47 }
 0x51e   : > { %6058 = vrcp.f32 %v1564_v55 }
 0x51f   : > { %6060 = vrcp.f32 %v1571_v48 }
 0x528   : > { %v6059_v21 = vpop.eup %6058 }
 0x529   : > { %v1574_v44 = vmul.f32 %v6059_v21, %v1551_v60  ;;  %v6061_v51 = vpop.eup %6060 }
 0x52a   : > { %v1577_v29 = vsub.f32 1.0, %v6061_v51  ;;  %v1579_v53 = vmul.f32 %v6061_v51, %v7422_v14 }
 0x52b   : > { %v1575_v52 = vadd.f32 %v1574_v44, %v1559_v63 }
 0x52d   : > { %6062 = vtanh.f32 %v1575_v52 }
 0x537   : > { %v6063_v58 = vpop.eup %6062 }
 0x538   : > { %v1578_v45 = vmul.f32 %v6063_v58, %v1577_v29 }
 0x53a   : > { %v1580_v23 = vadd.f32 %v1579_v53, %v1578_v45 }
 0x53c   : > { %v7471_v61 = vsel %vm1587_vm1, %v1580_v23, %v7422_v14  ;;  %v1592_v43 = vsel %vm1587_vm1, %v1580_v23, %v1591_v50  ;;  %v7517_v50 = vld [vmem:[#allocation2 + $0x38] ss:$12 sps:$4 sm:$0xff]  }
 0x53d   : > { %v7476_v60 = vmax.f32 %v1470_v33, %v1592_v43  ;;  %v1598_v0 = vpack.c.bf16 %v7471_v61, %v7471_v61  ;;  %v1681_v33 = vunpack.c.h.bf16 %v7300_v56  ;;  %v1682_v54 = vunpack.c.l.bf16 %v7517_v50 }
 0x53f   : > { %1632 = vmatmul.mubr.bf16.vlgmr.msra.gmra.mrb[32].mxu1 %v1598_v0  ;;  %5477 = vmatmul.mubr.bf16.vlgmr.msra.gmra.mrb[36].mxu0 %v1598_v0 }
 0x540   : > { %1723 = vmatpush1.bf16.msra.mxu1 %v7111_v57  ;;  %5481 = vmatpush3.bf16.msra.mxu0 %v7088_v59 }
 0x541   : > { %1724 = vmatprep.subr.bf16.mxu1 %v7117_v1  ;;  %5482 = vmatprep.subr.bf16.mxu0 %v8681_v5 }
 0x542   : > { %1754 = vmatprep.mubr.bf16.mxu1 %v8682_v32  ;;  %5496 = vmatprep.mubr.msk.bf16.mxu0 %vm6568_vm7, %v8681_v5 }
 0x544   : > { %1725 = vmatpush1.bf16.msra.mxu1 %v7131_v3  ;;  %5483 = vmatpush3.bf16.msra.mxu0 %v7104_v6 }
 0x545   : > { %1726 = vmatprep.subr.bf16.mxu1 %v7138_v10  ;;  %5484 = vmatprep.subr.bf16.mxu0 %v8681_v5 }
 0x548   : > { %1727 = vmatpush1.bf16.msra.mxu1 %v7151_v9  ;;  %5485 = vmatpush3.bf16.msra.mxu0 %v7122_v8 }
 0x549   : > { %1728 = vmatprep.subr.bf16.mxu1 %v7158_v16  ;;  %5486 = vmatprep.subr.bf16.mxu0 %v8681_v5 }
 0x54c   : > { %1729 = vmatpush1.bf16.msra.mxu1 %v7172_v13  ;;  %5487 = vmatpush3.bf16.msra.mxu0 %v7143_v12 }
 0x54d   : > { %1730 = vmatprep.subr.bf16.mxu1 %v7179_v20  ;;  %5488 = vmatprep.subr.bf16.mxu0 %v8681_v5 }
 0x550   : > { %1731 = vmatpush1.bf16.msra.mxu1 %v7192_v17  ;;  %5489 = vmatpush3.bf16.msra.mxu0 %v7164_v18 }
 0x551   : > { %1732 = vmatprep.subr.bf16.mxu1 %v7198_v62  ;;  %5490 = vmatprep.subr.bf16.mxu0 %v8681_v5 }
 0x554   : > { %1733 = vmatpush1.bf16.msra.mxu1 %v7212_v24  ;;  %5491 = vmatpush3.bf16.msra.mxu0 %v7185_v22 }
 0x555   : > { %1734 = vmatprep.subr.bf16.mxu1 %v7219_v26  ;;  %5492 = vmatprep.subr.bf16.mxu0 %v8681_v5 }
 0x558   : > { %1735 = vmatpush1.bf16.msra.mxu1 %v7228_v25  ;;  %5493 = vmatpush3.bf16.msra.mxu0 %v7206_v19 }
 0x559   : > { %1736 = vmatprep.subr.bf16.mxu1 %v7238_v30  ;;  %5494 = vmatprep.subr.bf16.mxu0 %v8681_v5 }
 0x55c   : > { %1737 = vmatpush1.bf16.msra.mxu1 %v7244_v27  ;;  %5495 = vmatpush3.bf16.msra.mxu0 %v7233_v28 }
 0x55d   : > { %1845 = vmatprep.subr.bf16.mxu1 %v7099_v4  ;;  %5500 = vmatprep.subr.bf16.mxu0 %v8681_v5 }
 0x612   : > { %v1633_v14 = vpop.f32.mrb[32].mxu1  ;;  %v1674_v49 = vpop.f32.mrb[36].mxu0 }
 0x613   : > { %v1683_v34 = vadd.f32 %v1680_v11, %v1633_v14  ;;  %v1635_v15 = vpop.f32.mrb[33].mxu1  ;;  %v5478_v55 = vpop.f32.mrb[37].mxu0 }
 0x614   : > { %v1690_v47 = vadd.f32 %v1681_v33, %v1635_v15  ;;  %v1637_v48 = vpop.f32.mrb[34].mxu1  ;;  %v1677_v21 = vpop.f32.mrb[38].mxu0  ;;  %v1714_v15 = vstv %s1713_s13 }
 0x615   : > { %v4925_v63 = vmul.f32 -1.442695, %v1683_v34  ;;  %v1638_v44 = vpop.f32.mrb[35].mxu1  ;;  %v5479_v52 = vpop.f32.mrb[39].mxu0 }
 0x616   : > { %v4926_v51 = vmul.f32 -1.442695, %v1690_v47  ;;  %v1709_v55 = vpop.permute.xlu0 %1708 }
 0x617   : > { %6064 = vpow2.f32 %v4925_v63  ;;  %vm1710_vm2 = vcmp.eq.s32.totalorder %v1709_v55, 1 }
 0x618   : > { %6066 = vpow2.f32 %v4926_v51  ;;  %v1804_v51 = vunpack.c.h.bf16 %v7302_v31 }
 0x621   : > { %v6065_v29 = vpop.eup %6064 }
 0x622   : > { %v1687_v58 = vadd.f32 1.0, %v6065_v29  ;;  %v6067_v53 = vpop.eup %6066 }
 0x623   : > { %v1694_v45 = vadd.f32 1.0, %v6067_v53 }
 0x624   : > { %6068 = vrcp.f32 %v1687_v58 }
 0x625   : > { %6070 = vrcp.f32 %v1694_v45 }
 0x62e   : > { %v6069_v56 = vpop.eup %6068 }
 0x62f   : > { %v1697_v23 = vmul.f32 %v6069_v56, %v1674_v49  ;;  %v6071_v0 = vpop.eup %6070 }
 0x630   : > { %v1700_v11 = vsub.f32 1.0, %v6071_v0  ;;  %v1702_v33 = vmul.f32 %v6071_v0, %v7471_v61 }
 0x631   : > { %v1698_v43 = vadd.f32 %v1697_v23, %v1682_v54 }
 0x633   : > { %6072 = vtanh.f32 %v1698_v43 }
 0x63d   : > { %v6073_v14 = vpop.eup %6072 }
 0x63e   : > { %v1701_v34 = vmul.f32 %v6073_v14, %v1700_v11 }
 0x640   : > { %v1703_v47 = vadd.f32 %v1702_v33, %v1701_v34 }
 0x642   : > { %v7523_v48 = vsel %vm1710_vm2, %v1703_v47, %v7471_v61  ;;  %v7525_v21 = vsel %vm1710_vm2, %v1703_v47, %v1714_v15  ;;  %v1803_v61 = vunpack.c.l.bf16 %v7302_v31  ;;  %v1805_v31 = vunpack.c.h.bf16 %v7517_v50 }
 0x643   : > { %v1716_v49 = vmax.f32 %v7476_v60, %v7525_v21  ;;  %v1721_v63 = vpack.c.bf16 %v7523_v48, %v7523_v48  ;;  %v1926_v60 = vunpack.c.l.bf16 %v7304_v7 }
 0x645   : > { %1755 = vmatmul.mubr.bf16.vlgmr.msra.gmra.mrb[36].mxu1 %v1721_v63  ;;  %5497 = vmatmul.mubr.bf16.vlgmr.msra.gmra.mrb[40].mxu0 %v1721_v63 }
 0x646   : > { %1846 = vmatpush1.bf16.msra.mxu1 %v7111_v57  ;;  %5501 = vmatpush3.bf16.msra.mxu0 %v7088_v59 }
 0x647   : > { %1847 = vmatprep.subr.bf16.mxu1 %v7117_v1  ;;  %5502 = vmatprep.subr.bf16.mxu0 %v8681_v5 }
 0x648   : > { %1877 = vmatprep.mubr.bf16.mxu1 %v8682_v32  ;;  %5516 = vmatprep.mubr.msk.bf16.mxu0 %vm6568_vm7, %v8681_v5 }
 0x64a   : > { %1848 = vmatpush1.bf16.msra.mxu1 %v7131_v3  ;;  %5503 = vmatpush3.bf16.msra.mxu0 %v7104_v6 }
 0x64b   : > { %1849 = vmatprep.subr.bf16.mxu1 %v7138_v10  ;;  %5504 = vmatprep.subr.bf16.mxu0 %v8681_v5 }
 0x64e   : > { %1850 = vmatpush1.bf16.msra.mxu1 %v7151_v9  ;;  %5505 = vmatpush3.bf16.msra.mxu0 %v7122_v8 }
 0x64f   : > { %1851 = vmatprep.subr.bf16.mxu1 %v7158_v16  ;;  %5506 = vmatprep.subr.bf16.mxu0 %v8681_v5 }
 0x652   : > { %1852 = vmatpush1.bf16.msra.mxu1 %v7172_v13  ;;  %5507 = vmatpush3.bf16.msra.mxu0 %v7143_v12 }
 0x653   : > { %1853 = vmatprep.subr.bf16.mxu1 %v7179_v20  ;;  %5508 = vmatprep.subr.bf16.mxu0 %v8681_v5 }
 0x656   : > { %1854 = vmatpush1.bf16.msra.mxu1 %v7192_v17  ;;  %5509 = vmatpush3.bf16.msra.mxu0 %v7164_v18 }
 0x657   : > { %1855 = vmatprep.subr.bf16.mxu1 %v7198_v62  ;;  %5510 = vmatprep.subr.bf16.mxu0 %v8681_v5 }
 0x65a   : > { %1856 = vmatpush1.bf16.msra.mxu1 %v7212_v24  ;;  %5511 = vmatpush3.bf16.msra.mxu0 %v7185_v22 }
 0x65b   : > { %1857 = vmatprep.subr.bf16.mxu1 %v7219_v26  ;;  %5512 = vmatprep.subr.bf16.mxu0 %v8681_v5 }
 0x65e   : > { %1858 = vmatpush1.bf16.msra.mxu1 %v7228_v25  ;;  %5513 = vmatpush3.bf16.msra.mxu0 %v7206_v19 }
 0x65f   : > { %1859 = vmatprep.subr.bf16.mxu1 %v7238_v30  ;;  %5514 = vmatprep.subr.bf16.mxu0 %v8681_v5 }
 0x662   : > { %1860 = vmatpush1.bf16.msra.mxu1 %v7244_v27  ;;  %5515 = vmatpush3.bf16.msra.mxu0 %v7233_v28 }
 0x663   : > { %1968 = vmatprep.subr.bf16.mxu1 %v7099_v4  ;;  %5520 = vmatprep.subr.bf16.mxu0 %v8681_v5 }
 0x718   : > { %v1756_v44 = vpop.f32.mrb[36].mxu1  ;;  %v1797_v52 = vpop.f32.mrb[40].mxu0 }
 0x719   : > { %v1806_v29 = vadd.f32 %v1803_v61, %v1756_v44  ;;  %v1758_v58 = vpop.f32.mrb[37].mxu1  ;;  %v5498_v53 = vpop.f32.mrb[41].mxu0 }
 0x71a   : > { %v1813_v45 = vadd.f32 %v1804_v51, %v1758_v58  ;;  %v1760_v56 = vpop.f32.mrb[38].mxu1  ;;  %v1800_v54 = vpop.f32.mrb[42].mxu0  ;;  %v1837_v53 = vstv %s1836_s17 }
 0x71b   : > { %v4929_v23 = vmul.f32 -1.442695, %v1806_v29  ;;  %v1761_v43 = vpop.f32.mrb[39].mxu1  ;;  %v5499_v0 = vpop.f32.mrb[43].mxu0 }
 0x71c   : > { %v4930_v11 = vmul.f32 -1.442695, %v1813_v45  ;;  %v1832_v45 = vpop.permute.xlu1 %1831 }
 0x71d   : > { %6074 = vpow2.f32 %v4929_v23  ;;  %vm1833_vm3 = vcmp.eq.s32.totalorder %v1832_v45, 1 }
 0x71e   : > { %6076 = vpow2.f32 %v4930_v11 }
 0x727   : > { %v6075_v14 = vpop.eup %6074 }
 0x728   : > { %v1810_v33 = vadd.f32 1.0, %v6075_v14  ;;  %v6077_v34 = vpop.eup %6076 }
 0x729   : > { %v1817_v15 = vadd.f32 1.0, %v6077_v34 }
 0x72a   : > { %6078 = vrcp.f32 %v1810_v33 }
 0x72b   : > { %6080 = vrcp.f32 %v1817_v15 }
 0x734   : > { %v6079_v55 = vpop.eup %6078 }
 0x735   : > { %v1820_v47 = vmul.f32 %v6079_v55, %v1797_v52  ;;  %v6081_v61 = vpop.eup %6080 }
 0x736   : > { %v1823_v44 = vsub.f32 1.0, %v6081_v61  ;;  %v1825_v29 = vmul.f32 %v6081_v61, %v7523_v48 }
 0x737   : > { %v1821_v63 = vadd.f32 %v1820_v47, %v1805_v31 }
 0x739   : > { %6082 = vtanh.f32 %v1821_v63 }
 0x743   : > { %v6083_v51 = vpop.eup %6082 }
 0x744   : > { %v1824_v58 = vmul.f32 %v6083_v51, %v1823_v44 }
 0x746   : > { %v1826_v56 = vadd.f32 %v1825_v29, %v1824_v58  ;;  %v7618_v29 = vld [vmem:[#allocation2 + $0x50] ss:$12 sps:$4 sm:$0xff]  }
 0x747   : > { %v1928_v58 = vunpack.c.l.bf16 %v7618_v29 }
 0x748   : > { %v7572_v54 = vsel %vm1833_vm3, %v1826_v56, %v7523_v48  ;;  %v1838_v50 = vsel %vm1833_vm3, %v1826_v56, %v1837_v53 }
 0x749   : > { %v7577_v52 = vmax.f32 %v1716_v49, %v1838_v50  ;;  %v1844_v23 = vpack.c.bf16 %v7572_v54, %v7572_v54  ;;  %v1927_v49 = vunpack.c.h.bf16 %v7304_v7 }
 0x74b   : > { %1878 = vmatmul.mubr.bf16.vlgmr.msra.gmra.mrb[40].mxu1 %v1844_v23  ;;  %5517 = vmatmul.mubr.bf16.vlgmr.msra.gmra.mrb[44].mxu0 %v1844_v23 }
 0x74c   : > { %1969 = vmatpush1.bf16.msra.mxu1 %v7111_v57  ;;  %5521 = vmatpush3.bf16.msra.mxu0 %v7088_v59 }
 0x74d   : > { %1970 = vmatprep.subr.bf16.mxu1 %v7117_v1  ;;  %5522 = vmatprep.subr.bf16.mxu0 %v8681_v5 }
 0x74e   : > { %2000 = vmatprep.mubr.bf16.mxu1 %v8682_v32  ;;  %5536 = vmatprep.mubr.msk.bf16.mxu0 %vm6568_vm7, %v8681_v5 }
 0x750   : > { %1971 = vmatpush1.bf16.msra.mxu1 %v7131_v3  ;;  %5523 = vmatpush3.bf16.msra.mxu0 %v7104_v6 }
 0x751   : > { %1972 = vmatprep.subr.bf16.mxu1 %v7138_v10  ;;  %5524 = vmatprep.subr.bf16.mxu0 %v8681_v5 }
 0x754   : > { %1973 = vmatpush1.bf16.msra.mxu1 %v7151_v9  ;;  %5525 = vmatpush3.bf16.msra.mxu0 %v7122_v8 }
 0x755   : > { %1974 = vmatprep.subr.bf16.mxu1 %v7158_v16  ;;  %5526 = vmatprep.subr.bf16.mxu0 %v8681_v5 }
 0x758   : > { %1975 = vmatpush1.bf16.msra.mxu1 %v7172_v13  ;;  %5527 = vmatpush3.bf16.msra.mxu0 %v7143_v12 }
 0x759   : > { %1976 = vmatprep.subr.bf16.mxu1 %v7179_v20  ;;  %5528 = vmatprep.subr.bf16.mxu0 %v8681_v5 }
 0x75c   : > { %1977 = vmatpush1.bf16.msra.mxu1 %v7192_v17  ;;  %5529 = vmatpush3.bf16.msra.mxu0 %v7164_v18 }
 0x75d   : > { %1978 = vmatprep.subr.bf16.mxu1 %v7198_v62  ;;  %5530 = vmatprep.subr.bf16.mxu0 %v8681_v5 }
 0x760   : > { %1979 = vmatpush1.bf16.msra.mxu1 %v7212_v24  ;;  %5531 = vmatpush3.bf16.msra.mxu0 %v7185_v22 }
 0x761   : > { %1980 = vmatprep.subr.bf16.mxu1 %v7219_v26  ;;  %5532 = vmatprep.subr.bf16.mxu0 %v8681_v5 }
 0x764   : > { %1981 = vmatpush1.bf16.msra.mxu1 %v7228_v25  ;;  %5533 = vmatpush3.bf16.msra.mxu0 %v7206_v19 }
 0x765   : > { %1982 = vmatprep.subr.bf16.mxu1 %v7238_v30  ;;  %5534 = vmatprep.subr.bf16.mxu0 %v8681_v5 }
 0x768   : > { %1983 = vmatpush1.bf16.msra.mxu1 %v7244_v27  ;;  %5535 = vmatpush3.bf16.msra.mxu0 %v7233_v28 }
 0x769   : > { %2091 = vmatprep.subr.bf16.mxu1 %v7099_v4  ;;  %5540 = vmatprep.subr.bf16.mxu0 %v8681_v5 }
 0x81e   : > { %v1879_v48 = vpop.f32.mrb[40].mxu1  ;;  %v1920_v21 = vpop.f32.mrb[44].mxu0 }
 0x81f   : > { %v1929_v43 = vadd.f32 %v1926_v60, %v1879_v48  ;;  %v1881_v0 = vpop.f32.mrb[41].mxu1  ;;  %v5518_v11 = vpop.f32.mrb[45].mxu0 }
 0x820   : > { %v1936_v14 = vadd.f32 %v1927_v49, %v1881_v0  ;;  %v1883_v33 = vpop.f32.mrb[42].mxu1  ;;  %v1923_v34 = vpop.f32.mrb[46].mxu0  ;;  %v1960_v49 = vstv %s1959_s20 }
 0x821   : > { %v4933_v15 = vmul.f32 -1.442695, %v1929_v43  ;;  %v1884_v55 = vpop.f32.mrb[43].mxu1  ;;  %v5519_v31 = vpop.f32.mrb[47].mxu0 }
 0x822   : > { %v4934_v47 = vmul.f32 -1.442695, %v1936_v14  ;;  %v1955_v43 = vpop.permute.xlu0 %1954 }
 0x823   : > { %6084 = vpow2.f32 %v4933_v15  ;;  %vm1956_vm4 = vcmp.eq.s32.totalorder %v1955_v43, 1  ;;  %v2051_v43 = vunpack.c.h.bf16 %v7618_v29 }
 0x824   : > { %6086 = vpow2.f32 %v4934_v47 }
 0x82d   : > { %v6085_v63 = vpop.eup %6084 }
 0x82e   : > { %v1933_v61 = vadd.f32 1.0, %v6085_v63  ;;  %v6087_v44 = vpop.eup %6086 }
 0x82f   : > { %v1940_v51 = vadd.f32 1.0, %v6087_v44 }
 0x830   : > { %6088 = vrcp.f32 %v1933_v61 }
 0x831   : > { %6090 = vrcp.f32 %v1940_v51 }
 0x83a   : > { %v6089_v7 = vpop.eup %6088 }
 0x83b   : > { %v1943_v53 = vmul.f32 %v6089_v7, %v1920_v21  ;;  %v6091_v56 = vpop.eup %6090 }
 0x83c   : > { %v1946_v50 = vsub.f32 1.0, %v6091_v56  ;;  %v1948_v60 = vmul.f32 %v6091_v56, %v7572_v54 }
 0x83d   : > { %v1944_v45 = vadd.f32 %v1943_v53, %v1928_v58 }
 0x83f   : > { %6092 = vtanh.f32 %v1944_v45 }
 0x849   : > { %v6093_v23 = vpop.eup %6092 }
 0x84a   : > { %v1947_v48 = vmul.f32 %v6093_v23, %v1946_v50 }
 0x84c   : > { %v1949_v0 = vadd.f32 %v1948_v60, %v1947_v48 }
 0x84e   : > { %v7624_v11 = vsel %vm1956_vm4, %v1949_v0, %v7572_v54  ;;  %v7626_v14 = vsel %vm1956_vm4, %v1949_v0, %v1960_v49  ;;  %v1965_v54 = vld [vmem:[#allocation2 + $0x54] sm:$0xff] }
 0x84f   : > { %v1962_v21 = vmax.f32 %v7577_v52, %v7626_v14  ;;  %v1967_v33 = vpack.c.bf16 %v7624_v11, %v7624_v11  ;;  %v2049_v34 = vunpack.c.l.bf16 %v1965_v54  ;;  %v2050_v61 = vunpack.c.h.bf16 %v1965_v54  ;;  %v2088_v52 = vld [vmem:[#allocation2 + $0x60] sm:$0xff] }
 0x851   : > { %2001 = vmatmul.mubr.bf16.vlgmr.msra.gmra.mrb[44].mxu1 %v1967_v33  ;;  %5537 = vmatmul.mubr.bf16.vlgmr.msra.gmra.mrb[48].mxu0 %v1967_v33 }
 0x852   : > { %2092 = vmatpush1.bf16.msra.mxu1 %v7111_v57  ;;  %5541 = vmatpush3.bf16.msra.mxu0 %v7088_v59 }
 0x853   : > { %2093 = vmatprep.subr.bf16.mxu1 %v7117_v1  ;;  %5542 = vmatprep.subr.bf16.mxu0 %v8681_v5 }
 0x854   : > { %2123 = vmatprep.mubr.bf16.mxu1 %v8682_v32  ;;  %5556 = vmatprep.mubr.msk.bf16.mxu0 %vm6568_vm7, %v8681_v5 }
 0x856   : > { %2094 = vmatpush1.bf16.msra.mxu1 %v7131_v3  ;;  %5543 = vmatpush3.bf16.msra.mxu0 %v7104_v6 }
 0x857   : > { %2095 = vmatprep.subr.bf16.mxu1 %v7138_v10  ;;  %5544 = vmatprep.subr.bf16.mxu0 %v8681_v5 }
 0x85a   : > { %2096 = vmatpush1.bf16.msra.mxu1 %v7151_v9  ;;  %5545 = vmatpush3.bf16.msra.mxu0 %v7122_v8 }
 0x85b   : > { %2097 = vmatprep.subr.bf16.mxu1 %v7158_v16  ;;  %5546 = vmatprep.subr.bf16.mxu0 %v8681_v5 }
 0x85e   : > { %2098 = vmatpush1.bf16.msra.mxu1 %v7172_v13  ;;  %5547 = vmatpush3.bf16.msra.mxu0 %v7143_v12 }
 0x85f   : > { %2099 = vmatprep.subr.bf16.mxu1 %v7179_v20  ;;  %5548 = vmatprep.subr.bf16.mxu0 %v8681_v5 }
 0x862   : > { %2100 = vmatpush1.bf16.msra.mxu1 %v7192_v17  ;;  %5549 = vmatpush3.bf16.msra.mxu0 %v7164_v18 }
 0x863   : > { %2101 = vmatprep.subr.bf16.mxu1 %v7198_v62  ;;  %5550 = vmatprep.subr.bf16.mxu0 %v8681_v5 }
 0x866   : > { %2102 = vmatpush1.bf16.msra.mxu1 %v7212_v24  ;;  %5551 = vmatpush3.bf16.msra.mxu0 %v7185_v22 }
 0x867   : > { %2103 = vmatprep.subr.bf16.mxu1 %v7219_v26  ;;  %5552 = vmatprep.subr.bf16.mxu0 %v8681_v5 }
 0x86a   : > { %2104 = vmatpush1.bf16.msra.mxu1 %v7228_v25  ;;  %5553 = vmatpush3.bf16.msra.mxu0 %v7206_v19 }
 0x86b   : > { %2105 = vmatprep.subr.bf16.mxu1 %v7238_v30  ;;  %5554 = vmatprep.subr.bf16.mxu0 %v8681_v5 }
 0x86e   : > { %2106 = vmatpush1.bf16.msra.mxu1 %v7244_v27  ;;  %5555 = vmatpush3.bf16.msra.mxu0 %v7233_v28 }
 0x86f   : > { %2214 = vmatprep.subr.bf16.mxu1 %v7099_v4  ;;  %5560 = vmatprep.subr.bf16.mxu0 %v8681_v5 }
 0x924   : > { %v2002_v15 = vpop.f32.mrb[44].mxu1  ;;  %v2043_v55 = vpop.f32.mrb[48].mxu0 }
 0x925   : > { %v2052_v31 = vadd.f32 %v2049_v34, %v2002_v15  ;;  %v2004_v47 = vpop.f32.mrb[45].mxu1  ;;  %v5538_v63 = vpop.f32.mrb[49].mxu0 }
 0x926   : > { %v2006_v44 = vpop.f32.mrb[46].mxu1  ;;  %v2046_v51 = vpop.f32.mrb[50].mxu0  ;;  %v2059_v45 = vadd.f32 %v2050_v61, %v2004_v47  ;;  %v2083_v63 = vstv %s2082_s25 }
 0x927   : > { %v4937_v7 = vmul.f32 -1.442695, %v2052_v31  ;;  %v2007_v58 = vpop.f32.mrb[47].mxu1  ;;  %v5539_v53 = vpop.f32.mrb[51].mxu0 }
 0x928   : > { %v4938_v56 = vmul.f32 -1.442695, %v2059_v45  ;;  %v2078_v61 = vpop.permute.xlu1 %2077 }
 0x929   : > { %6094 = vpow2.f32 %v4937_v7  ;;  %vm2079_vm5 = vcmp.eq.s32.totalorder %v2078_v61, 1 }
 0x92a   : > { %6096 = vpow2.f32 %v4938_v56  ;;  %v2173_v56 = vunpack.c.h.bf16 %v2088_v52 }
 0x933   : > { %v6095_v50 = vpop.eup %6094 }
 0x934   : > { %v2056_v23 = vadd.f32 1.0, %v6095_v50  ;;  %v6097_v60 = vpop.eup %6096 }
 0x935   : > { %v2063_v48 = vadd.f32 1.0, %v6097_v60 }
 0x936   : > { %6098 = vrcp.f32 %v2056_v23 }
 0x937   : > { %6100 = vrcp.f32 %v2063_v48 }
 0x940   : > { %v6099_v49 = vpop.eup %6098 }
 0x941   : > { %v2066_v0 = vmul.f32 %v6099_v49, %v2043_v55  ;;  %v6101_v54 = vpop.eup %6100 }
 0x942   : > { %v2069_v34 = vsub.f32 1.0, %v6101_v54  ;;  %v2071_v31 = vmul.f32 %v6101_v54, %v7624_v11 }
 0x943   : > { %v2067_v33 = vadd.f32 %v2066_v0, %v2051_v43 }
 0x945   : > { %6102 = vtanh.f32 %v2067_v33 }
 0x94f   : > { %v6103_v15 = vpop.eup %6102 }
 0x950   : > { %v2070_v47 = vmul.f32 %v6103_v15, %v2069_v34 }
 0x952   : > { %v2072_v44 = vadd.f32 %v2071_v31, %v2070_v47  ;;  %v7715_v31 = vld [vmem:[#allocation2 + $0x68] ss:$12 sps:$4 sm:$0xff]  }
 0x954   : > { %v7671_v51 = vsel %vm2079_vm5, %v2072_v44, %v7624_v11  ;;  %v2084_v29 = vsel %vm2079_vm5, %v2072_v44, %v2083_v63  ;;  %v2172_v11 = vunpack.c.l.bf16 %v2088_v52  ;;  %v2174_v63 = vunpack.c.l.bf16 %v7715_v31 }
 0x955   : > { %v7676_v55 = vmax.f32 %v1962_v21, %v2084_v29  ;;  %v2090_v7 = vpack.c.bf16 %v7671_v51, %v7671_v51 }
 0x957   : > { %2124 = vmatmul.mubr.bf16.vlgmr.msra.gmra.mrb[48].mxu1 %v2090_v7  ;;  %5557 = vmatmul.mubr.bf16.vlgmr.msra.gmra.mrb[52].mxu0 %v2090_v7 }
 0x958   : > { %2215 = vmatpush1.bf16.msra.mxu1 %v7111_v57  ;;  %5561 = vmatpush3.bf16.msra.mxu0 %v7088_v59 }
 0x959   : > { %2216 = vmatprep.subr.bf16.mxu1 %v7117_v1  ;;  %5562 = vmatprep.subr.bf16.mxu0 %v8681_v5 }
 0x95a   : > { %2246 = vmatprep.mubr.bf16.mxu1 %v8682_v32  ;;  %5576 = vmatprep.mubr.msk.bf16.mxu0 %vm6568_vm7, %v8681_v5 }
 0x95c   : > { %2217 = vmatpush1.bf16.msra.mxu1 %v7131_v3  ;;  %5563 = vmatpush3.bf16.msra.mxu0 %v7104_v6 }
 0x95d   : > { %2218 = vmatprep.subr.bf16.mxu1 %v7138_v10  ;;  %5564 = vmatprep.subr.bf16.mxu0 %v8681_v5 }
 0x960   : > { %2219 = vmatpush1.bf16.msra.mxu1 %v7151_v9  ;;  %5565 = vmatpush3.bf16.msra.mxu0 %v7122_v8 }
 0x961   : > { %2220 = vmatprep.subr.bf16.mxu1 %v7158_v16  ;;  %5566 = vmatprep.subr.bf16.mxu0 %v8681_v5 }
 0x964   : > { %2221 = vmatpush1.bf16.msra.mxu1 %v7172_v13  ;;  %5567 = vmatpush3.bf16.msra.mxu0 %v7143_v12 }
 0x965   : > { %2222 = vmatprep.subr.bf16.mxu1 %v7179_v20  ;;  %5568 = vmatprep.subr.bf16.mxu0 %v8681_v5 }
 0x968   : > { %2223 = vmatpush1.bf16.msra.mxu1 %v7192_v17  ;;  %5569 = vmatpush3.bf16.msra.mxu0 %v7164_v18 }
 0x969   : > { %2224 = vmatprep.subr.bf16.mxu1 %v7198_v62  ;;  %5570 = vmatprep.subr.bf16.mxu0 %v8681_v5 }
 0x96c   : > { %2225 = vmatpush1.bf16.msra.mxu1 %v7212_v24  ;;  %5571 = vmatpush3.bf16.msra.mxu0 %v7185_v22 }
 0x96d   : > { %2226 = vmatprep.subr.bf16.mxu1 %v7219_v26  ;;  %5572 = vmatprep.subr.bf16.mxu0 %v8681_v5 }
 0x970   : > { %2227 = vmatpush1.bf16.msra.mxu1 %v7228_v25  ;;  %5573 = vmatpush3.bf16.msra.mxu0 %v7206_v19 }
 0x971   : > { %2228 = vmatprep.subr.bf16.mxu1 %v7238_v30  ;;  %5574 = vmatprep.subr.bf16.mxu0 %v8681_v5 }
 0x974   : > { %2229 = vmatpush1.bf16.msra.mxu1 %v7244_v27  ;;  %5575 = vmatpush3.bf16.msra.mxu0 %v7233_v28 }
 0x975   : > { %2337 = vmatprep.subr.bf16.mxu1 %v7099_v4  ;;  %5580 = vmatprep.subr.bf16.mxu0 %v8681_v5 }
 0xa2a   : > { %v2125_v14 = vpop.f32.mrb[48].mxu1  ;;  %v2166_v21 = vpop.f32.mrb[52].mxu0 }
 0xa2b   : > { %v2175_v58 = vadd.f32 %v2172_v11, %v2125_v14  ;;  %v2127_v53 = vpop.f32.mrb[49].mxu1  ;;  %v5558_v45 = vpop.f32.mrb[53].mxu0 }
 0xa2c   : > { %v2129_v50 = vpop.f32.mrb[50].mxu1  ;;  %v2169_v23 = vpop.f32.mrb[54].mxu0  ;;  %v2182_v43 = vadd.f32 %v2173_v56, %v2127_v53 }
 0xa2d   : > { %v4941_v60 = vmul.f32 -1.442695, %v2175_v58  ;;  %v2130_v48 = vpop.f32.mrb[51].mxu1  ;;  %v5559_v49 = vpop.f32.mrb[55].mxu0  ;;  %v2206_v58 = vstv %s2205_s18 }
 0xa2e   : > { %v4942_v0 = vmul.f32 -1.442695, %v2182_v43  ;;  %v2201_v53 = vpop.permute.xlu0 %2200 }
 0xa2f   : > { %6104 = vpow2.f32 %v4941_v60  ;;  %vm2202_vm6 = vcmp.eq.s32.totalorder %v2201_v53, 1 }
 0xa30   : > { %6106 = vpow2.f32 %v4942_v0 }
 0xa39   : > { %v6105_v33 = vpop.eup %6104 }
 0xa3a   : > { %v2179_v54 = vadd.f32 1.0, %v6105_v33  ;;  %v6107_v34 = vpop.eup %6106 }
 0xa3b   : > { %v2186_v15 = vadd.f32 1.0, %v6107_v34 }
 0xa3c   : > { %6108 = vrcp.f32 %v2179_v54 }
 0xa3d   : > { %6110 = vrcp.f32 %v2186_v15 }
 0xa46   : > { %v6109_v47 = vpop.eup %6108 }
 0xa47   : > { %v2189_v61 = vmul.f32 %v6109_v47, %v2166_v21  ;;  %v6111_v29 = vpop.eup %6110 }
 0xa48   : > { %v2192_v7 = vsub.f32 1.0, %v6111_v29  ;;  %v2194_v11 = vmul.f32 %v6111_v29, %v7671_v51 }
 0xa49   : > { %v2190_v44 = vadd.f32 %v2189_v61, %v2174_v63 }
 0xa4b   : > { %6112 = vtanh.f32 %v2190_v44 }
 0xa55   : > { %v6113_v52 = vpop.eup %6112 }
 0xa56   : > { %v2193_v14 = vmul.f32 %v6113_v52, %v2192_v7 }
 0xa58   : > { %v2195_v45 = vadd.f32 %v2194_v11, %v2193_v14 }
 0xa5a   : > { %v7721_v56 = vsel %vm2202_vm6, %v2195_v45, %v7671_v51  ;;  %v7723_v50 = vsel %vm2202_vm6, %v2195_v45, %v2206_v58  ;;  %v2211_v51 = vld [vmem:[#allocation2 + $0x6c] sm:$0xff]  ;;  %v2297_v58 = vunpack.c.h.bf16 %v7715_v31 }
 0xa5b   : > { %v2208_v21 = vmax.f32 %v7676_v55, %v7723_v50  ;;  %v2213_v23 = vpack.c.bf16 %v7721_v56, %v7721_v56  ;;  %v2295_v60 = vunpack.c.l.bf16 %v2211_v51  ;;  %v2296_v54 = vunpack.c.h.bf16 %v2211_v51  ;;  %v2447_v50 = vpop.permute.xlu0 %2446 }
 0xa5d   : > { %2247 = vmatmul.mubr.bf16.vlgmr.msra.gmra.mrb[52].mxu1 %v2213_v23  ;;  %5577 = vmatmul.mubr.bf16.vlgmr.msra.gmra.mrb[56].mxu0 %v2213_v23 }
 0xa5e   : > { %2338 = vmatpush1.bf16.msra.mxu1 %v7111_v57  ;;  %5581 = vmatpush3.bf16.msra.mxu0 %v7088_v59 }
 0xa5f   : > { %2339 = vmatprep.subr.bf16.mxu1 %v7117_v1  ;;  %5582 = vmatprep.subr.bf16.mxu0 %v8681_v5 }
 0xa60   : > { %2369 = vmatprep.mubr.bf16.mxu1 %v8682_v32  ;;  %5596 = vmatprep.mubr.msk.bf16.mxu0 %vm6568_vm7, %v8681_v5 }
 0xa62   : > { %2340 = vmatpush1.bf16.msra.mxu1 %v7131_v3  ;;  %5583 = vmatpush3.bf16.msra.mxu0 %v7104_v6 }
 0xa63   : > { %2341 = vmatprep.subr.bf16.mxu1 %v7138_v10  ;;  %5584 = vmatprep.subr.bf16.mxu0 %v8681_v5 }
 0xa66   : > { %2342 = vmatpush1.bf16.msra.mxu1 %v7151_v9  ;;  %5585 = vmatpush3.bf16.msra.mxu0 %v7122_v8 }
 0xa67   : > { %2343 = vmatprep.subr.bf16.mxu1 %v7158_v16  ;;  %5586 = vmatprep.subr.bf16.mxu0 %v8681_v5 }
 0xa6a   : > { %2344 = vmatpush1.bf16.msra.mxu1 %v7172_v13  ;;  %5587 = vmatpush3.bf16.msra.mxu0 %v7143_v12 }
 0xa6b   : > { %2345 = vmatprep.subr.bf16.mxu1 %v7179_v20  ;;  %5588 = vmatprep.subr.bf16.mxu0 %v8681_v5 }
 0xa6e   : > { %2346 = vmatpush1.bf16.msra.mxu1 %v7192_v17  ;;  %5589 = vmatpush3.bf16.msra.mxu0 %v7164_v18 }
 0xa6f   : > { %2347 = vmatprep.subr.bf16.mxu1 %v7198_v62  ;;  %5590 = vmatprep.subr.bf16.mxu0 %v8681_v5 }
 0xa72   : > { %2348 = vmatpush1.bf16.msra.mxu1 %v7212_v24  ;;  %5591 = vmatpush3.bf16.msra.mxu0 %v7185_v22 }
 0xa73   : > { %2349 = vmatprep.subr.bf16.mxu1 %v7219_v26  ;;  %5592 = vmatprep.subr.bf16.mxu0 %v8681_v5 }
 0xa76   : > { %2350 = vmatpush1.bf16.msra.mxu1 %v7228_v25  ;;  %5593 = vmatpush3.bf16.msra.mxu0 %v7206_v19 }
 0xa77   : > { %2351 = vmatprep.subr.bf16.mxu1 %v7238_v30  ;;  %5594 = vmatprep.subr.bf16.mxu0 %v8681_v5 }
 0xa7a   : > { %2352 = vmatpush1.bf16.msra.mxu1 %v7244_v27  ;;  %5595 = vmatpush3.bf16.msra.mxu0 %v7233_v28 }
 0xa7b   : > { %2460 = vmatprep.subr.bf16.mxu1 %v7099_v4  ;;  %5600 = vmatprep.subr.bf16.mxu0 %v8681_v5 }
 0xb30   : > { %v2248_v48 = vpop.f32.mrb[52].mxu1  ;;  %v2289_v49 = vpop.f32.mrb[56].mxu0 }
 0xb31   : > { %v2298_v43 = vadd.f32 %v2295_v60, %v2248_v48  ;;  %v2250_v0 = vpop.f32.mrb[53].mxu1  ;;  %v5578_v33 = vpop.f32.mrb[57].mxu0 }
 0xb32   : > { %v2252_v34 = vpop.f32.mrb[54].mxu1  ;;  %v2292_v15 = vpop.f32.mrb[58].mxu0  ;;  %v2305_v44 = vadd.f32 %v2296_v54, %v2250_v0  ;;  %v2329_v0 = vstv %s2328_s4 }
 0xb33   : > { %v4945_v47 = vmul.f32 -1.442695, %v2298_v43  ;;  %v2253_v63 = vpop.f32.mrb[55].mxu1  ;;  %v5579_v61 = vpop.f32.mrb[59].mxu0 }
 0xb34   : > { %v4946_v29 = vmul.f32 -1.442695, %v2305_v44  ;;  %v2324_v33 = vpop.permute.xlu1 %2323  ;;  %v2452_v63 = vstv %s2451_s5 }
 0xb35   : > { %6114 = vpow2.f32 %v4945_v47  ;;  %vm2325_vm8 = vcmp.eq.s32.totalorder %v2324_v33, 1 }
 0xb36   : > { %6116 = vpow2.f32 %v4946_v29 }
 0xb3f   : > { %v6115_v4 = vpop.eup %6114 }
 0xb40   : > { %v2302_v7 = vadd.f32 1.0, %v6115_v4  ;;  %v6117_v52 = vpop.eup %6116 }
 0xb41   : > { %v2309_v11 = vadd.f32 1.0, %v6117_v52  ;;  %v2457_v52 = vld [vmem:[#allocation2 + $0x84] sm:$0xff] }
 0xb42   : > { %6118 = vrcp.f32 %v2302_v7 }
 0xb43   : > { %6120 = vrcp.f32 %v2309_v11  ;;  %v2541_v11 = vunpack.c.l.bf16 %v2457_v52 }
 0xb4c   : > { %v6119_v14 = vpop.eup %6118 }
 0xb4d   : > { %v2312_v53 = vmul.f32 %v6119_v14, %v2289_v49  ;;  %v6121_v23 = vpop.eup %6120 }
 0xb4e   : > { %v2315_v51 = vsub.f32 1.0, %v6121_v23  ;;  %v2317_v48 = vmul.f32 %v6121_v23, %v7721_v56 }
 0xb4f   : > { %v2313_v45 = vadd.f32 %v2312_v53, %v2297_v58 }
 0xb51   : > { %6122 = vtanh.f32 %v2313_v45 }
 0xb5b   : > { %v6123_v60 = vpop.eup %6122 }
 0xb5c   : > { %v2316_v43 = vmul.f32 %v6123_v60, %v2315_v51  ;;  %v2542_v51 = vunpack.c.h.bf16 %v2457_v52 }
 0xb5e   : > { %v2318_v54 = vadd.f32 %v2317_v48, %v2316_v43 }
 0xb60   : > { %v7768_v34 = vsel %vm2325_vm8, %v2318_v54, %v7721_v56  ;;  %v2330_v31 = vsel %vm2325_vm8, %v2318_v54, %v2329_v0 }
 0xb61   : > { %v7773_v49 = vmax.f32 %v2208_v21, %v2330_v31  ;;  %v2336_v15 = vpack.c.bf16 %v7768_v34, %v7768_v34 }
 0xb63   : > { %2370 = vmatmul.mubr.bf16.vlgmr.msra.gmra.mrb[56].mxu1 %v2336_v15  ;;  %5597 = vmatmul.mubr.bf16.vlgmr.msra.gmra.mrb[60].mxu0 %v2336_v15 }
 0xb64   : > { %2461 = vmatpush1.bf16.msra.mxu1 %v7111_v57  ;;  %5601 = vmatpush3.bf16.msra.mxu0 %v7088_v59  ;;  %v2334_v59 = vld [vmem:[#allocation2 + $0x78] sm:$0xff] }
 0xb65   : > { %2462 = vmatprep.subr.bf16.mxu1 %v7117_v1  ;;  %5602 = vmatprep.subr.bf16.mxu0 %v8681_v5 }
 0xb66   : > { %2492 = vmatprep.mubr.bf16.mxu1 %v8682_v32  ;;  %5616 = vmatprep.mubr.msk.bf16.mxu0 %vm6568_vm7, %v8681_v5  ;;  %vm2448_vm7 = vcmp.eq.s32.totalorder %v2447_v50, 1 }
 0xb68   : > { %2463 = vmatpush1.bf16.msra.mxu1 %v7131_v3  ;;  %5603 = vmatpush3.bf16.msra.mxu0 %v7104_v6  ;;  %v2418_v6 = vunpack.c.l.bf16 %v2334_v59 }
 0xb69   : > { %2464 = vmatprep.subr.bf16.mxu1 %v7138_v10  ;;  %5604 = vmatprep.subr.bf16.mxu0 %v8681_v5 }
 0xb6c   : > { %2465 = vmatpush1.bf16.msra.mxu1 %v7151_v9  ;;  %5605 = vmatpush3.bf16.msra.mxu0 %v7122_v8 }
 0xb6d   : > { %2466 = vmatprep.subr.bf16.mxu1 %v7158_v16  ;;  %5606 = vmatprep.subr.bf16.mxu0 %v8681_v5 }
 0xb70   : > { %2467 = vmatpush1.bf16.msra.mxu1 %v7172_v13  ;;  %5607 = vmatpush3.bf16.msra.mxu0 %v7143_v12  ;;  %v2419_v12 = vunpack.c.h.bf16 %v2334_v59 }
 0xb71   : > { %2468 = vmatprep.subr.bf16.mxu1 %v7179_v20  ;;  %5608 = vmatprep.subr.bf16.mxu0 %v8681_v5 }
 0xb74   : > { %2469 = vmatpush1.bf16.msra.mxu1 %v7192_v17  ;;  %5609 = vmatpush3.bf16.msra.mxu0 %v7164_v18 }
 0xb75   : > { %2470 = vmatprep.subr.bf16.mxu1 %v7198_v62  ;;  %5610 = vmatprep.subr.bf16.mxu0 %v8681_v5 }
 0xb78   : > { %2471 = vmatpush1.bf16.msra.mxu1 %v7212_v24  ;;  %5611 = vmatpush3.bf16.msra.mxu0 %v7185_v22 }
 0xb79   : > { %2472 = vmatprep.subr.bf16.mxu1 %v7219_v26  ;;  %5612 = vmatprep.subr.bf16.mxu0 %v8681_v5 }
 0xb7c   : > { %2473 = vmatpush1.bf16.msra.mxu1 %v7228_v25  ;;  %5613 = vmatpush3.bf16.msra.mxu0 %v7206_v19  ;;  %v2335_v25 = vld [vmem:[#allocation2 + $0x80] ss:$12 sps:$4 sm:$0xff]  }
 0xb7d   : > { %2474 = vmatprep.subr.bf16.mxu1 %v7238_v30  ;;  %5614 = vmatprep.subr.bf16.mxu0 %v8681_v5  ;;  %v2420_v30 = vunpack.c.l.bf16 %v2335_v25 }
 0xb80   : > { %2475 = vmatpush1.bf16.msra.mxu1 %v7244_v27  ;;  %5615 = vmatpush3.bf16.msra.mxu0 %v7233_v28 }
 0xc36   : > { %v2371_v57 = vpop.f32.mrb[56].mxu1  ;;  %v2412_v1 = vpop.f32.mrb[60].mxu0 }
 0xc37   : > { %v2421_v8 = vadd.f32 %v2418_v6, %v2371_v57  ;;  %v2373_v3 = vpop.f32.mrb[57].mxu1  ;;  %v5598_v10 = vpop.f32.mrb[61].mxu0  ;;  %v2543_v57 = vunpack.c.h.bf16 %v2335_v25 }
 0xc38   : > { %v2375_v9 = vpop.f32.mrb[58].mxu1  ;;  %v2415_v16 = vpop.f32.mrb[62].mxu0  ;;  %v2428_v22 = vadd.f32 %v2419_v12, %v2373_v3 }
 0xc39   : > { %v4949_v18 = vmul.f32 -1.442695, %v2421_v8  ;;  %v2376_v13 = vpop.f32.mrb[59].mxu1  ;;  %v5599_v20 = vpop.f32.mrb[63].mxu0 }
 0xc3a   : > { %v4950_v17 = vmul.f32 -1.442695, %v2428_v22  ;;  %v2570_v9 = vpop.permute.xlu1 %2569  ;;  %v2575_v13 = vstv %s2574_s14 }
 0xc3b   : > { %6124 = vpow2.f32 %v4949_v18  ;;  %vm2571_vm9 = vcmp.eq.s32.totalorder %v2570_v9, 1 }
 0xc3c   : > { %6126 = vpow2.f32 %v4950_v17 }
 0xc45   : > { %v6125_v62 = vpop.eup %6124 }
 0xc46   : > { %v2425_v19 = vadd.f32 1.0, %v6125_v62  ;;  %v6127_v24 = vpop.eup %6126 }
 0xc47   : > { %v2432_v26 = vadd.f32 1.0, %v6127_v24 }
 0xc48   : > { %6128 = vrcp.f32 %v2425_v19 }
 0xc49   : > { %6130 = vrcp.f32 %v2432_v26 }
 0xc52   : > { %v6129_v28 = vpop.eup %6128 }
 0xc53   : > { %v2435_v27 = vmul.f32 %v6129_v28, %v2412_v1  ;;  %v6131_v32 = vpop.eup %6130 }
 0xc54   : > { %v2438_v55 = vsub.f32 1.0, %v6131_v32  ;;  %v2440_v21 = vmul.f32 %v6131_v32, %v7768_v34 }
 0xc55   : > { %v2436_v5 = vadd.f32 %v2435_v27, %v2420_v30 }
 0xc57   : > { %6132 = vtanh.f32 %v2436_v5 }
 0xc61   : > { %v6133_v56 = vpop.eup %6132 }
 0xc62   : > { %v2439_v47 = vmul.f32 %v6133_v56, %v2438_v55 }
 0xc64   : > { %v2441_v61 = vadd.f32 %v2440_v21, %v2439_v47 }
 0xc66   : > { %v2449_v44 = vsel %vm2448_vm7, %v2441_v61, %v7768_v34  ;;  %v2453_v29 = vsel %vm2448_vm7, %v2441_v61, %v2452_v63 }
 0xc67   : > { %v2454_v4 = vmax.f32 %v7773_v49, %v2453_v29  ;;  %v2459_v7 = vpack.c.bf16 %v2449_v44, %v2449_v44 }
 0xc69   : > { %2493 = vmatmul.mubr.bf16.vlgmr.msra.gmra.mrb[60].mxu1 %v2459_v7  ;;  %5617 = vmatmul.mubr.bf16.vlgmr.msra.gmra.mrb[64].mxu0 %v2459_v7 }
 0xd3c   : > { %v2494_v14 = vpop.f32.mrb[60].mxu1  ;;  %v2535_v58 = vpop.f32.mrb[64].mxu0 }
 0xd3d   : > { %v2544_v53 = vadd.f32 %v2541_v11, %v2494_v14  ;;  %v2496_v45 = vpop.f32.mrb[61].mxu1  ;;  %v5618_v23 = vpop.f32.mrb[65].mxu0 }
 0xd3e   : > { %v2498_v60 = vpop.f32.mrb[62].mxu1  ;;  %v2538_v48 = vpop.f32.mrb[66].mxu0  ;;  %v2551_v54 = vadd.f32 %v2542_v51, %v2496_v45 }
 0xd3f   : > { %v4953_v43 = vmul.f32 -1.442695, %v2544_v53  ;;  %v2499_v0 = vpop.f32.mrb[63].mxu1  ;;  %v5619_v33 = vpop.f32.mrb[67].mxu0 }
 0xd40   : > { %v4954_v34 = vmul.f32 -1.442695, %v2551_v54 }
 0xd41   : > { %6134 = vpow2.f32 %v4953_v43 }
 0xd42   : > { %6136 = vpow2.f32 %v4954_v34 }
 0xd4b   : > { %v6135_v31 = vpop.eup %6134 }
 0xd4c   : > { %v2548_v49 = vadd.f32 1.0, %v6135_v31  ;;  %v6137_v15 = vpop.eup %6136 }
 0xd4d   : > { %v2555_v59 = vadd.f32 1.0, %v6137_v15 }
 0xd4e   : > { %6138 = vrcp.f32 %v2548_v49 }
 0xd4f   : > { %6140 = vrcp.f32 %v2555_v59 }
 0xd58   : > { %v6139_v6 = vpop.eup %6138 }
 0xd59   : > { %v2558_v1 = vmul.f32 %v6139_v6, %v2535_v58  ;;  %v6141_v3 = vpop.eup %6140 }
 0xd5a   : > { %v2561_v10 = vsub.f32 1.0, %v6141_v3  ;;  %v2563_v18 = vmul.f32 %v6141_v3, %v2449_v44 }
 0xd5b   : > { %v2559_v8 = vadd.f32 %v2558_v1, %v2543_v57 }
 0xd5d   : > { %6142 = vtanh.f32 %v2559_v8 }
 0xd67   : > { %v6143_v12 = vpop.eup %6142 }
 0xd68   : > { %v2562_v16 = vmul.f32 %v6143_v12, %v2561_v10 }
 0xd6a   : > { %v2564_v20 = vadd.f32 %v2563_v18, %v2562_v16 }
 0xd6c   : > { %v2572_v22 = vsel %vm2571_vm9, %v2564_v20, %v2449_v44  ;;  %v2576_v17 = vsel %vm2571_vm9, %v2564_v20, %v2575_v13 }
 0xd6d   : > { %v2577_v62 = vmax.f32 %v2454_v4, %v2576_v17  ;;  %2578 = vst [vmem:[#allocation4] sm:$0xff] %v2572_v22 }
 0xd6f   : > { %2579 = vst [vmem:[#allocation6] sm:$0xff] %v2577_v62 }
 0xd70 PF: > { %2583 = sbr.rel (%p4837_p8) target bundleno = 6634 (0x19ea), region = 84  ;;  %v6146_v19 = vld [vmem:[#allocation16 + $0x4] ss:$12 sps:$4 sm:$0xff] (!%p4837_p8)   ;;  %v6148_v24 = vld [vmem:[#allocation16] ss:$12 sps:$4 sm:$0xff] (!%p4837_p8)   ;;  %v6569_v26 = vmov (!%p4837_p8), 0   ;;  %v7827_v56 = vcombine.low (!%p4837_p8), %v7009_v36, %v7013_v38  ;;  %v7838_v36 = vcombine.high (!%p4837_p8), %v7007_v35, %v7011_v37  ;;  %v7843_v38 = vcombine.low (!%p4837_p8), %v7017_v40, %v7021_v42 }
 0xd71   : > { %2767 = vmatprep.mubr.bf16.mxu1 (!%p4837_p8), %v6569_v26  ;;  %5880 = vmatprep.subr.bf16.mxu1 (!%p4837_p8), %v6146_v19  ;;  %v6149_v25 = vld [vmem:[#allocation16 + $0x1c] ss:$12 sps:$4 sm:$0xff] (!%p4837_p8)   ;;  %v6151_v28 = vld [vmem:[#allocation16 + $0x18] ss:$12 sps:$4 sm:$0xff] (!%p4837_p8)   ;;  %v6154_v5 = vld [vmem:[#allocation16 + $0x20] ss:$12 sps:$4 sm:$0xff] (!%p4837_p8)   ;;  %v7850_v47 = vcombine.low (!%p4837_p8), %v7007_v35, %v7011_v37  ;;  %v7856_v61 = vcombine.high (!%p4837_p8), %v7015_v39, %v7019_v41  ;;  %v7870_v35 = vcombine.low (!%p4837_p8), %v7015_v39, %v7019_v41 }
 0xd72   : > { %2685 = vmatprep.subr.bf16.mxu0 (!%p4837_p8), %v6146_v19  ;;  %5882 = vmatpush1.bf16.msra.mxu1 (!%p4837_p8), %v6148_v24  ;;  %v6153_v30 = vld [vmem:[#allocation16 + $0x8] ss:$12 sps:$4 sm:$0xff] (!%p4837_p8)   ;;  %vm2666_vm10 = vcmask (!%p4837_p8), 261120   ;;  %v6570_v55 = vmov (!%p4837_p8), 0.0   ;;  %vm5033_vm11 = vcmp.gt.s32.totalorder (!%p4837_p8), %v6941_v2, 11  ;;  %v8683_v40 = vld [vmem:[#allocation31_spill] sm:$0xff] (!%p4837_p8) }
 0xd73   : > { %2686 = vmatpush1.bf16.msra.mxu0 (!%p4837_p8), %v6148_v24  ;;  %5881 = vmatprep.subr.bf16.mxu1 (!%p4837_p8), %v6149_v25  ;;  %v7819_v27 = vld [vmem:[%s6915_s16 + $0x28] sm:$0xff] (!%p4837_p8)   ;;  %v6155_v32 = vld [vmem:[%s6915_s16] sm:$0xff] (!%p4837_p8)   ;;  %v3281_v50 = vsel (!%p4837_p8), %vm5033_vm11, 1, %v6569_v26  ;;  %v6157_v63 = vld [vmem:[%s6915_s16 + $0x10] sm:$0xff] (!%p4837_p8)   ;;  %v7861_v42 = vcombine.low (!%p4837_p8), %v8683_v40, %v7029_v46  ;;  %vm5037_vm12 = vcmp.gt.s32.totalorder (!%p4837_p8), %v6941_v2, 10  ;;  %vm5049_vm13 = vcmp.gt.s32.totalorder (!%p4837_p8), %v6941_v2, 7 }
 0xd74   : > { %2687 = vmatprep.subr.bf16.mxu0 (!%p4837_p8), %v6149_v25  ;;  %2717 = vmatprep.mubr.bf16.mxu0 (!%p4837_p8), %v6569_v26  ;;  %v6156_v21 = vld [vmem:[%s6915_s16 + $0x8] sm:$0xff] (!%p4837_p8)   ;;  %v3404_v37 = vsel (!%p4837_p8), %vm5037_vm12, 1, %v6569_v26  ;;  %v8684_v46 = vld [vmem:[#allocation32_spill] sm:$0xff] (!%p4837_p8)  ;;  %v8685_v44 = vld [vmem:[#allocation30_spill] sm:$0xff] (!%p4837_p8)  ;;  %v3773_v60 = vsel (!%p4837_p8), %vm5049_vm13, 1, %v6569_v26  ;;  %vm5057_vm14 = vcmp.gt.s32.totalorder (!%p4837_p8), %v6941_v2, 5 }
 0xd75   : > { %6144 = vset.pattern.permute.xlu0 (!%p4837_p8), %v6569_v26  ;;  %6145 = vset.pattern.permute.xlu1 (!%p4837_p8), %v6569_v26  ;;  %v7877_v29 = vcombine.high (!%p4837_p8), %v8685_v44, %v8684_v46  ;;  %v8686_v4 = vld [vmem:[#allocation36_spill] sm:$0xff] (!%p4837_p8)  ;;  %v8687_v7 = vld [vmem:[#allocation34_spill] sm:$0xff] (!%p4837_p8)  ;;  %v6158_v39 = vld [vmem:[%s6915_s16 + $0x18] sm:$0xff] (!%p4837_p8)   ;;  %v7890_v41 = vcombine.low (!%p4837_p8), %v8685_v44, %v8684_v46  ;;  %v4019_v49 = vsel (!%p4837_p8), %vm5057_vm14, 1, %v6569_v26  ;;  %vm5065_vm15 = vcmp.gt.s32.totalorder (!%p4837_p8), %v6941_v2, 3  ;;  %p5034_p1 = scmp.gt.s32.totalorder (!%p4837_p8), %s6935_s23, 11 }
 0xd76   : > { %5883 = vmatpush1.bf16.msra.mxu1 (!%p4837_p8), %v6151_v28  ;;  %3283 = vperm.xlu0 (!%p4837_p8), %6144, %v3281_v50   ;;  %v7882_v52 = vcombine.low (!%p4837_p8), %v8687_v7, %v8686_v4  ;;  %v6159_v11 = vld [vmem:[%s6915_s16 + $0x20] sm:$0xff] (!%p4837_p8)   ;;  %v8688_v14 = vld [vmem:[#allocation35_spill] sm:$0xff] (!%p4837_p8)  ;;  %v8689_v58 = vld [vmem:[#allocation33_spill] sm:$0xff] (!%p4837_p8)  ;;  %v4265_v10 = vsel (!%p4837_p8), %vm5065_vm15, 1, %v6569_v26  ;;  %vm5073_vm0 = vcmp.gt.s32.totalorder (!%p4837_p8), %v6941_v2, 1  ;;  %vm6571_vm1 = vmmov (!%p4837_p8), 0  }
 0xd77   : > { %2688 = vmatpush1.bf16.msra.mxu0 %v6151_v28  ;;  %5620 = vmatprep.subr.bf16.mxu1 %v6153_v30  ;;  %v7897_v53 = vcombine.high %v8689_v58, %v8688_v14  ;;  %v8690_v45 = vld [vmem:[#allocation40_spill] sm:$0xff]  ;;  %v8691_v23 = vld [vmem:[#allocation38_spill] sm:$0xff]  ;;  %v7911_v48 = vcombine.low %v8689_v58, %v8688_v14  ;;  %v8692_v43 = vld [vmem:[#allocation39_spill] sm:$0xff]  ;;  %v4511_v13 = vsel %vm5073_vm0, 1, %v6569_v26  ;;  %s3288_s16 = scalar_select %p5034_p1, 0.0, -inf }
 0xd78   : > { %5636 = vmatprep.subr.bf16.mxu0 %v6570_v55  ;;  %v7903_v51 = vcombine.low %v8691_v23, %v8690_v45  ;;  %v8693_v0 = vld [vmem:[#allocation37_spill] sm:$0xff]  ;;  %v8694_v54 = vld [vmem:[#allocation44_spill] sm:$0xff]  ;;  %v8695_v34 = vld [vmem:[#allocation42_spill] sm:$0xff]  ;;  %vm5041_vm3 = vcmp.gt.s32.totalorder %v6941_v2, 9  ;;  %vm5045_vm4 = vcmp.gt.s32.totalorder %v6941_v2, 8  ;;  %vm5053_vm5 = vcmp.gt.s32.totalorder %v6941_v2, 6 }
 0xd79   : > { %4976 = vmatmul.mubr.msk.bf16.vlgmr.msra.gmra.mrb[0].mxu1 %vm2666_vm10, %v7819_v27  ;;  %v7918_v33 = vcombine.high %v8693_v0, %v8692_v43  ;;  %v7924_v31 = vcombine.low %v8695_v34, %v8694_v54  ;;  %v7931_v15 = vcombine.low %v8693_v0, %v8692_v43  ;;  %v8696_v59 = vld [vmem:[#allocation43_spill] sm:$0xff]  ;;  %v8697_v6 = vld [vmem:[#allocation41_spill] sm:$0xff]  ;;  %v8698_v1 = vld [vmem:[#allocation48_spill] sm:$0xff]  ;;  %vm5061_vm6 = vcmp.gt.s32.totalorder %v6941_v2, 4  ;;  %p5038_p8 = scmp.gt.s32.totalorder %s6935_s23, 10  ;;  %p5042_p10 = scmp.gt.s32.totalorder %s6935_s23, 9 }
 0xd7a   : > { %4971 = vmatmul.mubr.msk.bf16.vlgmr.msra.gmra.mrb[0].mxu0 %vm2666_vm10, %v6155_v32  ;;  %5621 = vmatpush3.bf16.msra.mxu1 %v6153_v30  ;;  %v7937_v57 = vcombine.high %v8697_v6, %v8696_v59  ;;  %v8699_v8 = vld [vmem:[#allocation46_spill] sm:$0xff]  ;;  %v7951_v12 = vcombine.low %v8697_v6, %v8696_v59  ;;  %v8700_v9 = vld [vmem:[#allocation47_spill] sm:$0xff]  ;;  %v8701_v16 = vld [vmem:[#allocation45_spill] sm:$0xff]  ;;  %vm5069_vm8 = vcmp.gt.s32.totalorder %v6941_v2, 2  ;;  %vm5077_vm7 = vcmp.gt.s32.totalorder %v6941_v2, 0  ;;  %p5046_p3 = scmp.gt.s32.totalorder %s6935_s23, 8 }
 0xd7b   : > { %5624 = vmatprep.mubr.msk.bf16.mxu1 %vm2666_vm10, %v6155_v32  ;;  %5622 = vmatprep.subr.bf16.mxu1 %v6154_v5  ;;  %v7945_v3 = vcombine.low %v8699_v8, %v8698_v1  ;;  %v7958_v18 = vcombine.high %v8701_v16, %v8700_v9  ;;  %v7967_v20 = vcombine.low %v8701_v16, %v8700_v9  ;;  %v8702_v22 = vld [vmem:[#allocation52_spill] sm:$0xff]  ;;  %v8703_v17 = vld [vmem:[#allocation50_spill] sm:$0xff]  ;;  %v8704_v19 = vld [vmem:[#allocation51_spill] sm:$0xff]  ;;  %s3411_s8 = scalar_select %p5038_p8, 0.0, -inf }
 0xd7c   : > { %5637 = vmatpush3.bf16.msra.mxu0 %v7827_v56  ;;  %2727 = vmatprep.mubr.bf16.mxu0 %v6569_v26  ;;  %v7972_v62 = vcombine.low %v8703_v17, %v8702_v22  ;;  %v8705_v24 = vld [vmem:[#allocation49_spill] sm:$0xff]  ;;  %v7985_v30 = vld [vmem:[#allocation5] sm:$0xff]  ;;  %s3534_s28 = scalar_select %p5042_p10, 0.0, -inf }
 0xd7d   : > { %5638 = vmatprep.subr.bf16.mxu0 %v6570_v55  ;;  %3406 = vperm.xlu0 %6144, %v3404_v37   ;;  %v7977_v25 = vcombine.high %v8705_v24, %v8704_v19  ;;  %v7983_v28 = vcombine.low %v8705_v24, %v8704_v19  ;;  %s3657_s22 = scalar_select %p5046_p3, 0.0, -inf }
 0xd7e   : > { %5623 = vmatpush3.bf16.msra.mxu1 %v6154_v5  ;;  %p5050_p11 = scmp.gt.s32.totalorder %s6935_s23, 7  ;;  %p5054_p12 = scmp.gt.s32.totalorder %s6935_s23, 6 }
 0xd7f   : > { %3174 = vmatprep.subr.bf16.mxu1 %v7838_v36  ;;  %p5058_p6 = scmp.gt.s32.totalorder %s6935_s23, 5  ;;  %p5062_p7 = scmp.gt.s32.totalorder %s6935_s23, 4 }
 0xd80   : > { %5639 = vmatpush3.bf16.msra.mxu0 %v7843_v38  ;;  %s3780_s26 = scalar_select %p5050_p11, 0.0, -inf }
 0xd81   : > { %5640 = vmatprep.subr.bf16.mxu0 %v6570_v55  ;;  %5625 = vmatmul.mubr.msk.bf16.vlgmr.msra.gmra.mrb[4].mxu1 %vm2666_vm10, %v6156_v21  ;;  %s3903_s0 = scalar_select %p5054_p12, 0.0, -inf }
 0xd82   : > { %4972 = vmatmul.mubr.msk.bf16.gmra.mrb[4].mxu0 %vm2666_vm10, %v6156_v21  ;;  %3175 = vmatpush1.bf16.msra.mxu1 %v7850_v47  ;;  %s4026_s27 = scalar_select %p5058_p6, 0.0, -inf }
 0xd83   : > { %5628 = vmatprep.mubr.msk.bf16.mxu1 %vm2666_vm10, %v6157_v63  ;;  %3176 = vmatprep.subr.bf16.mxu1 %v7856_v61  ;;  %s4149_s1 = scalar_select %p5062_p7, 0.0, -inf }
 0xd84   : > { %5641 = vmatpush3.bf16.msra.mxu0 %v7861_v42  ;;  %2737 = vmatprep.mubr.bf16.mxu0 %v6569_v26  ;;  %p5066_p9 = scmp.gt.s32.totalorder %s6935_s23, 3  ;;  %p5070_p0 = scmp.gt.s32.totalorder %s6935_s23, 2 }
 0xd85   : > { %5642 = vmatprep.subr.bf16.mxu0 %v6570_v55  ;;  %3775 = vperm.xlu0 %6144, %v3773_v60   ;;  %p5074_p2 = scmp.gt.s32.totalorder %s6935_s23, 1 }
 0xd86   : > { %3177 = vmatpush1.bf16.msra.mxu1 %v7870_v35  ;;  %s4272_s24 = scalar_select %p5066_p9, 0.0, -inf }
 0xd87   : > { %3178 = vmatprep.subr.bf16.mxu1 %v7877_v29  ;;  %s4395_s13 = scalar_select %p5070_p0, 0.0, -inf }
 0xd88   : > { %5643 = vmatpush3.bf16.msra.mxu0 %v7882_v52  ;;  %s4518_s17 = scalar_select %p5074_p2, 0.0, -inf }
 0xd89   : > { %5644 = vmatprep.subr.bf16.mxu0 %v6570_v55  ;;  %5629 = vmatmul.mubr.msk.bf16.gmra.mrb[8].mxu1 %vm2666_vm10, %v6158_v39 }
 0xd8a   : > { %4973 = vmatmul.mubr.msk.bf16.gmra.mrb[8].mxu0 %vm2666_vm10, %v6157_v63  ;;  %3179 = vmatpush1.bf16.msra.mxu1 %v7890_v41 }
 0xd8b   : > { %5632 = vmatprep.mubr.msk.bf16.mxu1 %vm2666_vm10, %v6159_v11  ;;  %3180 = vmatprep.subr.bf16.mxu1 %v7897_v53 }
 0xd8c   : > { %2747 = vmatprep.mubr.bf16.mxu0 %v6569_v26  ;;  %5645 = vmatpush3.bf16.msra.mxu0 %v7903_v51 }
 0xd8d   : > { %5646 = vmatprep.subr.bf16.mxu0 %v6570_v55  ;;  %4021 = vperm.xlu0 %6144, %v4019_v49  }
 0xd8e   : > { %3181 = vmatpush1.bf16.msra.mxu1 %v7911_v48 }
 0xd8f   : > { %3182 = vmatprep.subr.bf16.mxu1 %v7918_v33 }
 0xd90   : > { %5647 = vmatpush3.bf16.msra.mxu0 %v7924_v31 }
 0xd91   : > { %5633 = vmatmul.mubr.msk.bf16.gmra.mrb[12].mxu1 %vm2666_vm10, %v7819_v27  ;;  %5648 = vmatprep.subr.bf16.mxu0 %v6570_v55  ;;  %v3045_v27 = vpack.c.bf16 %v7985_v30, %v7985_v30 }
 0xd92   : > { %4974 = vmatmul.mubr.msk.bf16.gmra.mrb[12].mxu0 %vm2666_vm10, %v6158_v39  ;;  %3183 = vmatpush1.bf16.msra.mxu1 %v7931_v15 }
 0xd93   : > { %3206 = vmatprep.mubr.bf16.mxu1 %v6569_v26  ;;  %3184 = vmatprep.subr.bf16.mxu1 %v7937_v57 }
 0xd94   : > { %2757 = vmatprep.mubr.bf16.mxu0 %v6569_v26  ;;  %4267 = vperm.xlu0 %6144, %v4265_v10  }
 0xd95   : > { %5649 = vmatpush3.bf16.msra.mxu0 %v7945_v3 }
 0xd96   : > { %3185 = vmatpush1.bf16.msra.mxu1 %v7951_v12  ;;  %5650 = vmatprep.subr.bf16.mxu0 %v6570_v55 }
 0xd97   : > { %3186 = vmatprep.subr.bf16.mxu1 %v7958_v18 }
 0xd98   : > { %4513 = vperm.xlu0 %6144, %v4511_v13  }
 0xd99   : > { %5651 = vmatpush3.bf16.msra.mxu0 %v7972_v62 }
 0xd9a   : > { %4975 = vmatmul.mubr.msk.bf16.gmra.mrb[16].mxu0 %vm2666_vm10, %v6159_v11  ;;  %3187 = vmatpush1.bf16.msra.mxu1 %v7967_v20 }
 0xd9b   : > { %3188 = vmatprep.subr.bf16.mxu1 %v7977_v25  ;;  %5652 = vmatprep.mubr.msk.bf16.mxu0 %vm6571_vm1, %v6570_v55 }
 0xd9c   : > { %5656 = vmatprep.subr.bf16.mxu0 %v6570_v55 }
 0xd9e   : > { %3189 = vmatpush1.bf16.msra.mxu1 %v7983_v28 }
 0xd9f   : > { %3297 = vmatprep.subr.bf16.mxu1 %v7838_v36 }
 0xda1   : > { %3207 = vmatmul.mubr.bf16.vlgmr.msra.gmra.mrb[16].mxu1 %v3045_v27 }
 0xda2   : > { %5653 = vmatmul.mubr.bf16.vlgmr.msra.gmra.mrb[20].mxu0 %v3045_v27  ;;  %3298 = vmatpush1.bf16.msra.mxu1 %v7850_v47 }
 0xda3   : > { %5657 = vmatpush3.bf16.msra.mxu0 %v7827_v56  ;;  %3299 = vmatprep.subr.bf16.mxu1 %v7856_v61 }
 0xda4   : > { %5658 = vmatprep.subr.bf16.mxu0 %v6570_v55  ;;  %3329 = vmatprep.mubr.bf16.mxu1 %v6569_v26 }
 0xda5   : > { %5672 = vmatprep.mubr.msk.bf16.mxu0 %vm6571_vm1, %v6570_v55 }
 0xda6   : > { %3300 = vmatpush1.bf16.msra.mxu1 %v7870_v35 }
 0xda7   : > { %5659 = vmatpush3.bf16.msra.mxu0 %v7843_v38  ;;  %3301 = vmatprep.subr.bf16.mxu1 %v7877_v29 }
 0xda8   : > { %5660 = vmatprep.subr.bf16.mxu0 %v6570_v55 }
 0xdaa   : > { %3302 = vmatpush1.bf16.msra.mxu1 %v7890_v41 }
 0xdab   : > { %5661 = vmatpush3.bf16.msra.mxu0 %v7861_v42  ;;  %3303 = vmatprep.subr.bf16.mxu1 %v7897_v53 }
 0xdac   : > { %5662 = vmatprep.subr.bf16.mxu0 %v6570_v55 }
 0xdae   : > { %3304 = vmatpush1.bf16.msra.mxu1 %v7911_v48 }
 0xdaf   : > { %5663 = vmatpush3.bf16.msra.mxu0 %v7882_v52  ;;  %3305 = vmatprep.subr.bf16.mxu1 %v7918_v33 }
 0xdb0   : > { %5664 = vmatprep.subr.bf16.mxu0 %v6570_v55 }
 0xdb2   : > { %3306 = vmatpush1.bf16.msra.mxu1 %v7931_v15 }
 0xdb3   : > { %5665 = vmatpush3.bf16.msra.mxu0 %v7903_v51  ;;  %3307 = vmatprep.subr.bf16.mxu1 %v7937_v57 }
 0xdb4   : > { %5666 = vmatprep.subr.bf16.mxu0 %v6570_v55 }
 0xdb6   : > { %3308 = vmatpush1.bf16.msra.mxu1 %v7951_v12 }
 0xdb7   : > { %5667 = vmatpush3.bf16.msra.mxu0 %v7924_v31  ;;  %3309 = vmatprep.subr.bf16.mxu1 %v7958_v18 }
 0xdb8   : > { %5668 = vmatprep.subr.bf16.mxu0 %v6570_v55 }
 0xdba   : > { %3310 = vmatpush1.bf16.msra.mxu1 %v7967_v20 }
 0xdbb   : > { %5669 = vmatpush3.bf16.msra.mxu0 %v7945_v3  ;;  %3311 = vmatprep.subr.bf16.mxu1 %v7977_v25 }
 0xdbc   : > { %5670 = vmatprep.subr.bf16.mxu0 %v6570_v55 }
 0xdbe   : > { %3312 = vmatpush1.bf16.msra.mxu1 %v7983_v28 }
 0xdbf   : > { %5671 = vmatpush3.bf16.msra.mxu0 %v7972_v62  ;;  %3420 = vmatprep.subr.bf16.mxu1 %v7838_v36 }
 0xdc0   : > { %5676 = vmatprep.subr.bf16.mxu0 %v6570_v55 }
 0xe4c   : > { %v2769_v5 = vpop.f32.mrb[0].mxu1 }
 0xe4d   : > { %v2719_v32 = vpop.f32.mrb[0].mxu0  ;;  %v2771_v50 = vpop.f32.mrb[1].mxu1 }
 0xe4e   : > { %v2721_v21 = vpop.f32.mrb[1].mxu0  ;;  %v8031_v63 = vpack.c.bf16 %v2771_v50, %v2769_v5  ;;  %v2773_v40 = vpop.f32.mrb[2].mxu1 }
 0xe4f   : > { %v5107_v37 = vpack.c.bf16 %v2721_v21, %v2719_v32  ;;  %v2723_v46 = vpop.f32.mrb[2].mxu0  ;;  %v2775_v44 = vpop.f32.mrb[3].mxu1 }
 0xe50   : > { %v2725_v4 = vpop.f32.mrb[3].mxu0  ;;  %v8033_v7 = vpack.c.bf16 %v2775_v44, %v2773_v40 }
 0xe51   : > { %3015 = vst [vmem:[#allocation3] sm:$0xff] %v5107_v37  ;;  %v5109_v39 = vpack.c.bf16 %v2725_v4, %v2723_v46 }
 0xe53   : > { %3017 = vst [vmem:[#allocation3 + $0xc] sm:$0xff] %v5109_v39 }
 0xe54   : > { %v5626_v11 = vpop.f32.mrb[4].mxu1 }
 0xe55   : > { %v2729_v14 = vpop.f32.mrb[4].mxu0  ;;  %v5112_v58 = vpack.c.bf16 %v5626_v11, %v5626_v11  ;;  %v2812_v45 = vpop.f32.mrb[5].mxu1 }
 0xe56   : > { %v2731_v23 = vpop.f32.mrb[5].mxu0  ;;  %v5108_v60 = vpack.c.bf16 %v2812_v45, %v2812_v45  ;;  %v5627_v43 = vpop.f32.mrb[6].mxu1 }
 0xe57   : > { %v5111_v0 = vpack.c.bf16 %v2731_v23, %v2729_v14  ;;  %v2733_v54 = vpop.f32.mrb[6].mxu0  ;;  %3020 = vst [vmem:[#allocation3 + $0x20] sm:$0xf] %v5112_v58  ;;  %v5114_v34 = vpack.c.bf16 %v5627_v43, %v5627_v43  ;;  %v2815_v49 = vpop.f32.mrb[7].mxu1 }
 0xe58   : > { %v2735_v59 = vpop.f32.mrb[7].mxu0  ;;  %3016 = vst [vmem:[#allocation3 + $0x8] sm:$0xf] %v5108_v60  ;;  %v5110_v6 = vpack.c.bf16 %v2815_v49, %v2815_v49 }
 0xe59   : > { %3019 = vst [vmem:[#allocation3 + $0x18] sm:$0xff] %v5111_v0  ;;  %v5113_v1 = vpack.c.bf16 %v2735_v59, %v2733_v54  ;;  %3022 = vst [vmem:[#allocation3 + $0x2c] sm:$0xf] %v5114_v34 }
 0xe5a   : > { %3018 = vst [vmem:[#allocation3 + $0x14] sm:$0xf] %v5110_v6 }
 0xe5b   : > { %3021 = vst [vmem:[#allocation3 + $0x24] sm:$0xff] %v5113_v1 }
 0xe5c   : > { %v5630_v8 = vpop.f32.mrb[8].mxu1 }
 0xe5d   : > { %v2739_v10 = vpop.f32.mrb[8].mxu0  ;;  %v5120_v9 = vpack.c.bf16 %v5630_v8, %v5630_v8  ;;  %v2828_v16 = vpop.f32.mrb[9].mxu1  ;;  %v3255_v8 = vunpack.c.l.bf16 %v8033_v7 }
 0xe5e   : > { %v2741_v13 = vpop.f32.mrb[9].mxu0  ;;  %v5116_v22 = vpack.c.bf16 %v2828_v16, %v2828_v16  ;;  %v5631_v17 = vpop.f32.mrb[10].mxu1 }
 0xe5f   : > { %v5115_v19 = vpack.c.bf16 %v2741_v13, %v2739_v10  ;;  %v2743_v24 = vpop.f32.mrb[10].mxu0  ;;  %3028 = vst [vmem:[#allocation3 + $0x50] sm:$0xf] %v5120_v9  ;;  %v5122_v27 = vpack.c.bf16 %v5631_v17, %v5631_v17  ;;  %v2831_v5 = vpop.f32.mrb[11].mxu1  ;;  %v3256_v9 = vunpack.c.h.bf16 %v8033_v7 }
 0xe60   : > { %v2745_v32 = vpop.f32.mrb[11].mxu0  ;;  %3024 = vst [vmem:[#allocation3 + $0x38] sm:$0xf] %v5116_v22  ;;  %v5118_v50 = vpack.c.bf16 %v2831_v5, %v2831_v5 }
 0xe61   : > { %3023 = vst [vmem:[#allocation3 + $0x30] sm:$0xff] %v5115_v19  ;;  %v5117_v21 = vpack.c.bf16 %v2745_v32, %v2743_v24  ;;  %3030 = vst [vmem:[#allocation3 + $0x5c] sm:$0xf] %v5122_v27 }
 0xe62   : > { %3026 = vst [vmem:[#allocation3 + $0x44] sm:$0xf] %v5118_v50 }
 0xe63   : > { %3025 = vst [vmem:[#allocation3 + $0x3c] sm:$0xff] %v5117_v21 }
 0xe64   : > { %v5634_v40 = vpop.f32.mrb[12].mxu1 }
 0xe65   : > { %v2749_v37 = vpop.f32.mrb[12].mxu0  ;;  %v5128_v46 = vpack.c.bf16 %v5634_v40, %v5634_v40  ;;  %v2844_v44 = vpop.f32.mrb[13].mxu1 }
 0xe66   : > { %v2751_v4 = vpop.f32.mrb[13].mxu0  ;;  %v5124_v39 = vpack.c.bf16 %v2844_v44, %v2844_v44  ;;  %v5635_v11 = vpop.f32.mrb[14].mxu1 }
 0xe67   : > { %v8035_v14 = vpack.c.bf16 %v2751_v4, %v2749_v37  ;;  %v2753_v58 = vpop.f32.mrb[14].mxu0  ;;  %3036 = vst [vmem:[#allocation3 + $0x80] sm:$0xf] %v5128_v46  ;;  %v5130_v45 = vpack.c.bf16 %v5635_v11, %v5635_v11  ;;  %v2847_v23 = vpop.f32.mrb[15].mxu1 }
 0xe68   : > { %v2755_v60 = vpop.f32.mrb[15].mxu0  ;;  %3032 = vst [vmem:[#allocation3 + $0x68] sm:$0xf] %v5124_v39  ;;  %v5126_v43 = vpack.c.bf16 %v2847_v23, %v2847_v23 }
 0xe69   : > { %v8037_v0 = vpack.c.bf16 %v2755_v60, %v2753_v58  ;;  %3038 = vst [vmem:[#allocation3 + $0x8c] sm:$0xf] %v5130_v45 }
 0xe6a   : > { %3034 = vst [vmem:[#allocation3 + $0x74] sm:$0xf] %v5126_v43  ;;  %v3284_v43 = vpop.permute.xlu0 %3283 }
 0xe6b   : > { %vm3285_vm2 = vcmp.eq.s32.totalorder %v3284_v43, 1 }
 0xe6d   : > { %v2759_v54 = vpop.f32.mrb[16].mxu0 }
 0xe6e   : > { %v2761_v34 = vpop.f32.mrb[17].mxu0 }
 0xe6f   : > { %v8039_v49 = vpack.c.bf16 %v2761_v34, %v2759_v54  ;;  %v2763_v59 = vpop.f32.mrb[18].mxu0 }
 0xe70   : > { %v2765_v6 = vpop.f32.mrb[19].mxu0  ;;  %v8045_v7 = vld [vmem:[#allocation3 + $0x80] ss:$12 sps:$4 sm:$0xff]  }
 0xe71   : > { %v8041_v1 = vpack.c.bf16 %v2765_v6, %v2763_v59  ;;  %v3257_v39 = vunpack.c.h.bf16 %v8045_v7  ;;  %v3289_v59 = vstv %s3288_s16 }
 0xe74   : > { %v3208_v10 = vpop.f32.mrb[16].mxu1 }
 0xe75   : > { %v3249_v16 = vpop.f32.mrb[20].mxu0  ;;  %v3258_v13 = vadd.f32 %v3255_v8, %v3208_v10  ;;  %v3210_v22 = vpop.f32.mrb[17].mxu1 }
 0xe76   : > { %v5654_v17 = vpop.f32.mrb[21].mxu0  ;;  %v3265_v19 = vadd.f32 %v3256_v9, %v3210_v22  ;;  %v3212_v24 = vpop.f32.mrb[18].mxu1  ;;  %v4142_v22 = vsel %vm5061_vm6, 1, %v6569_v26 }
 0xe77   : > { %v3252_v27 = vpop.f32.mrb[22].mxu0  ;;  %v5031_v5 = vmul.f32 -1.442695, %v3258_v13  ;;  %v3213_v32 = vpop.f32.mrb[19].mxu1  ;;  %v3896_v13 = vsel %vm5053_vm5, 1, %v6569_v26  ;;  %v4388_v17 = vsel %vm5069_vm8, 1, %v6569_v26  ;;  %v3378_v24 = vunpack.c.l.bf16 %v8031_v63 }
 0xe78   : > { %v5655_v50 = vpop.f32.mrb[23].mxu0  ;;  %v5032_v21 = vmul.f32 -1.442695, %v3265_v19  ;;  %v4632_v19 = vsel %vm5077_vm7, 1, %v6569_v26  ;;  %v3379_v32 = vunpack.c.h.bf16 %v8031_v63  ;;  %v3380_v63 = vunpack.c.l.bf16 %v8045_v7 }
 0xe79   : > { %6160 = vpow2.f32 %v5031_v5 }
 0xe7a   : > { %6162 = vpow2.f32 %v5032_v21 }
 0xe83   : > { %v6161_v40 = vpop.eup %6160 }
 0xe84   : > { %v3262_v37 = vadd.f32 1.0, %v6161_v40  ;;  %v6163_v46 = vpop.eup %6162 }
 0xe85   : > { %v3269_v44 = vadd.f32 1.0, %v6163_v46 }
 0xe86   : > { %6164 = vrcp.f32 %v3262_v37 }
 0xe87   : > { %6166 = vrcp.f32 %v3269_v44 }
 0xe90   : > { %v6165_v4 = vpop.eup %6164 }
 0xe91   : > { %v3272_v11 = vmul.f32 %v6165_v4, %v3249_v16  ;;  %v6167_v45 = vpop.eup %6166  ;;  %v3650_v16 = vsel %vm5045_vm4, 1, %v6569_v26 }
 0xe92   : > { %v3275_v23 = vsub.f32 1.0, %v6167_v45  ;;  %v3277_v34 = vmul.f32 %v6167_v45, %v7985_v30 }
 0xe93   : > { %v3273_v58 = vadd.f32 %v3272_v11, %v3257_v39 }
 0xe95   : > { %6168 = vtanh.f32 %v3273_v58 }
 0xe9f   : > { %v6169_v60 = vpop.eup %6168 }
 0xea0   : > { %v3276_v54 = vmul.f32 %v6169_v60, %v3275_v23 }
 0xea2   : > { %v3278_v6 = vadd.f32 %v3277_v34, %v3276_v54 }
 0xea4   : > { %v8051_v8 = vsel %vm3285_vm2, %v3278_v6, %v7985_v30  ;;  %v8053_v10 = vsel %vm3285_vm2, %v3278_v6, %v3289_v59  ;;  %v3527_v30 = vsel %vm5041_vm3, 1, %v6569_v26 }
 0xea5   : > { %v3296_v9 = vpack.c.bf16 %v8051_v8, %v8051_v8  ;;  %3529 = vperm.xlu1 %6145, %v3527_v30   ;;  %v3040_v30 = vld [vmem:[#allocation7] sm:$0xff] }
 0xea7   : > { %3330 = vmatmul.mubr.bf16.vlgmr.msra.gmra.mrb[20].mxu1 %v3296_v9  ;;  %5673 = vmatmul.mubr.bf16.vlgmr.msra.gmra.mrb[24].mxu0 %v3296_v9 }
 0xea8   : > { %3421 = vmatpush1.bf16.msra.mxu1 %v7850_v47  ;;  %5677 = vmatpush3.bf16.msra.mxu0 %v7827_v56 }
 0xea9   : > { %3422 = vmatprep.subr.bf16.mxu1 %v7856_v61  ;;  %5678 = vmatprep.subr.bf16.mxu0 %v6570_v55 }
 0xeaa   : > { %3452 = vmatprep.mubr.bf16.mxu1 %v6569_v26  ;;  %5692 = vmatprep.mubr.msk.bf16.mxu0 %vm6571_vm1, %v6570_v55 }
 0xeab   : > { %3652 = vperm.xlu1 %6145, %v3650_v16  }
 0xeac   : > { %3423 = vmatpush1.bf16.msra.mxu1 %v7870_v35  ;;  %5679 = vmatpush3.bf16.msra.mxu0 %v7843_v38 }
 0xead   : > { %3424 = vmatprep.subr.bf16.mxu1 %v7877_v29  ;;  %5680 = vmatprep.subr.bf16.mxu0 %v6570_v55 }
 0xeaf   : > { %3898 = vperm.xlu1 %6145, %v3896_v13  }
 0xeb0   : > { %3425 = vmatpush1.bf16.msra.mxu1 %v7890_v41  ;;  %5681 = vmatpush3.bf16.msra.mxu0 %v7861_v42 }
 0xeb1   : > { %3426 = vmatprep.subr.bf16.mxu1 %v7897_v53  ;;  %5682 = vmatprep.subr.bf16.mxu0 %v6570_v55 }
 0xeb3   : > { %4144 = vperm.xlu1 %6145, %v4142_v22   ;;  %v3412_v22 = vstv %s3411_s8 }
 0xeb4   : > { %3427 = vmatpush1.bf16.msra.mxu1 %v7911_v48  ;;  %5683 = vmatpush3.bf16.msra.mxu0 %v7882_v52 }
 0xeb5   : > { %3428 = vmatprep.subr.bf16.mxu1 %v7918_v33  ;;  %5684 = vmatprep.subr.bf16.mxu0 %v6570_v55 }
 0xeb7   : > { %4390 = vperm.xlu1 %6145, %v4388_v17   ;;  %v3407_v17 = vpop.permute.xlu0 %3406 }
 0xeb8   : > { %3429 = vmatpush1.bf16.msra.mxu1 %v7931_v15  ;;  %5685 = vmatpush3.bf16.msra.mxu0 %v7903_v51  ;;  %vm3408_vm9 = vcmp.eq.s32.totalorder %v3407_v17, 1 }
 0xeb9   : > { %3430 = vmatprep.subr.bf16.mxu1 %v7937_v57  ;;  %5686 = vmatprep.subr.bf16.mxu0 %v6570_v55 }
 0xebb   : > { %4634 = vperm.xlu1 %6145, %v4632_v19  }
 0xebc   : > { %3431 = vmatpush1.bf16.msra.mxu1 %v7951_v12  ;;  %5687 = vmatpush3.bf16.msra.mxu0 %v7924_v31 }
 0xebd   : > { %3432 = vmatprep.subr.bf16.mxu1 %v7958_v18  ;;  %5688 = vmatprep.subr.bf16.mxu0 %v6570_v55 }
 0xec0   : > { %3433 = vmatpush1.bf16.msra.mxu1 %v7967_v20  ;;  %5689 = vmatpush3.bf16.msra.mxu0 %v7945_v3 }
 0xec1   : > { %3434 = vmatprep.subr.bf16.mxu1 %v7977_v25  ;;  %5690 = vmatprep.subr.bf16.mxu0 %v6570_v55 }
 0xec4   : > { %3435 = vmatpush1.bf16.msra.mxu1 %v7983_v28  ;;  %5691 = vmatpush3.bf16.msra.mxu0 %v7972_v62 }
 0xec5   : > { %3543 = vmatprep.subr.bf16.mxu1 %v7838_v36  ;;  %5696 = vmatprep.subr.bf16.mxu0 %v6570_v55 }
 0xf7a   : > { %v3331_v27 = vpop.f32.mrb[20].mxu1  ;;  %v3372_v5 = vpop.f32.mrb[24].mxu0 }
 0xf7b   : > { %v3381_v50 = vadd.f32 %v3378_v24, %v3331_v27  ;;  %v3333_v21 = vpop.f32.mrb[21].mxu1  ;;  %v5674_v40 = vpop.f32.mrb[25].mxu0  ;;  %v3291_v24 = vmax.f32 %v3040_v30, %v8053_v10 }
 0xf7c   : > { %v3388_v37 = vadd.f32 %v3379_v32, %v3333_v21  ;;  %v3335_v46 = vpop.f32.mrb[22].mxu1  ;;  %v3375_v44 = vpop.f32.mrb[26].mxu0  ;;  %v3502_v21 = vunpack.c.h.bf16 %v8041_v1 }
 0xf7d   : > { %v5035_v4 = vmul.f32 -1.442695, %v3381_v50  ;;  %v3336_v39 = vpop.f32.mrb[23].mxu1  ;;  %v5675_v2 = vpop.f32.mrb[27].mxu0 }
 0xf7e   : > { %v5036_v11 = vmul.f32 -1.442695, %v3388_v37 }
 0xf7f   : > { %6170 = vpow2.f32 %v5035_v4 }
 0xf80   : > { %6172 = vpow2.f32 %v5036_v11 }
 0xf89   : > { %v6171_v58 = vpop.eup %6170 }
 0xf8a   : > { %v3385_v45 = vadd.f32 1.0, %v6171_v58  ;;  %v6173_v23 = vpop.eup %6172 }
 0xf8b   : > { %v3392_v60 = vadd.f32 1.0, %v6173_v23 }
 0xf8c   : > { %6174 = vrcp.f32 %v3385_v45 }
 0xf8d   : > { %6176 = vrcp.f32 %v3392_v60 }
 0xf96   : > { %v6175_v43 = vpop.eup %6174 }
 0xf97   : > { %v3395_v54 = vmul.f32 %v6175_v43, %v3372_v5  ;;  %v6177_v59 = vpop.eup %6176 }
 0xf98   : > { %v3398_v6 = vsub.f32 1.0, %v6177_v59  ;;  %v3400_v16 = vmul.f32 %v6177_v59, %v8051_v8 }
 0xf99   : > { %v3396_v34 = vadd.f32 %v3395_v54, %v3380_v63  ;;  %v8154_v54 = vld [vmem:[#allocation3 + $0x68] ss:$12 sps:$4 sm:$0xff]  }
 0xf9b   : > { %6178 = vtanh.f32 %v3396_v34  ;;  %v3503_v34 = vunpack.c.h.bf16 %v8154_v54 }
 0xfa5   : > { %v6179_v9 = vpop.eup %6178 }
 0xfa6   : > { %v3399_v13 = vmul.f32 %v6179_v9, %v3398_v6 }
 0xfa8   : > { %v3401_v19 = vadd.f32 %v3400_v16, %v3399_v13  ;;  %v3530_v13 = vpop.permute.xlu1 %3529 }
 0xfa9   : > { %vm3531_vm10 = vcmp.eq.s32.totalorder %v3530_v13, 1 }
 0xfaa   : > { %v8111_v7 = vsel %vm3408_vm9, %v3401_v19, %v8051_v8  ;;  %v3413_v27 = vsel %vm3408_vm9, %v3401_v19, %v3412_v22  ;;  %v3501_v8 = vunpack.c.l.bf16 %v8041_v1  ;;  %v3535_v19 = vstv %s3534_s28 }
 0xfab   : > { %v3419_v5 = vpack.c.bf16 %v8111_v7, %v8111_v7  ;;  %v8115_v32 = vmax.f32 %v3291_v24, %v3413_v27 }
 0xfad   : > { %3453 = vmatmul.mubr.bf16.vlgmr.msra.gmra.mrb[24].mxu1 %v3419_v5  ;;  %5693 = vmatmul.mubr.bf16.vlgmr.msra.gmra.mrb[28].mxu0 %v3419_v5 }
 0xfae   : > { %3544 = vmatpush1.bf16.msra.mxu1 %v7850_v47  ;;  %5697 = vmatpush3.bf16.msra.mxu0 %v7827_v56 }
 0xfaf   : > { %3545 = vmatprep.subr.bf16.mxu1 %v7856_v61  ;;  %5698 = vmatprep.subr.bf16.mxu0 %v6570_v55 }
 0xfb0   : > { %3575 = vmatprep.mubr.bf16.mxu1 %v6569_v26  ;;  %5712 = vmatprep.mubr.msk.bf16.mxu0 %vm6571_vm1, %v6570_v55 }
 0xfb2   : > { %3546 = vmatpush1.bf16.msra.mxu1 %v7870_v35  ;;  %5699 = vmatpush3.bf16.msra.mxu0 %v7843_v38 }
 0xfb3   : > { %3547 = vmatprep.subr.bf16.mxu1 %v7877_v29  ;;  %5700 = vmatprep.subr.bf16.mxu0 %v6570_v55 }
 0xfb6   : > { %3548 = vmatpush1.bf16.msra.mxu1 %v7890_v41  ;;  %5701 = vmatpush3.bf16.msra.mxu0 %v7861_v42 }
 0xfb7   : > { %3549 = vmatprep.subr.bf16.mxu1 %v7897_v53  ;;  %5702 = vmatprep.subr.bf16.mxu0 %v6570_v55 }
 0xfba   : > { %3550 = vmatpush1.bf16.msra.mxu1 %v7911_v48  ;;  %5703 = vmatpush3.bf16.msra.mxu0 %v7882_v52 }
 0xfbb   : > { %3551 = vmatprep.subr.bf16.mxu1 %v7918_v33  ;;  %5704 = vmatprep.subr.bf16.mxu0 %v6570_v55 }
 0xfbe   : > { %3552 = vmatpush1.bf16.msra.mxu1 %v7931_v15  ;;  %5705 = vmatpush3.bf16.msra.mxu0 %v7903_v51 }
 0xfbf   : > { %3553 = vmatprep.subr.bf16.mxu1 %v7937_v57  ;;  %5706 = vmatprep.subr.bf16.mxu0 %v6570_v55 }
 0xfc2   : > { %3554 = vmatpush1.bf16.msra.mxu1 %v7951_v12  ;;  %5707 = vmatpush3.bf16.msra.mxu0 %v7924_v31 }
 0xfc3   : > { %3555 = vmatprep.subr.bf16.mxu1 %v7958_v18  ;;  %5708 = vmatprep.subr.bf16.mxu0 %v6570_v55 }
 0xfc6   : > { %3556 = vmatpush1.bf16.msra.mxu1 %v7967_v20  ;;  %5709 = vmatpush3.bf16.msra.mxu0 %v7945_v3 }
 0xfc7   : > { %3557 = vmatprep.subr.bf16.mxu1 %v7977_v25  ;;  %5710 = vmatprep.subr.bf16.mxu0 %v6570_v55 }
 0xfca   : > { %3558 = vmatpush1.bf16.msra.mxu1 %v7983_v28  ;;  %5711 = vmatpush3.bf16.msra.mxu0 %v7972_v62 }
 0xfcb   : > { %3666 = vmatprep.subr.bf16.mxu1 %v7838_v36  ;;  %5716 = vmatprep.subr.bf16.mxu0 %v6570_v55 }
0x1080   : > { %v3454_v10 = vpop.f32.mrb[24].mxu1  ;;  %v3495_v50 = vpop.f32.mrb[28].mxu0 }
0x1081   : > { %v3504_v40 = vadd.f32 %v3501_v8, %v3454_v10  ;;  %v3456_v37 = vpop.f32.mrb[25].mxu1  ;;  %v5694_v46 = vpop.f32.mrb[29].mxu0 }
0x1082   : > { %v3511_v44 = vadd.f32 %v3502_v21, %v3456_v37  ;;  %v3458_v4 = vpop.f32.mrb[26].mxu1  ;;  %v3498_v39 = vpop.f32.mrb[30].mxu0 }
0x1083   : > { %v5039_v2 = vmul.f32 -1.442695, %v3504_v40  ;;  %v3459_v11 = vpop.f32.mrb[27].mxu1  ;;  %v5695_v58 = vpop.f32.mrb[31].mxu0  ;;  %v3625_v40 = vunpack.c.h.bf16 %v8039_v49 }
0x1084   : > { %v5040_v45 = vmul.f32 -1.442695, %v3511_v44 }
0x1085   : > { %6180 = vpow2.f32 %v5039_v2 }
0x1086   : > { %6182 = vpow2.f32 %v5040_v45 }
0x108f   : > { %v6181_v23 = vpop.eup %6180 }
0x1090   : > { %v3508_v60 = vadd.f32 1.0, %v6181_v23  ;;  %v6183_v43 = vpop.eup %6182 }
0x1091   : > { %v3515_v63 = vadd.f32 1.0, %v6183_v43 }
0x1092   : > { %6184 = vrcp.f32 %v3508_v60 }
0x1093   : > { %6186 = vrcp.f32 %v3515_v63 }
0x109c   : > { %v6185_v1 = vpop.eup %6184 }
0x109d   : > { %v3518_v59 = vmul.f32 %v6185_v1, %v3495_v50  ;;  %v6187_v9 = vpop.eup %6186 }
0x109e   : > { %v3521_v30 = vsub.f32 1.0, %v6187_v9  ;;  %v3523_v17 = vmul.f32 %v6187_v9, %v8111_v7 }
0x109f   : > { %v3519_v6 = vadd.f32 %v3518_v59, %v3503_v34 }
0x10a1   : > { %6188 = vtanh.f32 %v3519_v6 }
0x10ab   : > { %v6189_v16 = vpop.eup %6188 }
0x10ac   : > { %v3522_v22 = vmul.f32 %v6189_v16, %v3521_v30 }
0x10ae   : > { %v3524_v24 = vadd.f32 %v3523_v17, %v3522_v22  ;;  %v3658_v17 = vstv %s3657_s22 }
0x10b0   : > { %v8160_v27 = vsel %vm3531_vm10, %v3524_v24, %v8111_v7  ;;  %v8162_v5 = vsel %vm3531_vm10, %v3524_v24, %v3535_v19  ;;  %v3624_v7 = vunpack.c.l.bf16 %v8039_v49  ;;  %v3626_v49 = vunpack.c.l.bf16 %v8154_v54  ;;  %v3653_v19 = vpop.permute.xlu1 %3652 }
0x10b1   : > { %v3537_v8 = vmax.f32 %v8115_v32, %v8162_v5  ;;  %v3542_v10 = vpack.c.bf16 %v8160_v27, %v8160_v27  ;;  %vm3654_vm11 = vcmp.eq.s32.totalorder %v3653_v19, 1  ;;  %v3747_v32 = vunpack.c.l.bf16 %v8037_v0 }
0x10b3   : > { %3576 = vmatmul.mubr.bf16.vlgmr.msra.gmra.mrb[28].mxu1 %v3542_v10  ;;  %5713 = vmatmul.mubr.bf16.vlgmr.msra.gmra.mrb[32].mxu0 %v3542_v10 }
0x10b4   : > { %3667 = vmatpush1.bf16.msra.mxu1 %v7850_v47  ;;  %5717 = vmatpush3.bf16.msra.mxu0 %v7827_v56 }
0x10b5   : > { %3668 = vmatprep.subr.bf16.mxu1 %v7856_v61  ;;  %5718 = vmatprep.subr.bf16.mxu0 %v6570_v55 }
0x10b6   : > { %3698 = vmatprep.mubr.bf16.mxu1 %v6569_v26  ;;  %5732 = vmatprep.mubr.msk.bf16.mxu0 %vm6571_vm1, %v6570_v55 }
0x10b8   : > { %3669 = vmatpush1.bf16.msra.mxu1 %v7870_v35  ;;  %5719 = vmatpush3.bf16.msra.mxu0 %v7843_v38 }
0x10b9   : > { %3670 = vmatprep.subr.bf16.mxu1 %v7877_v29  ;;  %5720 = vmatprep.subr.bf16.mxu0 %v6570_v55 }
0x10bc   : > { %3671 = vmatpush1.bf16.msra.mxu1 %v7890_v41  ;;  %5721 = vmatpush3.bf16.msra.mxu0 %v7861_v42 }
0x10bd   : > { %3672 = vmatprep.subr.bf16.mxu1 %v7897_v53  ;;  %5722 = vmatprep.subr.bf16.mxu0 %v6570_v55 }
0x10c0   : > { %3673 = vmatpush1.bf16.msra.mxu1 %v7911_v48  ;;  %5723 = vmatpush3.bf16.msra.mxu0 %v7882_v52 }
0x10c1   : > { %3674 = vmatprep.subr.bf16.mxu1 %v7918_v33  ;;  %5724 = vmatprep.subr.bf16.mxu0 %v6570_v55 }
0x10c4   : > { %3675 = vmatpush1.bf16.msra.mxu1 %v7931_v15  ;;  %5725 = vmatpush3.bf16.msra.mxu0 %v7903_v51 }
0x10c5   : > { %3676 = vmatprep.subr.bf16.mxu1 %v7937_v57  ;;  %5726 = vmatprep.subr.bf16.mxu0 %v6570_v55 }
0x10c8   : > { %3677 = vmatpush1.bf16.msra.mxu1 %v7951_v12  ;;  %5727 = vmatpush3.bf16.msra.mxu0 %v7924_v31 }
0x10c9   : > { %3678 = vmatprep.subr.bf16.mxu1 %v7958_v18  ;;  %5728 = vmatprep.subr.bf16.mxu0 %v6570_v55 }
0x10cc   : > { %3679 = vmatpush1.bf16.msra.mxu1 %v7967_v20  ;;  %5729 = vmatpush3.bf16.msra.mxu0 %v7945_v3 }
0x10cd   : > { %3680 = vmatprep.subr.bf16.mxu1 %v7977_v25  ;;  %5730 = vmatprep.subr.bf16.mxu0 %v6570_v55 }
0x10d0   : > { %3681 = vmatpush1.bf16.msra.mxu1 %v7983_v28  ;;  %5731 = vmatpush3.bf16.msra.mxu0 %v7972_v62 }
0x10d1   : > { %3789 = vmatprep.subr.bf16.mxu1 %v7838_v36  ;;  %5736 = vmatprep.subr.bf16.mxu0 %v6570_v55 }
0x1186   : > { %v3577_v50 = vpop.f32.mrb[28].mxu1  ;;  %v3618_v21 = vpop.f32.mrb[32].mxu0 }
0x1187   : > { %v3627_v37 = vadd.f32 %v3624_v7, %v3577_v50  ;;  %v3579_v46 = vpop.f32.mrb[29].mxu1  ;;  %v5714_v44 = vpop.f32.mrb[33].mxu0 }
0x1188   : > { %v3634_v4 = vadd.f32 %v3625_v40, %v3579_v46  ;;  %v3581_v39 = vpop.f32.mrb[30].mxu1  ;;  %v3621_v2 = vpop.f32.mrb[34].mxu0 }
0x1189   : > { %v5043_v11 = vmul.f32 -1.442695, %v3627_v37  ;;  %v3582_v58 = vpop.f32.mrb[31].mxu1  ;;  %v5715_v45 = vpop.f32.mrb[35].mxu0 }
0x118a   : > { %v5044_v23 = vmul.f32 -1.442695, %v3634_v4 }
0x118b   : > { %6190 = vpow2.f32 %v5043_v11 }
0x118c   : > { %6192 = vpow2.f32 %v5044_v23 }
0x1195   : > { %v6191_v60 = vpop.eup %6190 }
0x1196   : > { %v3631_v43 = vadd.f32 1.0, %v6191_v60  ;;  %v6193_v63 = vpop.eup %6192 }
0x1197   : > { %v3638_v1 = vadd.f32 1.0, %v6193_v63  ;;  %v8255_v63 = vld [vmem:[#allocation3 + $0x50] ss:$12 sps:$4 sm:$0xff]  }
0x1198   : > { %6194 = vrcp.f32 %v3631_v43 }
0x1199   : > { %6196 = vrcp.f32 %v3638_v1  ;;  %v3749_v1 = vunpack.c.h.bf16 %v8255_v63 }
0x11a2   : > { %v6195_v34 = vpop.eup %6194 }
0x11a3   : > { %v3641_v59 = vmul.f32 %v6195_v34, %v3618_v21  ;;  %v6197_v9 = vpop.eup %6196 }
0x11a4   : > { %v3644_v30 = vsub.f32 1.0, %v6197_v9  ;;  %v3646_v13 = vmul.f32 %v6197_v9, %v8160_v27 }
0x11a5   : > { %v3642_v6 = vadd.f32 %v3641_v59, %v3626_v49 }
0x11a7   : > { %6198 = vtanh.f32 %v3642_v6 }
0x11b1   : > { %v6199_v16 = vpop.eup %6198 }
0x11b2   : > { %v3645_v22 = vmul.f32 %v6199_v16, %v3644_v30 }
0x11b4   : > { %v3647_v24 = vadd.f32 %v3646_v13, %v3645_v22  ;;  %v3781_v13 = vstv %s3780_s26  ;;  %v3776_v22 = vpop.permute.xlu0 %3775 }
0x11b5   : > { %vm3777_vm12 = vcmp.eq.s32.totalorder %v3776_v22, 1 }
0x11b6   : > { %v8209_v10 = vsel %vm3654_vm11, %v3647_v24, %v8160_v27  ;;  %v3659_v54 = vsel %vm3654_vm11, %v3647_v24, %v3658_v17 }
0x11b7   : > { %v8214_v7 = vmax.f32 %v3537_v8, %v3659_v54  ;;  %v3665_v50 = vpack.c.bf16 %v8209_v10, %v8209_v10  ;;  %v3748_v8 = vunpack.c.h.bf16 %v8037_v0 }
0x11b9   : > { %3699 = vmatmul.mubr.bf16.vlgmr.msra.gmra.mrb[32].mxu1 %v3665_v50  ;;  %5733 = vmatmul.mubr.bf16.vlgmr.msra.gmra.mrb[36].mxu0 %v3665_v50 }
0x11ba   : > { %3790 = vmatpush1.bf16.msra.mxu1 %v7850_v47  ;;  %5737 = vmatpush3.bf16.msra.mxu0 %v7827_v56 }
0x11bb   : > { %3791 = vmatprep.subr.bf16.mxu1 %v7856_v61  ;;  %5738 = vmatprep.subr.bf16.mxu0 %v6570_v55 }
0x11bc   : > { %3821 = vmatprep.mubr.bf16.mxu1 %v6569_v26  ;;  %5752 = vmatprep.mubr.msk.bf16.mxu0 %vm6571_vm1, %v6570_v55 }
0x11be   : > { %3792 = vmatpush1.bf16.msra.mxu1 %v7870_v35  ;;  %5739 = vmatpush3.bf16.msra.mxu0 %v7843_v38 }
0x11bf   : > { %3793 = vmatprep.subr.bf16.mxu1 %v7877_v29  ;;  %5740 = vmatprep.subr.bf16.mxu0 %v6570_v55 }
0x11c2   : > { %3794 = vmatpush1.bf16.msra.mxu1 %v7890_v41  ;;  %5741 = vmatpush3.bf16.msra.mxu0 %v7861_v42 }
0x11c3   : > { %3795 = vmatprep.subr.bf16.mxu1 %v7897_v53  ;;  %5742 = vmatprep.subr.bf16.mxu0 %v6570_v55 }
0x11c6   : > { %3796 = vmatpush1.bf16.msra.mxu1 %v7911_v48  ;;  %5743 = vmatpush3.bf16.msra.mxu0 %v7882_v52 }
0x11c7   : > { %3797 = vmatprep.subr.bf16.mxu1 %v7918_v33  ;;  %5744 = vmatprep.subr.bf16.mxu0 %v6570_v55 }
0x11ca   : > { %3798 = vmatpush1.bf16.msra.mxu1 %v7931_v15  ;;  %5745 = vmatpush3.bf16.msra.mxu0 %v7903_v51 }
0x11cb   : > { %3799 = vmatprep.subr.bf16.mxu1 %v7937_v57  ;;  %5746 = vmatprep.subr.bf16.mxu0 %v6570_v55 }
0x11ce   : > { %3800 = vmatpush1.bf16.msra.mxu1 %v7951_v12  ;;  %5747 = vmatpush3.bf16.msra.mxu0 %v7924_v31 }
0x11cf   : > { %3801 = vmatprep.subr.bf16.mxu1 %v7958_v18  ;;  %5748 = vmatprep.subr.bf16.mxu0 %v6570_v55 }
0x11d2   : > { %3802 = vmatpush1.bf16.msra.mxu1 %v7967_v20  ;;  %5749 = vmatpush3.bf16.msra.mxu0 %v7945_v3 }
0x11d3   : > { %3803 = vmatprep.subr.bf16.mxu1 %v7977_v25  ;;  %5750 = vmatprep.subr.bf16.mxu0 %v6570_v55 }
0x11d6   : > { %3804 = vmatpush1.bf16.msra.mxu1 %v7983_v28  ;;  %5751 = vmatpush3.bf16.msra.mxu0 %v7972_v62 }
0x11d7   : > { %3912 = vmatprep.subr.bf16.mxu1 %v7838_v36  ;;  %5756 = vmatprep.subr.bf16.mxu0 %v6570_v55 }
0x128c   : > { %v3700_v27 = vpop.f32.mrb[32].mxu1  ;;  %v3741_v5 = vpop.f32.mrb[36].mxu0 }
0x128d   : > { %v3750_v21 = vadd.f32 %v3747_v32, %v3700_v27  ;;  %v3702_v40 = vpop.f32.mrb[33].mxu1  ;;  %v5734_v37 = vpop.f32.mrb[37].mxu0 }
0x128e   : > { %v3757_v46 = vadd.f32 %v3748_v8, %v3702_v40  ;;  %v3704_v44 = vpop.f32.mrb[34].mxu1  ;;  %v3744_v4 = vpop.f32.mrb[38].mxu0 }
0x128f   : > { %v5047_v39 = vmul.f32 -1.442695, %v3750_v21  ;;  %v3705_v2 = vpop.f32.mrb[35].mxu1  ;;  %v5735_v11 = vpop.f32.mrb[39].mxu0 }
0x1290   : > { %v5048_v58 = vmul.f32 -1.442695, %v3757_v46 }
0x1291   : > { %6200 = vpow2.f32 %v5047_v39 }
0x1292   : > { %6202 = vpow2.f32 %v5048_v58 }
0x129b   : > { %v6201_v45 = vpop.eup %6200 }
0x129c   : > { %v3754_v23 = vadd.f32 1.0, %v6201_v45  ;;  %v6203_v60 = vpop.eup %6202 }
0x129d   : > { %v3761_v43 = vadd.f32 1.0, %v6203_v60 }
0x129e   : > { %6204 = vrcp.f32 %v3754_v23 }
0x129f   : > { %6206 = vrcp.f32 %v3761_v43 }
0x12a8   : > { %v6205_v0 = vpop.eup %6204 }
0x12a9   : > { %v3764_v34 = vmul.f32 %v6205_v0, %v3741_v5  ;;  %v6207_v59 = vpop.eup %6206  ;;  %v3871_v5 = vunpack.c.h.bf16 %v8035_v14 }
0x12aa   : > { %v3767_v6 = vsub.f32 1.0, %v6207_v59  ;;  %v3769_v30 = vmul.f32 %v6207_v59, %v8209_v10 }
0x12ab   : > { %v3765_v49 = vadd.f32 %v3764_v34, %v3749_v1 }
0x12ad   : > { %6208 = vtanh.f32 %v3765_v49 }
0x12b7   : > { %v6209_v9 = vpop.eup %6208 }
0x12b8   : > { %v3768_v16 = vmul.f32 %v6209_v9, %v3767_v6 }
0x12ba   : > { %v3770_v17 = vadd.f32 %v3769_v30, %v3768_v16  ;;  %v3904_v30 = vstv %s3903_s0  ;;  %v3899_v16 = vpop.permute.xlu1 %3898 }
0x12bb   : > { %vm3900_vm13 = vcmp.eq.s32.totalorder %v3899_v16, 1 }
0x12bc   : > { %v8261_v19 = vsel %vm3777_vm12, %v3770_v17, %v8209_v10  ;;  %v8263_v24 = vsel %vm3777_vm12, %v3770_v17, %v3781_v13  ;;  %v3870_v10 = vunpack.c.l.bf16 %v8035_v14  ;;  %v3872_v14 = vunpack.c.l.bf16 %v8255_v63 }
0x12bd   : > { %v3783_v54 = vmax.f32 %v8214_v7, %v8263_v24  ;;  %v3788_v50 = vpack.c.bf16 %v8261_v19, %v8261_v19  ;;  %v6280_v7 = vld [vmem:[#allocation3 + $0x3c] sm:$0xff] }
0x12bf   : > { %3822 = vmatmul.mubr.bf16.vlgmr.msra.gmra.mrb[36].mxu1 %v3788_v50  ;;  %5753 = vmatmul.mubr.bf16.vlgmr.msra.gmra.mrb[40].mxu0 %v3788_v50 }
0x12c0   : > { %3913 = vmatpush1.bf16.msra.mxu1 %v7850_v47  ;;  %5757 = vmatpush3.bf16.msra.mxu0 %v7827_v56 }
0x12c1   : > { %3914 = vmatprep.subr.bf16.mxu1 %v7856_v61  ;;  %5758 = vmatprep.subr.bf16.mxu0 %v6570_v55 }
0x12c2   : > { %3944 = vmatprep.mubr.bf16.mxu1 %v6569_v26  ;;  %5772 = vmatprep.mubr.msk.bf16.mxu0 %vm6571_vm1, %v6570_v55 }
0x12c4   : > { %3915 = vmatpush1.bf16.msra.mxu1 %v7870_v35  ;;  %5759 = vmatpush3.bf16.msra.mxu0 %v7843_v38 }
0x12c5   : > { %3916 = vmatprep.subr.bf16.mxu1 %v7877_v29  ;;  %5760 = vmatprep.subr.bf16.mxu0 %v6570_v55 }
0x12c8   : > { %3917 = vmatpush1.bf16.msra.mxu1 %v7890_v41  ;;  %5761 = vmatpush3.bf16.msra.mxu0 %v7861_v42 }
0x12c9   : > { %3918 = vmatprep.subr.bf16.mxu1 %v7897_v53  ;;  %5762 = vmatprep.subr.bf16.mxu0 %v6570_v55 }
0x12cc   : > { %3919 = vmatpush1.bf16.msra.mxu1 %v7911_v48  ;;  %5763 = vmatpush3.bf16.msra.mxu0 %v7882_v52 }
0x12cd   : > { %3920 = vmatprep.subr.bf16.mxu1 %v7918_v33  ;;  %5764 = vmatprep.subr.bf16.mxu0 %v6570_v55 }
0x12d0   : > { %3921 = vmatpush1.bf16.msra.mxu1 %v7931_v15  ;;  %5765 = vmatpush3.bf16.msra.mxu0 %v7903_v51 }
0x12d1   : > { %3922 = vmatprep.subr.bf16.mxu1 %v7937_v57  ;;  %5766 = vmatprep.subr.bf16.mxu0 %v6570_v55 }
0x12d4   : > { %3923 = vmatpush1.bf16.msra.mxu1 %v7951_v12  ;;  %5767 = vmatpush3.bf16.msra.mxu0 %v7924_v31 }
0x12d5   : > { %3924 = vmatprep.subr.bf16.mxu1 %v7958_v18  ;;  %5768 = vmatprep.subr.bf16.mxu0 %v6570_v55 }
0x12d8   : > { %3925 = vmatpush1.bf16.msra.mxu1 %v7967_v20  ;;  %5769 = vmatpush3.bf16.msra.mxu0 %v7945_v3 }
0x12d9   : > { %3926 = vmatprep.subr.bf16.mxu1 %v7977_v25  ;;  %5770 = vmatprep.subr.bf16.mxu0 %v6570_v55 }
0x12dc   : > { %3927 = vmatpush1.bf16.msra.mxu1 %v7983_v28  ;;  %5771 = vmatpush3.bf16.msra.mxu0 %v7972_v62 }
0x12dd   : > { %4035 = vmatprep.subr.bf16.mxu1 %v7838_v36  ;;  %5776 = vmatprep.subr.bf16.mxu0 %v6570_v55 }
0x1392   : > { %v3823_v32 = vpop.f32.mrb[36].mxu1  ;;  %v3864_v27 = vpop.f32.mrb[40].mxu0 }
0x1393   : > { %v3873_v8 = vadd.f32 %v3870_v10, %v3823_v32  ;;  %v3825_v21 = vpop.f32.mrb[37].mxu1  ;;  %v5754_v40 = vpop.f32.mrb[41].mxu0  ;;  %v3994_v10 = vunpack.c.h.bf16 %v6280_v7 }
0x1394   : > { %v3880_v37 = vadd.f32 %v3871_v5, %v3825_v21  ;;  %v3827_v46 = vpop.f32.mrb[38].mxu1  ;;  %v3867_v44 = vpop.f32.mrb[42].mxu0 }
0x1395   : > { %v5051_v4 = vmul.f32 -1.442695, %v3873_v8  ;;  %v3828_v39 = vpop.f32.mrb[39].mxu1  ;;  %v5755_v2 = vpop.f32.mrb[43].mxu0 }
0x1396   : > { %v5052_v11 = vmul.f32 -1.442695, %v3880_v37 }
0x1397   : > { %6210 = vpow2.f32 %v5051_v4 }
0x1398   : > { %6212 = vpow2.f32 %v5052_v11 }
0x13a1   : > { %v6211_v58 = vpop.eup %6210 }
0x13a2   : > { %v3877_v45 = vadd.f32 1.0, %v6211_v58  ;;  %v6213_v23 = vpop.eup %6212 }
0x13a3   : > { %v3884_v60 = vadd.f32 1.0, %v6213_v23 }
0x13a4   : > { %6214 = vrcp.f32 %v3877_v45  ;;  %v8354_v45 = vld [vmem:[#allocation3 + $0x38] ss:$12 sps:$4 sm:$0xff]  }
0x13a5   : > { %6216 = vrcp.f32 %v3884_v60  ;;  %v3995_v60 = vunpack.c.h.bf16 %v8354_v45 }
0x13ae   : > { %v6215_v43 = vpop.eup %6214 }
0x13af   : > { %v3887_v0 = vmul.f32 %v6215_v43, %v3864_v27  ;;  %v6217_v34 = vpop.eup %6216 }
0x13b0   : > { %v3890_v49 = vsub.f32 1.0, %v6217_v34  ;;  %v3892_v6 = vmul.f32 %v6217_v34, %v8261_v19 }
0x13b1   : > { %v3888_v1 = vadd.f32 %v3887_v0, %v3872_v14 }
0x13b3   : > { %6218 = vtanh.f32 %v3888_v1 }
0x13bd   : > { %v6219_v59 = vpop.eup %6218 }
0x13be   : > { %v3891_v9 = vmul.f32 %v6219_v59, %v3890_v49 }
0x13c0   : > { %v3893_v13 = vadd.f32 %v3892_v6, %v3891_v9  ;;  %v4027_v6 = vstv %s4026_s27  ;;  %v4022_v9 = vpop.permute.xlu0 %4021 }
0x13c1   : > { %vm4023_vm14 = vcmp.eq.s32.totalorder %v4022_v9, 1 }
0x13c2   : > { %v8310_v22 = vsel %vm3900_vm13, %v3893_v13, %v8261_v19  ;;  %v3905_v63 = vsel %vm3900_vm13, %v3893_v13, %v3904_v30  ;;  %v3993_v19 = vunpack.c.l.bf16 %v6280_v7 }
0x13c3   : > { %v8315_v17 = vmax.f32 %v3783_v54, %v3905_v63  ;;  %v3911_v50 = vpack.c.bf16 %v8310_v22, %v8310_v22 }
0x13c5   : > { %3945 = vmatmul.mubr.bf16.vlgmr.msra.gmra.mrb[40].mxu1 %v3911_v50  ;;  %5773 = vmatmul.mubr.bf16.vlgmr.msra.gmra.mrb[44].mxu0 %v3911_v50 }
0x13c6   : > { %4036 = vmatpush1.bf16.msra.mxu1 %v7850_v47  ;;  %5777 = vmatpush3.bf16.msra.mxu0 %v7827_v56 }
0x13c7   : > { %4037 = vmatprep.subr.bf16.mxu1 %v7856_v61  ;;  %5778 = vmatprep.subr.bf16.mxu0 %v6570_v55 }
0x13c8   : > { %4067 = vmatprep.mubr.bf16.mxu1 %v6569_v26  ;;  %5792 = vmatprep.mubr.msk.bf16.mxu0 %vm6571_vm1, %v6570_v55 }
0x13ca   : > { %4038 = vmatpush1.bf16.msra.mxu1 %v7870_v35  ;;  %5779 = vmatpush3.bf16.msra.mxu0 %v7843_v38 }
0x13cb   : > { %4039 = vmatprep.subr.bf16.mxu1 %v7877_v29  ;;  %5780 = vmatprep.subr.bf16.mxu0 %v6570_v55 }
0x13ce   : > { %4040 = vmatpush1.bf16.msra.mxu1 %v7890_v41  ;;  %5781 = vmatpush3.bf16.msra.mxu0 %v7861_v42 }
0x13cf   : > { %4041 = vmatprep.subr.bf16.mxu1 %v7897_v53  ;;  %5782 = vmatprep.subr.bf16.mxu0 %v6570_v55 }
0x13d2   : > { %4042 = vmatpush1.bf16.msra.mxu1 %v7911_v48  ;;  %5783 = vmatpush3.bf16.msra.mxu0 %v7882_v52 }
0x13d3   : > { %4043 = vmatprep.subr.bf16.mxu1 %v7918_v33  ;;  %5784 = vmatprep.subr.bf16.mxu0 %v6570_v55 }
0x13d6   : > { %4044 = vmatpush1.bf16.msra.mxu1 %v7931_v15  ;;  %5785 = vmatpush3.bf16.msra.mxu0 %v7903_v51 }
0x13d7   : > { %4045 = vmatprep.subr.bf16.mxu1 %v7937_v57  ;;  %5786 = vmatprep.subr.bf16.mxu0 %v6570_v55 }
0x13da   : > { %4046 = vmatpush1.bf16.msra.mxu1 %v7951_v12  ;;  %5787 = vmatpush3.bf16.msra.mxu0 %v7924_v31 }
0x13db   : > { %4047 = vmatprep.subr.bf16.mxu1 %v7958_v18  ;;  %5788 = vmatprep.subr.bf16.mxu0 %v6570_v55 }
0x13de   : > { %4048 = vmatpush1.bf16.msra.mxu1 %v7967_v20  ;;  %5789 = vmatpush3.bf16.msra.mxu0 %v7945_v3 }
0x13df   : > { %4049 = vmatprep.subr.bf16.mxu1 %v7977_v25  ;;  %5790 = vmatprep.subr.bf16.mxu0 %v6570_v55 }
0x13e2   : > { %4050 = vmatpush1.bf16.msra.mxu1 %v7983_v28  ;;  %5791 = vmatpush3.bf16.msra.mxu0 %v7972_v62 }
0x13e3   : > { %4158 = vmatprep.subr.bf16.mxu1 %v7838_v36  ;;  %5796 = vmatprep.subr.bf16.mxu0 %v6570_v55 }
0x1498   : > { %v3946_v24 = vpop.f32.mrb[40].mxu1  ;;  %v3987_v54 = vpop.f32.mrb[44].mxu0 }
0x1499   : > { %v3996_v32 = vadd.f32 %v3993_v19, %v3946_v24  ;;  %v3948_v27 = vpop.f32.mrb[41].mxu1  ;;  %v5774_v5 = vpop.f32.mrb[45].mxu0 }
0x149a   : > { %v4003_v8 = vadd.f32 %v3994_v10, %v3948_v27  ;;  %v3950_v21 = vpop.f32.mrb[42].mxu1  ;;  %v3990_v40 = vpop.f32.mrb[46].mxu0 }
0x149b   : > { %v5055_v37 = vmul.f32 -1.442695, %v3996_v32  ;;  %v3951_v46 = vpop.f32.mrb[43].mxu1  ;;  %v5775_v44 = vpop.f32.mrb[47].mxu0 }
0x149c   : > { %v5056_v4 = vmul.f32 -1.442695, %v4003_v8 }
0x149d   : > { %6220 = vpow2.f32 %v5055_v37 }
0x149e   : > { %6222 = vpow2.f32 %v5056_v4 }
0x14a7   : > { %v6221_v39 = vpop.eup %6220 }
0x14a8   : > { %v4000_v2 = vadd.f32 1.0, %v6221_v39  ;;  %v6223_v11 = vpop.eup %6222 }
0x14a9   : > { %v4007_v58 = vadd.f32 1.0, %v6223_v11 }
0x14aa   : > { %6224 = vrcp.f32 %v4000_v2 }
0x14ab   : > { %6226 = vrcp.f32 %v4007_v58 }
0x14b4   : > { %v6225_v23 = vpop.eup %6224 }
0x14b5   : > { %v4010_v43 = vmul.f32 %v6225_v23, %v3987_v54  ;;  %v6227_v0 = vpop.eup %6226  ;;  %v4118_v23 = vunpack.c.l.bf16 %v8354_v45 }
0x14b6   : > { %v4013_v1 = vsub.f32 1.0, %v6227_v0  ;;  %v4015_v49 = vmul.f32 %v6227_v0, %v8310_v22 }
0x14b7   : > { %v4011_v14 = vadd.f32 %v4010_v43, %v3995_v60 }
0x14b9   : > { %6228 = vtanh.f32 %v4011_v14 }
0x14c3   : > { %v6229_v34 = vpop.eup %6228 }
0x14c4   : > { %v4014_v59 = vmul.f32 %v6229_v34, %v4013_v1 }
0x14c6   : > { %v4016_v30 = vadd.f32 %v4015_v49, %v4014_v59  ;;  %v4150_v59 = vstv %s4149_s1 }
0x14c8   : > { %v8360_v16 = vsel %vm4023_vm14, %v4016_v30, %v8310_v22  ;;  %v8362_v13 = vsel %vm4023_vm14, %v4016_v30, %v4027_v6  ;;  %v4032_v22 = vld [vmem:[#allocation3 + $0x30] sm:$0xff]  ;;  %v4145_v6 = vpop.permute.xlu1 %4144 }
0x14c9   : > { %v4029_v63 = vmax.f32 %v8315_v17, %v8362_v13  ;;  %v4034_v50 = vpack.c.bf16 %v8360_v16, %v8360_v16  ;;  %v4116_v7 = vunpack.c.l.bf16 %v4032_v22  ;;  %v4117_v27 = vunpack.c.h.bf16 %v4032_v22  ;;  %v4155_v17 = vld [vmem:[#allocation3 + $0x24] sm:$0xff] }
0x14ca   : > { %vm4146_vm15 = vcmp.eq.s32.totalorder %v4145_v6, 1 }
0x14cb   : > { %4068 = vmatmul.mubr.bf16.vlgmr.msra.gmra.mrb[44].mxu1 %v4034_v50  ;;  %5793 = vmatmul.mubr.bf16.vlgmr.msra.gmra.mrb[48].mxu0 %v4034_v50 }
0x14cc   : > { %4159 = vmatpush1.bf16.msra.mxu1 %v7850_v47  ;;  %5797 = vmatpush3.bf16.msra.mxu0 %v7827_v56 }
0x14cd   : > { %4160 = vmatprep.subr.bf16.mxu1 %v7856_v61  ;;  %5798 = vmatprep.subr.bf16.mxu0 %v6570_v55 }
0x14ce   : > { %4190 = vmatprep.mubr.bf16.mxu1 %v6569_v26  ;;  %5812 = vmatprep.mubr.msk.bf16.mxu0 %vm6571_vm1, %v6570_v55 }
0x14d0   : > { %4161 = vmatpush1.bf16.msra.mxu1 %v7870_v35  ;;  %5799 = vmatpush3.bf16.msra.mxu0 %v7843_v38 }
0x14d1   : > { %4162 = vmatprep.subr.bf16.mxu1 %v7877_v29  ;;  %5800 = vmatprep.subr.bf16.mxu0 %v6570_v55 }
0x14d4   : > { %4163 = vmatpush1.bf16.msra.mxu1 %v7890_v41  ;;  %5801 = vmatpush3.bf16.msra.mxu0 %v7861_v42 }
0x14d5   : > { %4164 = vmatprep.subr.bf16.mxu1 %v7897_v53  ;;  %5802 = vmatprep.subr.bf16.mxu0 %v6570_v55 }
0x14d8   : > { %4165 = vmatpush1.bf16.msra.mxu1 %v7911_v48  ;;  %5803 = vmatpush3.bf16.msra.mxu0 %v7882_v52 }
0x14d9   : > { %4166 = vmatprep.subr.bf16.mxu1 %v7918_v33  ;;  %5804 = vmatprep.subr.bf16.mxu0 %v6570_v55 }
0x14dc   : > { %4167 = vmatpush1.bf16.msra.mxu1 %v7931_v15  ;;  %5805 = vmatpush3.bf16.msra.mxu0 %v7903_v51 }
0x14dd   : > { %4168 = vmatprep.subr.bf16.mxu1 %v7937_v57  ;;  %5806 = vmatprep.subr.bf16.mxu0 %v6570_v55 }
0x14e0   : > { %4169 = vmatpush1.bf16.msra.mxu1 %v7951_v12  ;;  %5807 = vmatpush3.bf16.msra.mxu0 %v7924_v31 }
0x14e1   : > { %4170 = vmatprep.subr.bf16.mxu1 %v7958_v18  ;;  %5808 = vmatprep.subr.bf16.mxu0 %v6570_v55 }
0x14e4   : > { %4171 = vmatpush1.bf16.msra.mxu1 %v7967_v20  ;;  %5809 = vmatpush3.bf16.msra.mxu0 %v7945_v3 }
0x14e5   : > { %4172 = vmatprep.subr.bf16.mxu1 %v7977_v25  ;;  %5810 = vmatprep.subr.bf16.mxu0 %v6570_v55 }
0x14e8   : > { %4173 = vmatpush1.bf16.msra.mxu1 %v7983_v28  ;;  %5811 = vmatpush3.bf16.msra.mxu0 %v7972_v62 }
0x14e9   : > { %4281 = vmatprep.subr.bf16.mxu1 %v7838_v36  ;;  %5816 = vmatprep.subr.bf16.mxu0 %v6570_v55 }
0x159e   : > { %v4069_v19 = vpop.f32.mrb[44].mxu1  ;;  %v4110_v24 = vpop.f32.mrb[48].mxu0 }
0x159f   : > { %v4119_v54 = vadd.f32 %v4116_v7, %v4069_v19  ;;  %v4071_v10 = vpop.f32.mrb[45].mxu1  ;;  %v5794_v32 = vpop.f32.mrb[49].mxu0 }
0x15a0   : > { %v4073_v5 = vpop.f32.mrb[46].mxu1  ;;  %v4113_v8 = vpop.f32.mrb[50].mxu0  ;;  %v4126_v46 = vadd.f32 %v4117_v27, %v4071_v10 }
0x15a1   : > { %v5059_v21 = vmul.f32 -1.442695, %v4119_v54  ;;  %v4074_v40 = vpop.f32.mrb[47].mxu1  ;;  %v5795_v37 = vpop.f32.mrb[51].mxu0  ;;  %v4240_v54 = vunpack.c.h.bf16 %v4155_v17 }
0x15a2   : > { %v5060_v44 = vmul.f32 -1.442695, %v4126_v46 }
0x15a3   : > { %6230 = vpow2.f32 %v5059_v21 }
0x15a4   : > { %6232 = vpow2.f32 %v5060_v44 }
0x15ad   : > { %v6231_v4 = vpop.eup %6230 }
0x15ae   : > { %v4123_v39 = vadd.f32 1.0, %v6231_v4  ;;  %v6233_v2 = vpop.eup %6232 }
0x15af   : > { %v4130_v11 = vadd.f32 1.0, %v6233_v2 }
0x15b0   : > { %6234 = vrcp.f32 %v4123_v39  ;;  %v8451_v39 = vld [vmem:[#allocation3 + $0x20] ss:$12 sps:$4 sm:$0xff]  }
0x15b1   : > { %6236 = vrcp.f32 %v4130_v11  ;;  %v4241_v11 = vunpack.c.h.bf16 %v8451_v39 }
0x15ba   : > { %v6235_v58 = vpop.eup %6234 }
0x15bb   : > { %v4133_v60 = vmul.f32 %v6235_v58, %v4110_v24  ;;  %v6237_v14 = vpop.eup %6236 }
0x15bc   : > { %v4136_v0 = vsub.f32 1.0, %v6237_v14  ;;  %v4138_v34 = vmul.f32 %v6237_v14, %v8360_v16 }
0x15bd   : > { %v4134_v43 = vadd.f32 %v4133_v60, %v4118_v23 }
0x15bf   : > { %6238 = vtanh.f32 %v4134_v43 }
0x15c9   : > { %v6239_v1 = vpop.eup %6238 }
0x15ca   : > { %v4137_v49 = vmul.f32 %v6239_v1, %v4136_v0 }
0x15cc   : > { %v4139_v9 = vadd.f32 %v4138_v34, %v4137_v49  ;;  %v4273_v34 = vstv %s4272_s24  ;;  %v4268_v49 = vpop.permute.xlu0 %4267 }
0x15cd   : > { %vm4269_vm0 = vcmp.eq.s32.totalorder %v4268_v49, 1 }
0x15ce   : > { %v8407_v30 = vsel %vm4146_vm15, %v4139_v9, %v8360_v16  ;;  %v4151_v45 = vsel %vm4146_vm15, %v4139_v9, %v4150_v59  ;;  %v4239_v16 = vunpack.c.l.bf16 %v4155_v17 }
0x15cf   : > { %v8412_v50 = vmax.f32 %v4029_v63, %v4151_v45  ;;  %v4157_v22 = vpack.c.bf16 %v8407_v30, %v8407_v30 }
0x15d1   : > { %4191 = vmatmul.mubr.bf16.vlgmr.msra.gmra.mrb[48].mxu1 %v4157_v22  ;;  %5813 = vmatmul.mubr.bf16.vlgmr.msra.gmra.mrb[52].mxu0 %v4157_v22 }
0x15d2   : > { %4282 = vmatpush1.bf16.msra.mxu1 %v7850_v47  ;;  %5817 = vmatpush3.bf16.msra.mxu0 %v7827_v56 }
0x15d3   : > { %4283 = vmatprep.subr.bf16.mxu1 %v7856_v61  ;;  %5818 = vmatprep.subr.bf16.mxu0 %v6570_v55 }
0x15d4   : > { %4313 = vmatprep.mubr.bf16.mxu1 %v6569_v26  ;;  %5832 = vmatprep.mubr.msk.bf16.mxu0 %vm6571_vm1, %v6570_v55 }
0x15d6   : > { %4284 = vmatpush1.bf16.msra.mxu1 %v7870_v35  ;;  %5819 = vmatpush3.bf16.msra.mxu0 %v7843_v38 }
0x15d7   : > { %4285 = vmatprep.subr.bf16.mxu1 %v7877_v29  ;;  %5820 = vmatprep.subr.bf16.mxu0 %v6570_v55 }
0x15da   : > { %4286 = vmatpush1.bf16.msra.mxu1 %v7890_v41  ;;  %5821 = vmatpush3.bf16.msra.mxu0 %v7861_v42 }
0x15db   : > { %4287 = vmatprep.subr.bf16.mxu1 %v7897_v53  ;;  %5822 = vmatprep.subr.bf16.mxu0 %v6570_v55 }
0x15de   : > { %4288 = vmatpush1.bf16.msra.mxu1 %v7911_v48  ;;  %5823 = vmatpush3.bf16.msra.mxu0 %v7882_v52 }
0x15df   : > { %4289 = vmatprep.subr.bf16.mxu1 %v7918_v33  ;;  %5824 = vmatprep.subr.bf16.mxu0 %v6570_v55 }
0x15e2   : > { %4290 = vmatpush1.bf16.msra.mxu1 %v7931_v15  ;;  %5825 = vmatpush3.bf16.msra.mxu0 %v7903_v51 }
0x15e3   : > { %4291 = vmatprep.subr.bf16.mxu1 %v7937_v57  ;;  %5826 = vmatprep.subr.bf16.mxu0 %v6570_v55 }
0x15e6   : > { %4292 = vmatpush1.bf16.msra.mxu1 %v7951_v12  ;;  %5827 = vmatpush3.bf16.msra.mxu0 %v7924_v31 }
0x15e7   : > { %4293 = vmatprep.subr.bf16.mxu1 %v7958_v18  ;;  %5828 = vmatprep.subr.bf16.mxu0 %v6570_v55 }
0x15ea   : > { %4294 = vmatpush1.bf16.msra.mxu1 %v7967_v20  ;;  %5829 = vmatpush3.bf16.msra.mxu0 %v7945_v3 }
0x15eb   : > { %4295 = vmatprep.subr.bf16.mxu1 %v7977_v25  ;;  %5830 = vmatprep.subr.bf16.mxu0 %v6570_v55 }
0x15ee   : > { %4296 = vmatpush1.bf16.msra.mxu1 %v7983_v28  ;;  %5831 = vmatpush3.bf16.msra.mxu0 %v7972_v62 }
0x15ef   : > { %4404 = vmatprep.subr.bf16.mxu1 %v7838_v36  ;;  %5836 = vmatprep.subr.bf16.mxu0 %v6570_v55 }
0x16a4   : > { %v4192_v13 = vpop.f32.mrb[48].mxu1  ;;  %v4233_v63 = vpop.f32.mrb[52].mxu0 }
0x16a5   : > { %v4242_v7 = vadd.f32 %v4239_v16, %v4192_v13  ;;  %v4194_v19 = vpop.f32.mrb[49].mxu1  ;;  %v5814_v24 = vpop.f32.mrb[53].mxu0 }
0x16a6   : > { %v4196_v10 = vpop.f32.mrb[50].mxu1  ;;  %v4236_v32 = vpop.f32.mrb[54].mxu0  ;;  %v4249_v21 = vadd.f32 %v4240_v54, %v4194_v19 }
0x16a7   : > { %v5063_v27 = vmul.f32 -1.442695, %v4242_v7  ;;  %v4197_v5 = vpop.f32.mrb[51].mxu1  ;;  %v5815_v8 = vpop.f32.mrb[55].mxu0 }
0x16a8   : > { %v5064_v40 = vmul.f32 -1.442695, %v4249_v21 }
0x16a9   : > { %6240 = vpow2.f32 %v5063_v27 }
0x16aa   : > { %6242 = vpow2.f32 %v5064_v40 }
0x16b3   : > { %v6241_v37 = vpop.eup %6240 }
0x16b4   : > { %v4246_v46 = vadd.f32 1.0, %v6241_v37  ;;  %v6243_v44 = vpop.eup %6242 }
0x16b5   : > { %v4253_v4 = vadd.f32 1.0, %v6243_v44 }
0x16b6   : > { %6244 = vrcp.f32 %v4246_v46 }
0x16b7   : > { %6246 = vrcp.f32 %v4253_v4  ;;  %v4364_v4 = vunpack.c.l.bf16 %v8451_v39 }
0x16c0   : > { %v6245_v2 = vpop.eup %6244 }
0x16c1   : > { %v4256_v58 = vmul.f32 %v6245_v2, %v4233_v63  ;;  %v6247_v60 = vpop.eup %6246 }
0x16c2   : > { %v4259_v43 = vsub.f32 1.0, %v6247_v60  ;;  %v4261_v0 = vmul.f32 %v6247_v60, %v8407_v30 }
0x16c3   : > { %v4257_v23 = vadd.f32 %v4256_v58, %v4241_v11 }
0x16c5   : > { %6248 = vtanh.f32 %v4257_v23 }
0x16cf   : > { %v6249_v14 = vpop.eup %6248 }
0x16d0   : > { %v4260_v1 = vmul.f32 %v6249_v14, %v4259_v43 }
0x16d2   : > { %v4262_v59 = vadd.f32 %v4261_v0, %v4260_v1  ;;  %v4396_v0 = vstv %s4395_s13  ;;  %v4391_v1 = vpop.permute.xlu1 %4390 }
0x16d3   : > { %vm4392_vm2 = vcmp.eq.s32.totalorder %v4391_v1, 1 }
0x16d4   : > { %v8457_v6 = vsel %vm4269_vm0, %v4262_v59, %v8407_v30  ;;  %v8459_v9 = vsel %vm4269_vm0, %v4262_v59, %v4273_v34  ;;  %v4278_v30 = vld [vmem:[#allocation3 + $0x18] sm:$0xff] }
0x16d5   : > { %v4275_v45 = vmax.f32 %v8412_v50, %v8459_v9  ;;  %v4280_v22 = vpack.c.bf16 %v8457_v6, %v8457_v6  ;;  %v4362_v17 = vunpack.c.l.bf16 %v4278_v30  ;;  %v4363_v24 = vunpack.c.h.bf16 %v4278_v30  ;;  %v4514_v9 = vpop.permute.xlu0 %4513 }
0x16d7   : > { %4314 = vmatmul.mubr.bf16.vlgmr.msra.gmra.mrb[52].mxu1 %v4280_v22  ;;  %5833 = vmatmul.mubr.bf16.vlgmr.msra.gmra.mrb[56].mxu0 %v4280_v22 }
0x16d8   : > { %4405 = vmatpush1.bf16.msra.mxu1 %v7850_v47  ;;  %5837 = vmatpush3.bf16.msra.mxu0 %v7827_v56 }
0x16d9   : > { %4406 = vmatprep.subr.bf16.mxu1 %v7856_v61  ;;  %5838 = vmatprep.subr.bf16.mxu0 %v6570_v55 }
0x16da   : > { %4436 = vmatprep.mubr.bf16.mxu1 %v6569_v26  ;;  %5852 = vmatprep.mubr.msk.bf16.mxu0 %vm6571_vm1, %v6570_v55 }
0x16dc   : > { %4407 = vmatpush1.bf16.msra.mxu1 %v7870_v35  ;;  %5839 = vmatpush3.bf16.msra.mxu0 %v7843_v38 }
0x16dd   : > { %4408 = vmatprep.subr.bf16.mxu1 %v7877_v29  ;;  %5840 = vmatprep.subr.bf16.mxu0 %v6570_v55 }
0x16e0   : > { %4409 = vmatpush1.bf16.msra.mxu1 %v7890_v41  ;;  %5841 = vmatpush3.bf16.msra.mxu0 %v7861_v42 }
0x16e1   : > { %4410 = vmatprep.subr.bf16.mxu1 %v7897_v53  ;;  %5842 = vmatprep.subr.bf16.mxu0 %v6570_v55 }
0x16e4   : > { %4411 = vmatpush1.bf16.msra.mxu1 %v7911_v48  ;;  %5843 = vmatpush3.bf16.msra.mxu0 %v7882_v52 }
0x16e5   : > { %4412 = vmatprep.subr.bf16.mxu1 %v7918_v33  ;;  %5844 = vmatprep.subr.bf16.mxu0 %v6570_v55 }
0x16e8   : > { %4413 = vmatpush1.bf16.msra.mxu1 %v7931_v15  ;;  %5845 = vmatpush3.bf16.msra.mxu0 %v7903_v51 }
0x16e9   : > { %4414 = vmatprep.subr.bf16.mxu1 %v7937_v57  ;;  %5846 = vmatprep.subr.bf16.mxu0 %v6570_v55 }
0x16ec   : > { %4415 = vmatpush1.bf16.msra.mxu1 %v7951_v12  ;;  %5847 = vmatpush3.bf16.msra.mxu0 %v7924_v31 }
0x16ed   : > { %4416 = vmatprep.subr.bf16.mxu1 %v7958_v18  ;;  %5848 = vmatprep.subr.bf16.mxu0 %v6570_v55 }
0x16f0   : > { %4417 = vmatpush1.bf16.msra.mxu1 %v7967_v20  ;;  %5849 = vmatpush3.bf16.msra.mxu0 %v7945_v3 }
0x16f1   : > { %4418 = vmatprep.subr.bf16.mxu1 %v7977_v25  ;;  %5850 = vmatprep.subr.bf16.mxu0 %v6570_v55 }
0x16f4   : > { %4419 = vmatpush1.bf16.msra.mxu1 %v7983_v28  ;;  %5851 = vmatpush3.bf16.msra.mxu0 %v7972_v62 }
0x16f5   : > { %4525 = vmatprep.subr.bf16.mxu1 %v7838_v36  ;;  %5856 = vmatprep.subr.bf16.mxu0 %v6570_v55 }
0x17aa   : > { %v4315_v16 = vpop.f32.mrb[52].mxu1  ;;  %v4356_v13 = vpop.f32.mrb[56].mxu0 }
0x17ab   : > { %v4365_v63 = vadd.f32 %v4362_v17, %v4315_v16  ;;  %v4317_v7 = vpop.f32.mrb[53].mxu1  ;;  %v5834_v19 = vpop.f32.mrb[57].mxu0  ;;  %v4519_v17 = vstv %s4518_s17 }
0x17ac   : > { %v4319_v54 = vpop.f32.mrb[54].mxu1  ;;  %v4359_v10 = vpop.f32.mrb[58].mxu0  ;;  %v4372_v8 = vadd.f32 %v4363_v24, %v4317_v7  ;;  %v4522_v24 = vld [vmem:[#allocation3] sm:$0xff] }
0x17ad   : > { %v5067_v32 = vmul.f32 -1.442695, %v4365_v63  ;;  %v4320_v27 = vpop.f32.mrb[55].mxu1  ;;  %v5835_v5 = vpop.f32.mrb[59].mxu0  ;;  %v4606_v54 = vunpack.c.l.bf16 %v4522_v24 }
0x17ae   : > { %v5068_v21 = vmul.f32 -1.442695, %v4372_v8 }
0x17af   : > { %6250 = vpow2.f32 %v5067_v32 }
0x17b0   : > { %6252 = vpow2.f32 %v5068_v21  ;;  %v4607_v21 = vunpack.c.h.bf16 %v4522_v24 }
0x17b9   : > { %v6251_v36 = vpop.eup %6250 }
0x17ba   : > { %v4369_v40 = vadd.f32 1.0, %v6251_v36  ;;  %v6253_v37 = vpop.eup %6252 }
0x17bb   : > { %v4376_v46 = vadd.f32 1.0, %v6253_v37 }
0x17bc   : > { %6254 = vrcp.f32 %v4369_v40 }
0x17bd   : > { %6256 = vrcp.f32 %v4376_v46 }
0x17c6   : > { %v6255_v44 = vpop.eup %6254 }
0x17c7   : > { %v4379_v2 = vmul.f32 %v6255_v44, %v4356_v13  ;;  %v6257_v58 = vpop.eup %6256 }
0x17c8   : > { %v4382_v23 = vsub.f32 1.0, %v6257_v58  ;;  %v4384_v43 = vmul.f32 %v6257_v58, %v8457_v6 }
0x17c9   : > { %v4380_v11 = vadd.f32 %v4379_v2, %v4364_v4 }
0x17cb   : > { %6258 = vtanh.f32 %v4380_v11 }
0x17d5   : > { %v6259_v60 = vpop.eup %6258 }
0x17d6   : > { %v4383_v14 = vmul.f32 %v6259_v60, %v4382_v23 }
0x17d8   : > { %v4385_v34 = vadd.f32 %v4384_v43, %v4383_v14 }
0x17da   : > { %v8504_v49 = vsel %vm4392_vm2, %v4385_v34, %v8457_v6  ;;  %v4397_v39 = vsel %vm4392_vm2, %v4385_v34, %v4396_v0 }
0x17db   : > { %v8509_v59 = vmax.f32 %v4275_v45, %v4397_v39  ;;  %v4403_v22 = vpack.c.bf16 %v8504_v49, %v8504_v49 }
0x17dd   : > { %4437 = vmatmul.mubr.bf16.vlgmr.msra.gmra.mrb[56].mxu1 %v4403_v22  ;;  %5853 = vmatmul.mubr.bf16.vlgmr.msra.gmra.mrb[60].mxu0 %v4403_v22 }
0x17de   : > { %4526 = vmatpush1.bf16.msra.mxu1 %v7850_v47  ;;  %5857 = vmatpush3.bf16.msra.mxu0 %v7827_v56 }
0x17df   : > { %4527 = vmatprep.subr.bf16.mxu1 %v7856_v61  ;;  %5858 = vmatprep.subr.bf16.mxu0 %v6570_v55 }
0x17e0   : > { %4557 = vmatprep.mubr.bf16.mxu1 %v6569_v26  ;;  %5872 = vmatprep.mubr.msk.bf16.mxu0 %vm6571_vm1, %v6570_v55  ;;  %v4401_v26 = vld [vmem:[#allocation3 + $0xc] sm:$0xff]  ;;  %vm4515_vm1 = vcmp.eq.s32.totalorder %v4514_v9, 1 }
0x17e1   : > { %v4485_v56 = vunpack.c.l.bf16 %v4401_v26 }
0x17e2   : > { %4528 = vmatpush1.bf16.msra.mxu1 %v7870_v35  ;;  %5859 = vmatpush3.bf16.msra.mxu0 %v7843_v38 }
0x17e3   : > { %4529 = vmatprep.subr.bf16.mxu1 %v7877_v29  ;;  %5860 = vmatprep.subr.bf16.mxu0 %v6570_v55  ;;  %v4486_v29 = vunpack.c.h.bf16 %v4401_v26 }
0x17e6   : > { %4530 = vmatpush1.bf16.msra.mxu1 %v7890_v41  ;;  %5861 = vmatpush3.bf16.msra.mxu0 %v7861_v42 }
0x17e7   : > { %4531 = vmatprep.subr.bf16.mxu1 %v7897_v53  ;;  %5862 = vmatprep.subr.bf16.mxu0 %v6570_v55 }
0x17ea   : > { %4532 = vmatpush1.bf16.msra.mxu1 %v7911_v48  ;;  %5863 = vmatpush3.bf16.msra.mxu0 %v7882_v52 }
0x17eb   : > { %4533 = vmatprep.subr.bf16.mxu1 %v7918_v33  ;;  %5864 = vmatprep.subr.bf16.mxu0 %v6570_v55 }
0x17ee   : > { %4534 = vmatpush1.bf16.msra.mxu1 %v7931_v15  ;;  %5865 = vmatpush3.bf16.msra.mxu0 %v7903_v51 }
0x17ef   : > { %4535 = vmatprep.subr.bf16.mxu1 %v7937_v57  ;;  %5866 = vmatprep.subr.bf16.mxu0 %v6570_v55 }
0x17f2   : > { %4536 = vmatpush1.bf16.msra.mxu1 %v7951_v12  ;;  %5867 = vmatpush3.bf16.msra.mxu0 %v7924_v31  ;;  %v4402_v12 = vld [vmem:[#allocation3 + $0x8] ss:$12 sps:$4 sm:$0xff]  }
0x17f3   : > { %4537 = vmatprep.subr.bf16.mxu1 %v7958_v18  ;;  %5868 = vmatprep.subr.bf16.mxu0 %v6570_v55  ;;  %v4608_v14 = vunpack.c.l.bf16 %v4402_v12 }
0x17f6   : > { %4538 = vmatpush1.bf16.msra.mxu1 %v7967_v20  ;;  %5869 = vmatpush3.bf16.msra.mxu0 %v7945_v3  ;;  %v4487_v20 = vunpack.c.h.bf16 %v4402_v12 }
0x17f7   : > { %4539 = vmatprep.subr.bf16.mxu1 %v7977_v25  ;;  %5870 = vmatprep.subr.bf16.mxu0 %v6570_v55 }
0x17fa   : > { %4540 = vmatpush1.bf16.msra.mxu1 %v7983_v28  ;;  %5871 = vmatpush3.bf16.msra.mxu0 %v7972_v62 }
0x18b0   : > { %v4438_v38 = vpop.f32.mrb[56].mxu1  ;;  %v4479_v47 = vpop.f32.mrb[60].mxu0 }
0x18b1   : > { %v4488_v61 = vadd.f32 %v4485_v56, %v4438_v38  ;;  %v4440_v42 = vpop.f32.mrb[57].mxu1  ;;  %v5854_v35 = vpop.f32.mrb[61].mxu0 }
0x18b2   : > { %v4442_v52 = vpop.f32.mrb[58].mxu1  ;;  %v4482_v41 = vpop.f32.mrb[62].mxu0  ;;  %v4495_v33 = vadd.f32 %v4486_v29, %v4440_v42 }
0x18b3   : > { %v5071_v53 = vmul.f32 -1.442695, %v4488_v61  ;;  %v4443_v51 = vpop.f32.mrb[59].mxu1  ;;  %v5855_v48 = vpop.f32.mrb[63].mxu0 }
0x18b4   : > { %v5072_v55 = vmul.f32 -1.442695, %v4495_v33 }
0x18b5   : > { %6260 = vpow2.f32 %v5071_v53 }
0x18b6   : > { %6262 = vpow2.f32 %v5072_v55 }
0x18bf   : > { %v6261_v31 = vpop.eup %6260 }
0x18c0   : > { %v4492_v15 = vadd.f32 1.0, %v6261_v31  ;;  %v6263_v57 = vpop.eup %6262 }
0x18c1   : > { %v4499_v3 = vadd.f32 1.0, %v6263_v57 }
0x18c2   : > { %6264 = vrcp.f32 %v4492_v15 }
0x18c3   : > { %6266 = vrcp.f32 %v4499_v3 }
0x18cc   : > { %v6265_v18 = vpop.eup %6264 }
0x18cd   : > { %v4502_v62 = vmul.f32 %v6265_v18, %v4479_v47  ;;  %v6267_v28 = vpop.eup %6266 }
0x18ce   : > { %v4505_v50 = vsub.f32 1.0, %v6267_v28  ;;  %v4507_v45 = vmul.f32 %v6267_v28, %v8504_v49 }
0x18cf   : > { %v4503_v25 = vadd.f32 %v4502_v62, %v4487_v20 }
0x18d1   : > { %6268 = vtanh.f32 %v4503_v25 }
0x18db   : > { %v6269_v6 = vpop.eup %6268 }
0x18dc   : > { %v4506_v30 = vmul.f32 %v6269_v6, %v4505_v50 }
0x18de   : > { %v4508_v16 = vadd.f32 %v4507_v45, %v4506_v30 }
0x18e0   : > { %v4516_v13 = vsel %vm4515_vm1, %v4508_v16, %v8504_v49  ;;  %v4520_v63 = vsel %vm4515_vm1, %v4508_v16, %v4519_v17 }
0x18e1   : > { %v4521_v7 = vmax.f32 %v8509_v59, %v4520_v63  ;;  %v4524_v19 = vpack.c.bf16 %v4516_v13, %v4516_v13  ;;  %v4635_v59 = vpop.permute.xlu1 %4634 }
0x18e2   : > { %vm4636_vm3 = vcmp.eq.s32.totalorder %v4635_v59, 1 }
0x18e3   : > { %4558 = vmatmul.mubr.bf16.vlgmr.msra.gmra.mrb[60].mxu1 %v4524_v19  ;;  %5873 = vmatmul.mubr.bf16.vlgmr.msra.gmra.mrb[64].mxu0 %v4524_v19 }
0x19b6   : > { %v4559_v10 = vpop.f32.mrb[60].mxu1  ;;  %v4600_v32 = vpop.f32.mrb[64].mxu0 }
0x19b7   : > { %v4609_v27 = vadd.f32 %v4606_v54, %v4559_v10  ;;  %v4561_v5 = vpop.f32.mrb[61].mxu1  ;;  %v5874_v8 = vpop.f32.mrb[65].mxu0 }
0x19b8   : > { %v4563_v36 = vpop.f32.mrb[62].mxu1  ;;  %v4603_v40 = vpop.f32.mrb[66].mxu0  ;;  %v4616_v4 = vadd.f32 %v4607_v21, %v4561_v5 }
0x19b9   : > { %v5075_v37 = vmul.f32 -1.442695, %v4609_v27  ;;  %v4564_v46 = vpop.f32.mrb[63].mxu1  ;;  %v5875_v44 = vpop.f32.mrb[67].mxu0 }
0x19ba   : > { %v5076_v2 = vmul.f32 -1.442695, %v4616_v4 }
0x19bb   : > { %6270 = vpow2.f32 %v5075_v37 }
0x19bc   : > { %6272 = vpow2.f32 %v5076_v2 }
0x19c5   : > { %v6271_v11 = vpop.eup %6270 }
0x19c6   : > { %v4613_v58 = vadd.f32 1.0, %v6271_v11  ;;  %v6273_v23 = vpop.eup %6272 }
0x19c7   : > { %v4620_v60 = vadd.f32 1.0, %v6273_v23 }
0x19c8   : > { %6274 = vrcp.f32 %v4613_v58 }
0x19c9   : > { %6276 = vrcp.f32 %v4620_v60 }
0x19d2   : > { %v6275_v43 = vpop.eup %6274 }
0x19d3   : > { %v4623_v0 = vmul.f32 %v6275_v43, %v4600_v32  ;;  %v6277_v34 = vpop.eup %6276 }
0x19d4   : > { %v4626_v49 = vsub.f32 1.0, %v6277_v34  ;;  %v4628_v26 = vmul.f32 %v6277_v34, %v4516_v13 }
0x19d5   : > { %v4624_v1 = vadd.f32 %v4623_v0, %v4608_v14 }
0x19d7   : > { %6278 = vtanh.f32 %v4624_v1 }
0x19e1   : > { %v6279_v39 = vpop.eup %6278 }
0x19e2   : > { %v4627_v22 = vmul.f32 %v6279_v39, %v4626_v49 }
0x19e4   : > { %v4629_v56 = vadd.f32 %v4628_v26, %v4627_v22 }
0x19e6   : > { %v4637_v38 = vsel %vm4636_vm3, %v4629_v56, %v4516_v13  ;;  %v4638_v47 = vsel %vm4636_vm3, %v4629_v56, 0.0 }
0x19e7   : > { %v4639_v61 = vmax.f32 %v4521_v7, %v4638_v47  ;;  %4640 = vst [vmem:[#allocation5] sm:$0xff] %v4637_v38 }
0x19e9   : > { %4641 = vst [vmem:[#allocation7] sm:$0xff] %v4639_v61 }
0x19ea PF: > { %v4645_v42 = vld [vmem:[#allocation6] sm:$0xff]  ;;  %s5131_s23 = sshll.u32 %s6543_s10, 8  ;;  %s8706_s18 = sld [smem:[#allocation57_spill]] }
0x19eb   : > { %4646 = vst [vmem:[%s7073_s21] sm:$0xff] %v4645_v42  ;;  %s4664_s5 = sshll.u32 %s7073_s21, 4  ;;  %s4650_s14 = scalar_lea.sflag [#allocation12], %s6904_s6  ;;  %s4665_s5 = int_to_ptr.vmem [resolvable:$true] %s4664_s5 }
0x19ec   : > { %s6453_s16 = scalar_lea.vmem %s4665_s5, 256  ;;  %s6572_s8 = smov [#allocation21]  }
0x19ed   : > { %p6454_p13 = scmp.ne.s32.totalorder %s4665_s5, %s6453_s16  ;;  %s6457_s28 = sshll.u32 %s6572_s8, 4  ;;  %s6458_s28 = int_to_ptr.vmem [resolvable:$false] %s6457_s28 }
0x19ee   : > { %s6459_s22 = scalar_lea.vmem %s6458_s28, 512  ;;  %p6460_p8 = scmp.lt.s32.totalorder %s4665_s5, %s6458_s28 }
0x19ef   : > { %p6455_p4 = pnand %p6454_p13, %p6801_p5  ;;  %p6461_p10 = scmp.lt.s32.totalorder %s6459_s22, %s6453_s16 }
0x19f0   : > { %v4647_v35 = vld [vmem:[#allocation7] sm:$0xff]  ;;  %s8556_s4 = scalar_lea.hbm %s8706_s18, %s5131_s23 }
0x19f1   : > { %4648 = vst [vmem:[%s7073_s21 + $0x8] sm:$0xff] %v4647_v35  ;;  %p6456_p1 = pneg %p6455_p4  ;;  %p6462_p3 = por %p6461_p10, %p6460_p8 }
0x19f3   : > { %p6463_p11 = pnand %p6462_p3, %p6456_p1 }
0x19f5   : > { %6466 = shalt.err (!%p6463_p11)
}
0x19f6   : > { %s6467_s10 = scalar_lea.hbm %s8556_s4, 256  ;;  %s6471_s26 = scalar_lea.hbm %s8706_s18, 512 }
0x19f7   : > { %p6468_p12 = scmp.ne.s32.totalorder %s8556_s4, %s6467_s10  ;;  %p6472_p9 = scmp.lt.u32.totalorder %s8556_s4, %s8706_s18 }
0x19f8   : > { %p6473_p0 = scmp.lt.u32.totalorder %s6471_s26, %s6467_s10  ;;  %p6475_p13 = scmp.lt.u32.totalorder %s6467_s10, %s8556_s4 }
0x19f9   : > { %p6469_p6 = pnand %p6468_p12, %p6801_p5 }
0x19fa   : > { %p6474_p2 = por %p6473_p0, %p6472_p9 }
0x19fb   : > { %p6470_p7 = pneg %p6469_p6 }
0x19fc   : > { %p6476_p4 = por %p6475_p13, %p6474_p2 }
0x19fe   : > { %p6477_p1 = pnand %p6476_p4, %p6470_p7 }
0x1a00   : > { %6480 = shalt.err (!%p6477_p1)
}
0x1a01   : > { %5907 = dma.vmem_to_hbm [thread:$0]  (%p6801_p5), %s4665_s5, 256, %s8556_s4, %s4650_s14  }
0x1a02 PF: > { %s8707_s1 = sld [smem:[#allocation28_spill]]  ;;  %s8708_s24 = sld [smem:[#allocation29_spill]] }
0x1a03   : > { %p8710_p10 = scmp.ge.s32.totalorder %s6551_s12, 2 }
0x1a08   : > { %s4676_s13 = sand.u32 1, %s8707_s1   ;;  %p8709_p8 = scmp.ne.s32.totalorder %s8708_s24, 0 }
0x1a09   : > { %s4677_s17 = scalar_lea.sflag [#allocation12], %s4676_s13 }
0x1a0a   : > { %p5930_p3 = pnand %p8710_p10, %p8709_p8 }
0x1a0c   : > { %6526 = dma.done.wait (!%p5930_p3), %s4677_s17, 256  }
0x1a0d   : > { %6528 = vsyncadd (!%p5930_p3), %s4677_s17, 4294967040  ;;  %s30_s12 = sadd.s32 1, %s6551_s12   ;;  %s8711_s29 = smov %s6535_s30 }
0x1a0e   : > { %p27_p11 = scmp.ge.s32.totalorder %s30_s12, 4   ;;  %s8712_s30 = smov %s6539_s9 }
0x1a0f   : > { %s8713_s9 = smov %s6812_s15  ;;  %s8714_s10 = smov %s6547_s11 }
0x1a10   : > { %s8715_s11 = smov %s8717_s19  ;;  %29 = sbr.rel (!%p27_p11) target bundleno = 17 (0x11), region = 163 }
0x1a17   :  { %4682 = vsyncpa [#allocation11], 1 }
0x1a18   :  { %4684 = vsyncpa [#allocation11 + $0x1], 1 }
0x1a19   :  { %4685 = vsyncpa [#allocation14], 1 }
0x1a1a   :  { %4687 = vsyncpa [#allocation14 + $0x1], 1 }
0x1a1b   :  { %4688 = vsyncpa [#allocation17], 1 }
0x1a1c   :  { %4689 = vsyncpa [#allocation20], 1 }
0x1a1d   :  { %4690 = vsyncpa [#allocation12], 1 }
0x1a1e   :  { %4692 = vsyncpa [#allocation12 + $0x1], 1 }

</bundles_post_ra>
